<compile_context>
chip_gen: v7x
topology: tpu7x:2x2x1
jax: 0.10.0
libtpu: 0.0.40
codegen_flags: <defaults>
</compile_context>

<pallas_src>
import numpy as np
import jax
import jax.numpy as jnp
from jax.experimental import pallas as pl
from jax.experimental.pallas import tpu as pltpu


# ----------------------------------------------------------------------------
# Weight preprocessing (wrapper side, weights only — tiny, no activation work).
# Activations inside the kernel are 2-D (H, W*C); a KxK conv then becomes KH
# matmuls against banded block-Toeplitz matrices.
# ----------------------------------------------------------------------------
def _conv_row_mats(w, w_in):
    """w: (Cout, Cin, KH, KW) PyTorch Conv2d weight.

    Returns A with A[i, wi*Cin + c, wo*Cout + o] = w[o, c, i, wi - wo]
    (zero outside the band) so that, with X in (H, W*Cin) layout,
        Y[h] = sum_i X[h + i] @ A[i]
    is the valid stride-1 cross-correlation in (OH, OW*Cout) layout.
    """
    Cout, Cin, KH, KW = w.shape
    ow = w_in - KW + 1
    wi = np.arange(w_in)[:, None]
    wo = np.arange(ow)[None, :]
    j = wi - wo
    valid = (j >= 0) & (j < KW)
    jc = np.clip(j, 0, KW - 1)
    wt = jnp.transpose(w, (2, 3, 1, 0))                  # (KH, KW, Cin, Cout)
    g = wt[:, jc, :, :]                                  # (KH, w_in, ow, Cin, Cout)
    g = jnp.where(valid[None, :, :, None, None], g, 0.0)
    g = jnp.transpose(g, (0, 1, 3, 2, 4))                # (KH, w_in, Cin, ow, Cout)
    return g.reshape(KH, w_in * Cin, ow * Cout)


def _deconv_row_mats(w, w_in):
    """w: (Cin, Cout, KH, KW) PyTorch ConvTranspose2d weight (stride 1, pad 0).

    Returns B with B[i, wi*Cin + c, wo*Cout + o] = w[c, o, i, wo - wi]
    (zero outside the band) so that the scatter form
        Y[h + i] += X[h] @ B[i]
    reproduces ConvTranspose2d in (OH, OW*Cout) layout (OW = W + KW - 1).
    """
    Cin, Cout, KH, KW = w.shape
    ow = w_in + KW - 1
    wi = np.arange(w_in)[:, None]
    wo = np.arange(ow)[None, :]
    j = wo - wi
    valid = (j >= 0) & (j < KW)
    jc = np.clip(j, 0, KW - 1)
    wt = jnp.transpose(w, (2, 3, 0, 1))                  # (KH, KW, Cin, Cout)
    g = wt[:, jc, :, :]
    g = jnp.where(valid[None, :, :, None, None], g, 0.0)
    g = jnp.transpose(g, (0, 1, 3, 2, 4))
    return g.reshape(KH, w_in * Cin, ow * Cout)


# ----------------------------------------------------------------------------
# The single fused Pallas kernel (one grid step == one batch element).
# ----------------------------------------------------------------------------
def _ae_fused_kernel(x_ref, a1_ref, srow_ref, b1_ref,
                     a2_ref, b2_ref, a3_ref, b3_ref,
                     t1_ref, b4_ref, t2_ref, b5_ref, t3_ref, b6_ref,
                     o_ref, s1_ref, s2_ref, s3_ref):
    def mm(a, b):
        return jnp.dot(a, b, preferred_element_type=jnp.float32)

    x = x_ref[0]                                         # (H, W) single image

    # --- Conv2d(1, 32, 3) fused with MaxPool2d(4) + ReLU ---------------------
    kh1 = a1_ref.shape[1]
    oh1 = x.shape[0] - kh1 + 1
    pw = None
    for dw in range(4):                                  # pool column phases
        acc = mm(x[0:oh1, :], a1_ref[dw, 0])
        for i in range(1, kh1):
            acc = acc + mm(x[i:i + oh1, :], a1_ref[dw, i])
        pw = acc if pw is None else jnp.maximum(pw, acc)
    ph = None
    for dh in range(4):                                  # pool row phases
        sel = mm(srow_ref[dh], pw)
        ph = sel if ph is None else jnp.maximum(ph, sel)
    h1 = jnp.maximum(ph + b1_ref[...], 0.0)              # (PH, PW*32)

    # --- Conv2d(32, 16, 3) + ReLU --------------------------------------------
    kh2 = a2_ref.shape[0]
    r2 = h1.shape[0] - kh2 + 1
    acc = mm(h1[0:r2, :], a2_ref[0])
    for i in range(1, kh2):
        acc = acc + mm(h1[i:i + r2, :], a2_ref[i])
    h2 = jnp.maximum(acc + b2_ref[...], 0.0)             # (H2, W2*16)

    # --- Conv2d(16, 16, 3) ----------------------------------------------------
    kh3 = a3_ref.shape[0]
    r3 = h2.shape[0] - kh3 + 1
    acc = mm(h2[0:r3, :], a3_ref[0])
    for i in range(1, kh3):
        acc = acc + mm(h2[i:i + r3, :], a3_ref[i])
    h3 = acc + b3_ref[...]                               # (H3, W3*16)

    # --- ConvTranspose2d(16, 16, 5) + ReLU  (scatter / shift-accumulate) ------
    s1_ref[...] = jnp.zeros_like(s1_ref)
    for i in range(t1_ref.shape[0]):
        s1_ref[i:i + r3, :] += mm(h3, t1_ref[i])
    h4 = jnp.maximum(s1_ref[...] + b4_ref[...], 0.0)     # (H4, W4*16)

    # --- ConvTranspose2d(16, 16, 9) + ReLU ------------------------------------
    r4 = h4.shape[0]
    s2_ref[...] = jnp.zeros_like(s2_ref)
    for i in range(t2_ref.shape[0]):
        s2_ref[i:i + r4, :] += mm(h4, t2_ref[i])
    h5 = jnp.maximum(s2_ref[...] + b5_ref[...], 0.0)     # (H5, W5*16)

    # --- ConvTranspose2d(16, 1, 9) + Sigmoid ----------------------------------
    r5 = h5.shape[0]
    s3_ref[...] = jnp.zeros_like(s3_ref)
    for i in range(t3_ref.shape[0]):
        s3_ref[i:i + r5, :] += mm(h5, t3_ref[i])
    z = s3_ref[...] + b6_ref[...]                        # (H6, W6)
    o_ref[0] = 1.0 / (1.0 + jnp.exp(-z))                 # sigmoid (f32 epilogue)


# ----------------------------------------------------------------------------
# Public forward (NCHW in / NCHW out, like the torch module)
# ----------------------------------------------------------------------------
def ae_forward(x_nchw, p):
    N, cin, H, W = x_nchw.shape
    assert cin == 1
    x = x_nchw[:, 0, :, :].astype(jnp.float32)           # (N, H, W)

    C1 = p["c1_w"].shape[0]                              # 32
    K1 = p["c1_w"].shape[2]
    OH1, OW1 = H - K1 + 1, W - K1 + 1
    PH, PW = OH1 // 4, OW1 // 4                          # MaxPool2d(4) (floor)
    K2 = p["c2_w"].shape[2]; H2, W2 = PH - K2 + 1, PW - K2 + 1
    K3 = p["c3_w"].shape[2]; H3, W3 = H2 - K3 + 1, W2 - K3 + 1
    K4 = p["d1_w"].shape[2]; H4, W4 = H3 + K4 - 1, W3 + K4 - 1
    K5 = p["d2_w"].shape[2]; H5, W5 = H4 + K5 - 1, W4 + K5 - 1
    K6 = p["d3_w"].shape[2]; H6, W6 = H5 + K6 - 1, W5 + K6 - 1
    Cd = p["d1_w"].shape[1]                              # 16

    # conv1 band matrices with the 4 pool-column phases folded into the
    # weight columns (only pooled output columns are ever computed).
    A1 = _conv_row_mats(p["c1_w"], W).reshape(K1, W, OW1, C1)
    cols = 4 * np.arange(PW)[None, :] + np.arange(4)[:, None]   # (4, PW)
    A1 = jnp.transpose(A1[:, :, cols, :], (2, 0, 1, 3, 4))      # (4,K1,W,PW,C1)
    A1 = A1.reshape(4, K1, W, PW * C1)

    srow = np.zeros((4, PH, OH1), np.float32)            # pool row-phase select
    for dh in range(4):
        srow[dh, np.arange(PH), 4 * np.arange(PH) + dh] = 1.0
    srow = jnp.asarray(srow)

    A2 = _conv_row_mats(p["c2_w"], PW)                   # (K2, PW*32, W2*16)
    A3 = _conv_row_mats(p["c3_w"], W2)                   # (K3, W2*16, W3*16)
    T1 = _deconv_row_mats(p["d1_w"], W3)                 # (K4, W3*16, W4*16)
    T2 = _deconv_row_mats(p["d2_w"], W4)                 # (K5, W4*16, W5*16)
    T3 = _deconv_row_mats(p["d3_w"], W5)                 # (K6, W5*16, W6*1)

    b1 = jnp.tile(p["c1_b"], PW)[None, :]
    b2 = jnp.tile(p["c2_b"], W2)[None, :]
    b3 = jnp.tile(p["c3_b"], W3)[None, :]
    b4 = jnp.tile(p["d1_b"], W4)[None, :]
    b5 = jnp.tile(p["d2_b"], W5)[None, :]
    b6 = jnp.tile(p["d3_b"], W6)[None, :]

    def full(a):
        zeros = (0,) * a.ndim
        return pl.BlockSpec(a.shape, lambda n: zeros)

    out = pl.pallas_call(
        _ae_fused_kernel,
        out_shape=jax.ShapeDtypeStruct((N, H6, W6), jnp.float32),
        grid=(N,),
        in_specs=[
            pl.BlockSpec((1, H, W), lambda n: (n, 0, 0)),
            full(A1), full(srow), full(b1),
            full(A2), full(b2),
            full(A3), full(b3),
            full(T1), full(b4),
            full(T2), full(b5),
            full(T3), full(b6),
        ],
        out_specs=pl.BlockSpec((1, H6, W6), lambda n: (n, 0, 0)),
        scratch_shapes=[
            pltpu.VMEM((H4, W4 * Cd), jnp.float32),
            pltpu.VMEM((H5, W5 * Cd), jnp.float32),
            pltpu.VMEM((H6, W6), jnp.float32),
        ],
        compiler_params=pltpu.CompilerParams(
            dimension_semantics=("parallel",)),
    )(x, A1, srow, b1, A2, b2, A3, b3, T1, b4, T2, b5, T3, b6)
    return out[:, None, :, :]                            # NCHW


# ----------------------------------------------------------------------------
# Pure-JAX reference (for in-script validation only)
# ----------------------------------------------------------------------------
def _ae_reference(x_nchw, p):
    dn = ("NCHW", "OIHW", "NCHW")

    def conv(x, w, b):
        y = jax.lax.conv_general_dilated(x, w, (1, 1), "VALID",
                                         dimension_numbers=dn)
        return y + b[None, :, None, None]

    def convT(x, w, b):
        kh, kw = w.shape[2], w.shape[3]
        wf = jnp.transpose(jnp.flip(w, (2, 3)), (1, 0, 2, 3))
        y = jax.lax.conv_general_dilated(
            x, wf, (1, 1), [(kh - 1, kh - 1), (kw - 1, kw - 1)],
            dimension_numbers=dn)
        return y + b[None, :, None, None]

    h = conv(x_nchw, p["c1_w"], p["c1_b"])
    n, c, hh, ww = h.shape
    h = h[:, :, :(hh // 4) * 4, :(ww // 4) * 4]
    h = h.reshape(n, c, hh // 4, 4, ww // 4, 4).max(axis=(3, 5))
    h = jax.nn.relu(h)
    h = jax.nn.relu(conv(h, p["c2_w"], p["c2_b"]))
    h = conv(h, p["c3_w"], p["c3_b"])
    h = jax.nn.relu(convT(h, p["d1_w"], p["d1_b"]))
    h = jax.nn.relu(convT(h, p["d2_w"], p["d2_b"]))
    return jax.nn.sigmoid(convT(h, p["d3_w"], p["d3_b"]))


def init_params(key):
    def uinit(k, shape, fan_in):
        bound = 1.0 / jnp.sqrt(jnp.float32(fan_in))
        return jax.random.uniform(k, shape, jnp.float32, -bound, bound)

    ks = jax.random.split(key, 12)
    p = {}
    p["c1_w"] = uinit(ks[0], (32, 1, 3, 3), 1 * 3 * 3)
    p["c1_b"] = uinit(ks[1], (32,), 1 * 3 * 3)
    p["c2_w"] = uinit(ks[2], (16, 32, 3, 3), 32 * 3 * 3)
    p["c2_b"] = uinit(ks[3], (16,), 32 * 3 * 3)
    p["c3_w"] = uinit(ks[4], (16, 16, 3, 3), 16 * 3 * 3)
    p["c3_b"] = uinit(ks[5], (16,), 16 * 3 * 3)
    p["d1_w"] = uinit(ks[6], (16, 16, 5, 5), 16 * 5 * 5)
    p["d1_b"] = uinit(ks[7], (16,), 16 * 5 * 5)
    p["d2_w"] = uinit(ks[8], (16, 16, 9, 9), 16 * 9 * 9)
    p["d2_b"] = uinit(ks[9], (16,), 16 * 9 * 9)
    p["d3_w"] = uinit(ks[10], (16, 1, 9, 9), 16 * 9 * 9)
    p["d3_b"] = uinit(ks[11], (1,), 16 * 9 * 9)
    return p


if __name__ == "__main__":
    key = jax.random.PRNGKey(0)
    k_param, k_x = jax.random.split(key)
    params = init_params(k_param)
    # MNIST-like input implied by the architecture: (N, 1, 28, 28), NCHW.
    x = jax.random.normal(k_x, (2, 1, 28, 28), dtype=jnp.float32)

    fwd = jax.jit(ae_forward)
    out = jax.block_until_ready(fwd(x, params))

    # 28 -> 26 -> 6 -> 4 -> 2 (encode) -> 6 -> 14 -> 22 (decode)
    assert out.shape == (2, 1, 22, 22), out.shape
    assert out.dtype == jnp.float32
    assert bool(jnp.all(jnp.isfinite(out)))
    assert bool(jnp.all((out >= 0.0) & (out <= 1.0)))    # sigmoid output

    ref = jax.jit(_ae_reference)(x, params)
    err = float(jnp.max(jnp.abs(out - ref)))
    assert err < 2e-2, f"mismatch vs reference: {err}"

    print("KERNEL_OK")
</pallas_src>

<mosaic_0001>
module attributes {stable_mosaic.version = 11 : i64} {
  func.func @_ae_fused_kernel(%arg0: i32, %arg1: memref<1x28x28xf32, #tpu.memory_space<vmem>>, %arg2: memref<4x3x28x192xf32, #tpu.memory_space<vmem>>, %arg3: memref<4x6x26xf32, #tpu.memory_space<vmem>>, %arg4: memref<1x192xf32, #tpu.memory_space<vmem>>, %arg5: memref<3x192x64xf32, #tpu.memory_space<vmem>>, %arg6: memref<1x64xf32, #tpu.memory_space<vmem>>, %arg7: memref<3x64x32xf32, #tpu.memory_space<vmem>>, %arg8: memref<1x32xf32, #tpu.memory_space<vmem>>, %arg9: memref<5x32x96xf32, #tpu.memory_space<vmem>>, %arg10: memref<1x96xf32, #tpu.memory_space<vmem>>, %arg11: memref<9x96x224xf32, #tpu.memory_space<vmem>>, %arg12: memref<1x224xf32, #tpu.memory_space<vmem>>, %arg13: memref<9x224x22xf32, #tpu.memory_space<vmem>>, %arg14: memref<1x22xf32, #tpu.memory_space<vmem>>, %arg15: memref<1x22x22xf32, #tpu.memory_space<vmem>>, %arg16: memref<6x96xf32, #tpu.memory_space<vmem>>, %arg17: memref<14x224xf32, #tpu.memory_space<vmem>>, %arg18: memref<22x22xf32, #tpu.memory_space<vmem>>) attributes {dimension_semantics = [#tpu.dimension_semantics<parallel>], iteration_bounds = array<i64: 2>, scalar_prefetch = 0 : i64, scratch_operands = 3 : i64, tpu.core_type = #tpu.core_type<tc>, window_params = [{transform_indices = @transform_0, window_bounds = array<i64: 1, 28, 28>}, {pipeline_mode = #tpu.pipeline_mode<synchronous>, transform_indices = @transform_1, window_bounds = array<i64: 4, 3, 28, 192>}, {pipeline_mode = #tpu.pipeline_mode<synchronous>, transform_indices = @transform_2, window_bounds = array<i64: 4, 6, 26>}, {pipeline_mode = #tpu.pipeline_mode<synchronous>, transform_indices = @transform_3, window_bounds = array<i64: 1, 192>}, {pipeline_mode = #tpu.pipeline_mode<synchronous>, transform_indices = @transform_4, window_bounds = array<i64: 3, 192, 64>}, {pipeline_mode = #tpu.pipeline_mode<synchronous>, transform_indices = @transform_5, window_bounds = array<i64: 1, 64>}, {pipeline_mode = #tpu.pipeline_mode<synchronous>, transform_indices = @transform_6, window_bounds = array<i64: 3, 64, 32>}, {pipeline_mode = #tpu.pipeline_mode<synchronous>, transform_indices = @transform_7, window_bounds = array<i64: 1, 32>}, {pipeline_mode = #tpu.pipeline_mode<synchronous>, transform_indices = @transform_8, window_bounds = array<i64: 5, 32, 96>}, {pipeline_mode = #tpu.pipeline_mode<synchronous>, transform_indices = @transform_9, window_bounds = array<i64: 1, 96>}, {pipeline_mode = #tpu.pipeline_mode<synchronous>, transform_indices = @transform_10, window_bounds = array<i64: 9, 96, 224>}, {pipeline_mode = #tpu.pipeline_mode<synchronous>, transform_indices = @transform_11, window_bounds = array<i64: 1, 224>}, {pipeline_mode = #tpu.pipeline_mode<synchronous>, transform_indices = @transform_12, window_bounds = array<i64: 9, 224, 22>}, {pipeline_mode = #tpu.pipeline_mode<synchronous>, transform_indices = @transform_13, window_bounds = array<i64: 1, 22>}, {transform_indices = @transform_14, window_bounds = array<i64: 1, 22, 22>}]} {
    %c0 = arith.constant 0 : index
    %c0_0 = arith.constant 0 : index
    %c0_1 = arith.constant 0 : index
    %0 = vector.load %arg1[%c0, %c0_0, %c0_1] : memref<1x28x28xf32, #tpu.memory_space<vmem>>, vector<1x28x28xf32>
    %1 = vector.shape_cast %0 : vector<1x28x28xf32> to vector<28x28xf32>
    %2 = vector.extract_strided_slice %1 {offsets = [0, 0], sizes = [26, 28], strides = [1, 1]} : vector<28x28xf32> to vector<26x28xf32>
    %c0_2 = arith.constant 0 : index
    %c0_3 = arith.constant 0 : index
    %c0_4 = arith.constant 0 : index
    %c0_5 = arith.constant 0 : index
    %3 = vector.load %arg2[%c0_2, %c0_3, %c0_4, %c0_5] : memref<4x3x28x192xf32, #tpu.memory_space<vmem>>, vector<1x1x28x192xf32>
    %4 = vector.shape_cast %3 : vector<1x1x28x192xf32> to vector<28x192xf32>
    %cst = arith.constant dense<0.000000e+00> : vector<26x192xf32>
    %5 = tpu.matmul %2, %4, %cst {dimension_numbers = #tpu.dot_dimension_numbers<[1], [0], [0], [1], [0, 0, 1, 1], [], []>} : vector<26x28xf32>, vector<28x192xf32>, vector<26x192xf32> -> vector<26x192xf32>
    %6 = vector.extract_strided_slice %1 {offsets = [1, 0], sizes = [26, 28], strides = [1, 1]} : vector<28x28xf32> to vector<26x28xf32>
    %c0_6 = arith.constant 0 : index
    %c1 = arith.constant 1 : index
    %c0_7 = arith.constant 0 : index
    %c0_8 = arith.constant 0 : index
    %7 = vector.load %arg2[%c0_6, %c1, %c0_7, %c0_8] : memref<4x3x28x192xf32, #tpu.memory_space<vmem>>, vector<1x1x28x192xf32>
    %8 = vector.shape_cast %7 : vector<1x1x28x192xf32> to vector<28x192xf32>
    %cst_9 = arith.constant dense<0.000000e+00> : vector<26x192xf32>
    %9 = tpu.matmul %6, %8, %cst_9 {dimension_numbers = #tpu.dot_dimension_numbers<[1], [0], [0], [1], [0, 0, 1, 1], [], []>} : vector<26x28xf32>, vector<28x192xf32>, vector<26x192xf32> -> vector<26x192xf32>
    %10 = arith.addf %5, %9 : vector<26x192xf32>
    %11 = vector.extract_strided_slice %1 {offsets = [2, 0], sizes = [26, 28], strides = [1, 1]} : vector<28x28xf32> to vector<26x28xf32>
    %c0_10 = arith.constant 0 : index
    %c2 = arith.constant 2 : index
    %c0_11 = arith.constant 0 : index
    %c0_12 = arith.constant 0 : index
    %12 = vector.load %arg2[%c0_10, %c2, %c0_11, %c0_12] : memref<4x3x28x192xf32, #tpu.memory_space<vmem>>, vector<1x1x28x192xf32>
    %13 = vector.shape_cast %12 : vector<1x1x28x192xf32> to vector<28x192xf32>
    %cst_13 = arith.constant dense<0.000000e+00> : vector<26x192xf32>
    %14 = tpu.matmul %11, %13, %cst_13 {dimension_numbers = #tpu.dot_dimension_numbers<[1], [0], [0], [1], [0, 0, 1, 1], [], []>} : vector<26x28xf32>, vector<28x192xf32>, vector<26x192xf32> -> vector<26x192xf32>
    %15 = arith.addf %10, %14 : vector<26x192xf32>
    %16 = vector.extract_strided_slice %1 {offsets = [0, 0], sizes = [26, 28], strides = [1, 1]} : vector<28x28xf32> to vector<26x28xf32>
    %c1_14 = arith.constant 1 : index
    %c0_15 = arith.constant 0 : index
    %c0_16 = arith.constant 0 : index
    %c0_17 = arith.constant 0 : index
    %17 = vector.load %arg2[%c1_14, %c0_15, %c0_16, %c0_17] : memref<4x3x28x192xf32, #tpu.memory_space<vmem>>, vector<1x1x28x192xf32>
    %18 = vector.shape_cast %17 : vector<1x1x28x192xf32> to vector<28x192xf32>
    %cst_18 = arith.constant dense<0.000000e+00> : vector<26x192xf32>
    %19 = tpu.matmul %16, %18, %cst_18 {dimension_numbers = #tpu.dot_dimension_numbers<[1], [0], [0], [1], [0, 0, 1, 1], [], []>} : vector<26x28xf32>, vector<28x192xf32>, vector<26x192xf32> -> vector<26x192xf32>
    %20 = vector.extract_strided_slice %1 {offsets = [1, 0], sizes = [26, 28], strides = [1, 1]} : vector<28x28xf32> to vector<26x28xf32>
    %c1_19 = arith.constant 1 : index
    %c1_20 = arith.constant 1 : index
    %c0_21 = arith.constant 0 : index
    %c0_22 = arith.constant 0 : index
    %21 = vector.load %arg2[%c1_19, %c1_20, %c0_21, %c0_22] : memref<4x3x28x192xf32, #tpu.memory_space<vmem>>, vector<1x1x28x192xf32>
    %22 = vector.shape_cast %21 : vector<1x1x28x192xf32> to vector<28x192xf32>
    %cst_23 = arith.constant dense<0.000000e+00> : vector<26x192xf32>
    %23 = tpu.matmul %20, %22, %cst_23 {dimension_numbers = #tpu.dot_dimension_numbers<[1], [0], [0], [1], [0, 0, 1, 1], [], []>} : vector<26x28xf32>, vector<28x192xf32>, vector<26x192xf32> -> vector<26x192xf32>
    %24 = arith.addf %19, %23 : vector<26x192xf32>
    %25 = vector.extract_strided_slice %1 {offsets = [2, 0], sizes = [26, 28], strides = [1, 1]} : vector<28x28xf32> to vector<26x28xf32>
    %c1_24 = arith.constant 1 : index
    %c2_25 = arith.constant 2 : index
    %c0_26 = arith.constant 0 : index
    %c0_27 = arith.constant 0 : index
    %26 = vector.load %arg2[%c1_24, %c2_25, %c0_26, %c0_27] : memref<4x3x28x192xf32, #tpu.memory_space<vmem>>, vector<1x1x28x192xf32>
    %27 = vector.shape_cast %26 : vector<1x1x28x192xf32> to vector<28x192xf32>
    %cst_28 = arith.constant dense<0.000000e+00> : vector<26x192xf32>
    %28 = tpu.matmul %25, %27, %cst_28 {dimension_numbers = #tpu.dot_dimension_numbers<[1], [0], [0], [1], [0, 0, 1, 1], [], []>} : vector<26x28xf32>, vector<28x192xf32>, vector<26x192xf32> -> vector<26x192xf32>
    %29 = arith.addf %24, %28 : vector<26x192xf32>
    %30 = arith.maximumf %15, %29 : vector<26x192xf32>
    %31 = vector.extract_strided_slice %1 {offsets = [0, 0], sizes = [26, 28], strides = [1, 1]} : vector<28x28xf32> to vector<26x28xf32>
    %c2_29 = arith.constant 2 : index
    %c0_30 = arith.constant 0 : index
    %c0_31 = arith.constant 0 : index
    %c0_32 = arith.constant 0 : index
    %32 = vector.load %arg2[%c2_29, %c0_30, %c0_31, %c0_32] : memref<4x3x28x192xf32, #tpu.memory_space<vmem>>, vector<1x1x28x192xf32>
    %33 = vector.shape_cast %32 : vector<1x1x28x192xf32> to vector<28x192xf32>
    %cst_33 = arith.constant dense<0.000000e+00> : vector<26x192xf32>
    %34 = tpu.matmul %31, %33, %cst_33 {dimension_numbers = #tpu.dot_dimension_numbers<[1], [0], [0], [1], [0, 0, 1, 1], [], []>} : vector<26x28xf32>, vector<28x192xf32>, vector<26x192xf32> -> vector<26x192xf32>
    %35 = vector.extract_strided_slice %1 {offsets = [1, 0], sizes = [26, 28], strides = [1, 1]} : vector<28x28xf32> to vector<26x28xf32>
    %c2_34 = arith.constant 2 : index
    %c1_35 = arith.constant 1 : index
    %c0_36 = arith.constant 0 : index
    %c0_37 = arith.constant 0 : index
    %36 = vector.load %arg2[%c2_34, %c1_35, %c0_36, %c0_37] : memref<4x3x28x192xf32, #tpu.memory_space<vmem>>, vector<1x1x28x192xf32>
    %37 = vector.shape_cast %36 : vector<1x1x28x192xf32> to vector<28x192xf32>
    %cst_38 = arith.constant dense<0.000000e+00> : vector<26x192xf32>
    %38 = tpu.matmul %35, %37, %cst_38 {dimension_numbers = #tpu.dot_dimension_numbers<[1], [0], [0], [1], [0, 0, 1, 1], [], []>} : vector<26x28xf32>, vector<28x192xf32>, vector<26x192xf32> -> vector<26x192xf32>
    %39 = arith.addf %34, %38 : vector<26x192xf32>
    %40 = vector.extract_strided_slice %1 {offsets = [2, 0], sizes = [26, 28], strides = [1, 1]} : vector<28x28xf32> to vector<26x28xf32>
    %c2_39 = arith.constant 2 : index
    %c2_40 = arith.constant 2 : index
    %c0_41 = arith.constant 0 : index
    %c0_42 = arith.constant 0 : index
    %41 = vector.load %arg2[%c2_39, %c2_40, %c0_41, %c0_42] : memref<4x3x28x192xf32, #tpu.memory_space<vmem>>, vector<1x1x28x192xf32>
    %42 = vector.shape_cast %41 : vector<1x1x28x192xf32> to vector<28x192xf32>
    %cst_43 = arith.constant dense<0.000000e+00> : vector<26x192xf32>
    %43 = tpu.matmul %40, %42, %cst_43 {dimension_numbers = #tpu.dot_dimension_numbers<[1], [0], [0], [1], [0, 0, 1, 1], [], []>} : vector<26x28xf32>, vector<28x192xf32>, vector<26x192xf32> -> vector<26x192xf32>
    %44 = arith.addf %39, %43 : vector<26x192xf32>
    %45 = arith.maximumf %30, %44 : vector<26x192xf32>
    %46 = vector.extract_strided_slice %1 {offsets = [0, 0], sizes = [26, 28], strides = [1, 1]} : vector<28x28xf32> to vector<26x28xf32>
    %c3 = arith.constant 3 : index
    %c0_44 = arith.constant 0 : index
    %c0_45 = arith.constant 0 : index
    %c0_46 = arith.constant 0 : index
    %47 = vector.load %arg2[%c3, %c0_44, %c0_45, %c0_46] : memref<4x3x28x192xf32, #tpu.memory_space<vmem>>, vector<1x1x28x192xf32>
    %48 = vector.shape_cast %47 : vector<1x1x28x192xf32> to vector<28x192xf32>
    %cst_47 = arith.constant dense<0.000000e+00> : vector<26x192xf32>
    %49 = tpu.matmul %46, %48, %cst_47 {dimension_numbers = #tpu.dot_dimension_numbers<[1], [0], [0], [1], [0, 0, 1, 1], [], []>} : vector<26x28xf32>, vector<28x192xf32>, vector<26x192xf32> -> vector<26x192xf32>
    %50 = vector.extract_strided_slice %1 {offsets = [1, 0], sizes = [26, 28], strides = [1, 1]} : vector<28x28xf32> to vector<26x28xf32>
    %c3_48 = arith.constant 3 : index
    %c1_49 = arith.constant 1 : index
    %c0_50 = arith.constant 0 : index
    %c0_51 = arith.constant 0 : index
    %51 = vector.load %arg2[%c3_48, %c1_49, %c0_50, %c0_51] : memref<4x3x28x192xf32, #tpu.memory_space<vmem>>, vector<1x1x28x192xf32>
    %52 = vector.shape_cast %51 : vector<1x1x28x192xf32> to vector<28x192xf32>
    %cst_52 = arith.constant dense<0.000000e+00> : vector<26x192xf32>
    %53 = tpu.matmul %50, %52, %cst_52 {dimension_numbers = #tpu.dot_dimension_numbers<[1], [0], [0], [1], [0, 0, 1, 1], [], []>} : vector<26x28xf32>, vector<28x192xf32>, vector<26x192xf32> -> vector<26x192xf32>
    %54 = arith.addf %49, %53 : vector<26x192xf32>
    %55 = vector.extract_strided_slice %1 {offsets = [2, 0], sizes = [26, 28], strides = [1, 1]} : vector<28x28xf32> to vector<26x28xf32>
    %c3_53 = arith.constant 3 : index
    %c2_54 = arith.constant 2 : index
    %c0_55 = arith.constant 0 : index
    %c0_56 = arith.constant 0 : index
    %56 = vector.load %arg2[%c3_53, %c2_54, %c0_55, %c0_56] : memref<4x3x28x192xf32, #tpu.memory_space<vmem>>, vector<1x1x28x192xf32>
    %57 = vector.shape_cast %56 : vector<1x1x28x192xf32> to vector<28x192xf32>
    %cst_57 = arith.constant dense<0.000000e+00> : vector<26x192xf32>
    %58 = tpu.matmul %55, %57, %cst_57 {dimension_numbers = #tpu.dot_dimension_numbers<[1], [0], [0], [1], [0, 0, 1, 1], [], []>} : vector<26x28xf32>, vector<28x192xf32>, vector<26x192xf32> -> vector<26x192xf32>
    %59 = arith.addf %54, %58 : vector<26x192xf32>
    %60 = arith.maximumf %45, %59 : vector<26x192xf32>
    %c0_58 = arith.constant 0 : index
    %c0_59 = arith.constant 0 : index
    %c0_60 = arith.constant 0 : index
    %61 = vector.load %arg3[%c0_58, %c0_59, %c0_60] : memref<4x6x26xf32, #tpu.memory_space<vmem>>, vector<1x6x26xf32>
    %62 = vector.shape_cast %61 : vector<1x6x26xf32> to vector<6x26xf32>
    %cst_61 = arith.constant dense<0.000000e+00> : vector<6x192xf32>
    %63 = tpu.matmul %62, %60, %cst_61 {dimension_numbers = #tpu.dot_dimension_numbers<[1], [0], [0], [1], [0, 0, 1, 1], [], []>} : vector<6x26xf32>, vector<26x192xf32>, vector<6x192xf32> -> vector<6x192xf32>
    %c1_62 = arith.constant 1 : index
    %c0_63 = arith.constant 0 : index
    %c0_64 = arith.constant 0 : index
    %64 = vector.load %arg3[%c1_62, %c0_63, %c0_64] : memref<4x6x26xf32, #tpu.memory_space<vmem>>, vector<1x6x26xf32>
    %65 = vector.shape_cast %64 : vector<1x6x26xf32> to vector<6x26xf32>
    %cst_65 = arith.constant dense<0.000000e+00> : vector<6x192xf32>
    %66 = tpu.matmul %65, %60, %cst_65 {dimension_numbers = #tpu.dot_dimension_numbers<[1], [0], [0], [1], [0, 0, 1, 1], [], []>} : vector<6x26xf32>, vector<26x192xf32>, vector<6x192xf32> -> vector<6x192xf32>
    %67 = arith.maximumf %63, %66 : vector<6x192xf32>
    %c2_66 = arith.constant 2 : index
    %c0_67 = arith.constant 0 : index
    %c0_68 = arith.constant 0 : index
    %68 = vector.load %arg3[%c2_66, %c0_67, %c0_68] : memref<4x6x26xf32, #tpu.memory_space<vmem>>, vector<1x6x26xf32>
    %69 = vector.shape_cast %68 : vector<1x6x26xf32> to vector<6x26xf32>
    %cst_69 = arith.constant dense<0.000000e+00> : vector<6x192xf32>
    %70 = tpu.matmul %69, %60, %cst_69 {dimension_numbers = #tpu.dot_dimension_numbers<[1], [0], [0], [1], [0, 0, 1, 1], [], []>} : vector<6x26xf32>, vector<26x192xf32>, vector<6x192xf32> -> vector<6x192xf32>
    %71 = arith.maximumf %67, %70 : vector<6x192xf32>
    %c3_70 = arith.constant 3 : index
    %c0_71 = arith.constant 0 : index
    %c0_72 = arith.constant 0 : index
    %72 = vector.load %arg3[%c3_70, %c0_71, %c0_72] : memref<4x6x26xf32, #tpu.memory_space<vmem>>, vector<1x6x26xf32>
    %73 = vector.shape_cast %72 : vector<1x6x26xf32> to vector<6x26xf32>
    %cst_73 = arith.constant dense<0.000000e+00> : vector<6x192xf32>
    %74 = tpu.matmul %73, %60, %cst_73 {dimension_numbers = #tpu.dot_dimension_numbers<[1], [0], [0], [1], [0, 0, 1, 1], [], []>} : vector<6x26xf32>, vector<26x192xf32>, vector<6x192xf32> -> vector<6x192xf32>
    %75 = arith.maximumf %71, %74 : vector<6x192xf32>
    %c0_74 = arith.constant 0 : index
    %c0_75 = arith.constant 0 : index
    %76 = vector.load %arg4[%c0_74, %c0_75] : memref<1x192xf32, #tpu.memory_space<vmem>>, vector<1x192xf32>
    %77 = vector.broadcast %76 : vector<1x192xf32> to vector<6x192xf32>
    %78 = arith.addf %75, %77 : vector<6x192xf32>
    %cst_76 = arith.constant 0.000000e+00 : f32
    %79 = vector.broadcast %cst_76 : f32 to vector<6x192xf32>
    %80 = arith.maximumf %78, %79 : vector<6x192xf32>
    %81 = vector.extract_strided_slice %80 {offsets = [0, 0], sizes = [4, 192], strides = [1, 1]} : vector<6x192xf32> to vector<4x192xf32>
    %c0_77 = arith.constant 0 : index
    %c0_78 = arith.constant 0 : index
    %c0_79 = arith.constant 0 : index
    %82 = vector.load %arg5[%c0_77, %c0_78, %c0_79] : memref<3x192x64xf32, #tpu.memory_space<vmem>>, vector<1x192x64xf32>
    %83 = vector.shape_cast %82 : vector<1x192x64xf32> to vector<192x64xf32>
    %cst_80 = arith.constant dense<0.000000e+00> : vector<4x64xf32>
    %84 = tpu.matmul %81, %83, %cst_80 {dimension_numbers = #tpu.dot_dimension_numbers<[1], [0], [0], [1], [0, 0, 1, 1], [], []>} : vector<4x192xf32>, vector<192x64xf32>, vector<4x64xf32> -> vector<4x64xf32>
    %85 = vector.extract_strided_slice %80 {offsets = [1, 0], sizes = [4, 192], strides = [1, 1]} : vector<6x192xf32> to vector<4x192xf32>
    %c1_81 = arith.constant 1 : index
    %c0_82 = arith.constant 0 : index
    %c0_83 = arith.constant 0 : index
    %86 = vector.load %arg5[%c1_81, %c0_82, %c0_83] : memref<3x192x64xf32, #tpu.memory_space<vmem>>, vector<1x192x64xf32>
    %87 = vector.shape_cast %86 : vector<1x192x64xf32> to vector<192x64xf32>
    %cst_84 = arith.constant dense<0.000000e+00> : vector<4x64xf32>
    %88 = tpu.matmul %85, %87, %cst_84 {dimension_numbers = #tpu.dot_dimension_numbers<[1], [0], [0], [1], [0, 0, 1, 1], [], []>} : vector<4x192xf32>, vector<192x64xf32>, vector<4x64xf32> -> vector<4x64xf32>
    %89 = arith.addf %84, %88 : vector<4x64xf32>
    %90 = vector.extract_strided_slice %80 {offsets = [2, 0], sizes = [4, 192], strides = [1, 1]} : vector<6x192xf32> to vector<4x192xf32>
    %c2_85 = arith.constant 2 : index
    %c0_86 = arith.constant 0 : index
    %c0_87 = arith.constant 0 : index
    %91 = vector.load %arg5[%c2_85, %c0_86, %c0_87] : memref<3x192x64xf32, #tpu.memory_space<vmem>>, vector<1x192x64xf32>
    %92 = vector.shape_cast %91 : vector<1x192x64xf32> to vector<192x64xf32>
    %cst_88 = arith.constant dense<0.000000e+00> : vector<4x64xf32>
    %93 = tpu.matmul %90, %92, %cst_88 {dimension_numbers = #tpu.dot_dimension_numbers<[1], [0], [0], [1], [0, 0, 1, 1], [], []>} : vector<4x192xf32>, vector<192x64xf32>, vector<4x64xf32> -> vector<4x64xf32>
    %94 = arith.addf %89, %93 : vector<4x64xf32>
    %c0_89 = arith.constant 0 : index
    %c0_90 = arith.constant 0 : index
    %95 = vector.load %arg6[%c0_89, %c0_90] : memref<1x64xf32, #tpu.memory_space<vmem>>, vector<1x64xf32>
    %96 = vector.broadcast %95 : vector<1x64xf32> to vector<4x64xf32>
    %97 = arith.addf %94, %96 : vector<4x64xf32>
    %cst_91 = arith.constant 0.000000e+00 : f32
    %98 = vector.broadcast %cst_91 : f32 to vector<4x64xf32>
    %99 = arith.maximumf %97, %98 : vector<4x64xf32>
    %100 = vector.extract_strided_slice %99 {offsets = [0, 0], sizes = [2, 64], strides = [1, 1]} : vector<4x64xf32> to vector<2x64xf32>
    %c0_92 = arith.constant 0 : index
    %c0_93 = arith.constant 0 : index
    %c0_94 = arith.constant 0 : index
    %101 = vector.load %arg7[%c0_92, %c0_93, %c0_94] : memref<3x64x32xf32, #tpu.memory_space<vmem>>, vector<1x64x32xf32>
    %102 = vector.shape_cast %101 : vector<1x64x32xf32> to vector<64x32xf32>
    %cst_95 = arith.constant dense<0.000000e+00> : vector<2x32xf32>
    %103 = tpu.matmul %100, %102, %cst_95 {dimension_numbers = #tpu.dot_dimension_numbers<[1], [0], [0], [1], [0, 0, 1, 1], [], []>} : vector<2x64xf32>, vector<64x32xf32>, vector<2x32xf32> -> vector<2x32xf32>
    %104 = vector.extract_strided_slice %99 {offsets = [1, 0], sizes = [2, 64], strides = [1, 1]} : vector<4x64xf32> to vector<2x64xf32>
    %c1_96 = arith.constant 1 : index
    %c0_97 = arith.constant 0 : index
    %c0_98 = arith.constant 0 : index
    %105 = vector.load %arg7[%c1_96, %c0_97, %c0_98] : memref<3x64x32xf32, #tpu.memory_space<vmem>>, vector<1x64x32xf32>
    %106 = vector.shape_cast %105 : vector<1x64x32xf32> to vector<64x32xf32>
    %cst_99 = arith.constant dense<0.000000e+00> : vector<2x32xf32>
    %107 = tpu.matmul %104, %106, %cst_99 {dimension_numbers = #tpu.dot_dimension_numbers<[1], [0], [0], [1], [0, 0, 1, 1], [], []>} : vector<2x64xf32>, vector<64x32xf32>, vector<2x32xf32> -> vector<2x32xf32>
    %108 = arith.addf %103, %107 : vector<2x32xf32>
    %109 = vector.extract_strided_slice %99 {offsets = [2, 0], sizes = [2, 64], strides = [1, 1]} : vector<4x64xf32> to vector<2x64xf32>
    %c2_100 = arith.constant 2 : index
    %c0_101 = arith.constant 0 : index
    %c0_102 = arith.constant 0 : index
    %110 = vector.load %arg7[%c2_100, %c0_101, %c0_102] : memref<3x64x32xf32, #tpu.memory_space<vmem>>, vector<1x64x32xf32>
    %111 = vector.shape_cast %110 : vector<1x64x32xf32> to vector<64x32xf32>
    %cst_103 = arith.constant dense<0.000000e+00> : vector<2x32xf32>
    %112 = tpu.matmul %109, %111, %cst_103 {dimension_numbers = #tpu.dot_dimension_numbers<[1], [0], [0], [1], [0, 0, 1, 1], [], []>} : vector<2x64xf32>, vector<64x32xf32>, vector<2x32xf32> -> vector<2x32xf32>
    %113 = arith.addf %108, %112 : vector<2x32xf32>
    %c0_104 = arith.constant 0 : index
    %c0_105 = arith.constant 0 : index
    %114 = vector.load %arg8[%c0_104, %c0_105] : memref<1x32xf32, #tpu.memory_space<vmem>>, vector<1x32xf32>
    %115 = vector.broadcast %114 : vector<1x32xf32> to vector<2x32xf32>
    %116 = arith.addf %113, %115 : vector<2x32xf32>
    %cst_106 = arith.constant 0.000000e+00 : f32
    %117 = vector.broadcast %cst_106 : f32 to vector<6x96xf32>
    %c0_107 = arith.constant 0 : index
    %c0_108 = arith.constant 0 : index
    %118 = vector.load %arg16[%c0_107, %c0_108] : memref<6x96xf32, #tpu.memory_space<vmem>>, vector<6x96xf32>
    tpu.vector_store %arg16[%c0_107, %c0_108], %117 {strides = array<i32>} : memref<6x96xf32, #tpu.memory_space<vmem>>, vector<6x96xf32>,
    %c0_109 = arith.constant 0 : index
    %c0_110 = arith.constant 0 : index
    %119 = vector.load %arg16[%c0_109, %c0_110] : memref<6x96xf32, #tpu.memory_space<vmem>>, vector<2x96xf32>
    %c0_111 = arith.constant 0 : index
    %c0_112 = arith.constant 0 : index
    %c0_113 = arith.constant 0 : index
    %120 = vector.load %arg9[%c0_111, %c0_112, %c0_113] : memref<5x32x96xf32, #tpu.memory_space<vmem>>, vector<1x32x96xf32>
    %121 = vector.shape_cast %120 : vector<1x32x96xf32> to vector<32x96xf32>
    %cst_114 = arith.constant dense<0.000000e+00> : vector<2x96xf32>
    %122 = tpu.matmul %116, %121, %cst_114 {dimension_numbers = #tpu.dot_dimension_numbers<[1], [0], [0], [1], [0, 0, 1, 1], [], []>} : vector<2x32xf32>, vector<32x96xf32>, vector<2x96xf32> -> vector<2x96xf32>
    %123 = arith.addf %119, %122 : vector<2x96xf32>
    %c0_115 = arith.constant 0 : index
    %c0_116 = arith.constant 0 : index
    %124 = vector.load %arg16[%c0_115, %c0_116] : memref<6x96xf32, #tpu.memory_space<vmem>>, vector<2x96xf32>
    tpu.vector_store %arg16[%c0_115, %c0_116], %123 {strides = array<i32>} : memref<6x96xf32, #tpu.memory_space<vmem>>, vector<2x96xf32>,
    %c1_117 = arith.constant 1 : index
    %c0_118 = arith.constant 0 : index
    %125 = vector.load %arg16[%c1_117, %c0_118] : memref<6x96xf32, #tpu.memory_space<vmem>>, vector<2x96xf32>
    %c1_119 = arith.constant 1 : index
    %c0_120 = arith.constant 0 : index
    %c0_121 = arith.constant 0 : index
    %126 = vector.load %arg9[%c1_119, %c0_120, %c0_121] : memref<5x32x96xf32, #tpu.memory_space<vmem>>, vector<1x32x96xf32>
    %127 = vector.shape_cast %126 : vector<1x32x96xf32> to vector<32x96xf32>
    %cst_122 = arith.constant dense<0.000000e+00> : vector<2x96xf32>
    %128 = tpu.matmul %116, %127, %cst_122 {dimension_numbers = #tpu.dot_dimension_numbers<[1], [0], [0], [1], [0, 0, 1, 1], [], []>} : vector<2x32xf32>, vector<32x96xf32>, vector<2x96xf32> -> vector<2x96xf32>
    %129 = arith.addf %125, %128 : vector<2x96xf32>
    %c1_123 = arith.constant 1 : index
    %c0_124 = arith.constant 0 : index
    %130 = vector.load %arg16[%c1_123, %c0_124] : memref<6x96xf32, #tpu.memory_space<vmem>>, vector<2x96xf32>
    tpu.vector_store %arg16[%c1_123, %c0_124], %129 {strides = array<i32>} : memref<6x96xf32, #tpu.memory_space<vmem>>, vector<2x96xf32>,
    %c2_125 = arith.constant 2 : index
    %c0_126 = arith.constant 0 : index
    %131 = vector.load %arg16[%c2_125, %c0_126] : memref<6x96xf32, #tpu.memory_space<vmem>>, vector<2x96xf32>
    %c2_127 = arith.constant 2 : index
    %c0_128 = arith.constant 0 : index
    %c0_129 = arith.constant 0 : index
    %132 = vector.load %arg9[%c2_127, %c0_128, %c0_129] : memref<5x32x96xf32, #tpu.memory_space<vmem>>, vector<1x32x96xf32>
    %133 = vector.shape_cast %132 : vector<1x32x96xf32> to vector<32x96xf32>
    %cst_130 = arith.constant dense<0.000000e+00> : vector<2x96xf32>
    %134 = tpu.matmul %116, %133, %cst_130 {dimension_numbers = #tpu.dot_dimension_numbers<[1], [0], [0], [1], [0, 0, 1, 1], [], []>} : vector<2x32xf32>, vector<32x96xf32>, vector<2x96xf32> -> vector<2x96xf32>
    %135 = arith.addf %131, %134 : vector<2x96xf32>
    %c2_131 = arith.constant 2 : index
    %c0_132 = arith.constant 0 : index
    %136 = vector.load %arg16[%c2_131, %c0_132] : memref<6x96xf32, #tpu.memory_space<vmem>>, vector<2x96xf32>
    tpu.vector_store %arg16[%c2_131, %c0_132], %135 {strides = array<i32>} : memref<6x96xf32, #tpu.memory_space<vmem>>, vector<2x96xf32>,
    %c3_133 = arith.constant 3 : index
    %c0_134 = arith.constant 0 : index
    %137 = vector.load %arg16[%c3_133, %c0_134] : memref<6x96xf32, #tpu.memory_space<vmem>>, vector<2x96xf32>
    %c3_135 = arith.constant 3 : index
    %c0_136 = arith.constant 0 : index
    %c0_137 = arith.constant 0 : index
    %138 = vector.load %arg9[%c3_135, %c0_136, %c0_137] : memref<5x32x96xf32, #tpu.memory_space<vmem>>, vector<1x32x96xf32>
    %139 = vector.shape_cast %138 : vector<1x32x96xf32> to vector<32x96xf32>
    %cst_138 = arith.constant dense<0.000000e+00> : vector<2x96xf32>
    %140 = tpu.matmul %116, %139, %cst_138 {dimension_numbers = #tpu.dot_dimension_numbers<[1], [0], [0], [1], [0, 0, 1, 1], [], []>} : vector<2x32xf32>, vector<32x96xf32>, vector<2x96xf32> -> vector<2x96xf32>
    %141 = arith.addf %137, %140 : vector<2x96xf32>
    %c3_139 = arith.constant 3 : index
    %c0_140 = arith.constant 0 : index
    %142 = vector.load %arg16[%c3_139, %c0_140] : memref<6x96xf32, #tpu.memory_space<vmem>>, vector<2x96xf32>
    tpu.vector_store %arg16[%c3_139, %c0_140], %141 {strides = array<i32>} : memref<6x96xf32, #tpu.memory_space<vmem>>, vector<2x96xf32>,
    %c4 = arith.constant 4 : index
    %c0_141 = arith.constant 0 : index
    %143 = vector.load %arg16[%c4, %c0_141] : memref<6x96xf32, #tpu.memory_space<vmem>>, vector<2x96xf32>
    %c4_142 = arith.constant 4 : index
    %c0_143 = arith.constant 0 : index
    %c0_144 = arith.constant 0 : index
    %144 = vector.load %arg9[%c4_142, %c0_143, %c0_144] : memref<5x32x96xf32, #tpu.memory_space<vmem>>, vector<1x32x96xf32>
    %145 = vector.shape_cast %144 : vector<1x32x96xf32> to vector<32x96xf32>
    %cst_145 = arith.constant dense<0.000000e+00> : vector<2x96xf32>
    %146 = tpu.matmul %116, %145, %cst_145 {dimension_numbers = #tpu.dot_dimension_numbers<[1], [0], [0], [1], [0, 0, 1, 1], [], []>} : vector<2x32xf32>, vector<32x96xf32>, vector<2x96xf32> -> vector<2x96xf32>
    %147 = arith.addf %143, %146 : vector<2x96xf32>
    %c4_146 = arith.constant 4 : index
    %c0_147 = arith.constant 0 : index
    %148 = vector.load %arg16[%c4_146, %c0_147] : memref<6x96xf32, #tpu.memory_space<vmem>>, vector<2x96xf32>
    tpu.vector_store %arg16[%c4_146, %c0_147], %147 {strides = array<i32>} : memref<6x96xf32, #tpu.memory_space<vmem>>, vector<2x96xf32>,
    %c0_148 = arith.constant 0 : index
    %c0_149 = arith.constant 0 : index
    %149 = vector.load %arg16[%c0_148, %c0_149] : memref<6x96xf32, #tpu.memory_space<vmem>>, vector<6x96xf32>
    %c0_150 = arith.constant 0 : index
    %c0_151 = arith.constant 0 : index
    %150 = vector.load %arg10[%c0_150, %c0_151] : memref<1x96xf32, #tpu.memory_space<vmem>>, vector<1x96xf32>
    %151 = vector.broadcast %150 : vector<1x96xf32> to vector<6x96xf32>
    %152 = arith.addf %149, %151 : vector<6x96xf32>
    %cst_152 = arith.constant 0.000000e+00 : f32
    %153 = vector.broadcast %cst_152 : f32 to vector<6x96xf32>
    %154 = arith.maximumf %152, %153 : vector<6x96xf32>
    %cst_153 = arith.constant 0.000000e+00 : f32
    %155 = vector.broadcast %cst_153 : f32 to vector<14x224xf32>
    %c0_154 = arith.constant 0 : index
    %c0_155 = arith.constant 0 : index
    %156 = vector.load %arg17[%c0_154, %c0_155] : memref<14x224xf32, #tpu.memory_space<vmem>>, vector<14x224xf32>
    tpu.vector_store %arg17[%c0_154, %c0_155], %155 {strides = array<i32>} : memref<14x224xf32, #tpu.memory_space<vmem>>, vector<14x224xf32>,
    %c0_156 = arith.constant 0 : index
    %c0_157 = arith.constant 0 : index
    %157 = vector.load %arg17[%c0_156, %c0_157] : memref<14x224xf32, #tpu.memory_space<vmem>>, vector<6x224xf32>
    %c0_158 = arith.constant 0 : index
    %c0_159 = arith.constant 0 : index
    %c0_160 = arith.constant 0 : index
    %158 = vector.load %arg11[%c0_158, %c0_159, %c0_160] : memref<9x96x224xf32, #tpu.memory_space<vmem>>, vector<1x96x224xf32>
    %159 = vector.shape_cast %158 : vector<1x96x224xf32> to vector<96x224xf32>
    %cst_161 = arith.constant dense<0.000000e+00> : vector<6x224xf32>
    %160 = tpu.matmul %154, %159, %cst_161 {dimension_numbers = #tpu.dot_dimension_numbers<[1], [0], [0], [1], [0, 0, 1, 1], [], []>} : vector<6x96xf32>, vector<96x224xf32>, vector<6x224xf32> -> vector<6x224xf32>
    %161 = arith.addf %157, %160 : vector<6x224xf32>
    %c0_162 = arith.constant 0 : index
    %c0_163 = arith.constant 0 : index
    %162 = vector.load %arg17[%c0_162, %c0_163] : memref<14x224xf32, #tpu.memory_space<vmem>>, vector<6x224xf32>
    tpu.vector_store %arg17[%c0_162, %c0_163], %161 {strides = array<i32>} : memref<14x224xf32, #tpu.memory_space<vmem>>, vector<6x224xf32>,
    %c1_164 = arith.constant 1 : index
    %c0_165 = arith.constant 0 : index
    %163 = vector.load %arg17[%c1_164, %c0_165] : memref<14x224xf32, #tpu.memory_space<vmem>>, vector<6x224xf32>
    %c1_166 = arith.constant 1 : index
    %c0_167 = arith.constant 0 : index
    %c0_168 = arith.constant 0 : index
    %164 = vector.load %arg11[%c1_166, %c0_167, %c0_168] : memref<9x96x224xf32, #tpu.memory_space<vmem>>, vector<1x96x224xf32>
    %165 = vector.shape_cast %164 : vector<1x96x224xf32> to vector<96x224xf32>
    %cst_169 = arith.constant dense<0.000000e+00> : vector<6x224xf32>
    %166 = tpu.matmul %154, %165, %cst_169 {dimension_numbers = #tpu.dot_dimension_numbers<[1], [0], [0], [1], [0, 0, 1, 1], [], []>} : vector<6x96xf32>, vector<96x224xf32>, vector<6x224xf32> -> vector<6x224xf32>
    %167 = arith.addf %163, %166 : vector<6x224xf32>
    %c1_170 = arith.constant 1 : index
    %c0_171 = arith.constant 0 : index
    %168 = vector.load %arg17[%c1_170, %c0_171] : memref<14x224xf32, #tpu.memory_space<vmem>>, vector<6x224xf32>
    tpu.vector_store %arg17[%c1_170, %c0_171], %167 {strides = array<i32>} : memref<14x224xf32, #tpu.memory_space<vmem>>, vector<6x224xf32>,
    %c2_172 = arith.constant 2 : index
    %c0_173 = arith.constant 0 : index
    %169 = vector.load %arg17[%c2_172, %c0_173] : memref<14x224xf32, #tpu.memory_space<vmem>>, vector<6x224xf32>
    %c2_174 = arith.constant 2 : index
    %c0_175 = arith.constant 0 : index
    %c0_176 = arith.constant 0 : index
    %170 = vector.load %arg11[%c2_174, %c0_175, %c0_176] : memref<9x96x224xf32, #tpu.memory_space<vmem>>, vector<1x96x224xf32>
    %171 = vector.shape_cast %170 : vector<1x96x224xf32> to vector<96x224xf32>
    %cst_177 = arith.constant dense<0.000000e+00> : vector<6x224xf32>
    %172 = tpu.matmul %154, %171, %cst_177 {dimension_numbers = #tpu.dot_dimension_numbers<[1], [0], [0], [1], [0, 0, 1, 1], [], []>} : vector<6x96xf32>, vector<96x224xf32>, vector<6x224xf32> -> vector<6x224xf32>
    %173 = arith.addf %169, %172 : vector<6x224xf32>
    %c2_178 = arith.constant 2 : index
    %c0_179 = arith.constant 0 : index
    %174 = vector.load %arg17[%c2_178, %c0_179] : memref<14x224xf32, #tpu.memory_space<vmem>>, vector<6x224xf32>
    tpu.vector_store %arg17[%c2_178, %c0_179], %173 {strides = array<i32>} : memref<14x224xf32, #tpu.memory_space<vmem>>, vector<6x224xf32>,
    %c3_180 = arith.constant 3 : index
    %c0_181 = arith.constant 0 : index
    %175 = vector.load %arg17[%c3_180, %c0_181] : memref<14x224xf32, #tpu.memory_space<vmem>>, vector<6x224xf32>
    %c3_182 = arith.constant 3 : index
    %c0_183 = arith.constant 0 : index
    %c0_184 = arith.constant 0 : index
    %176 = vector.load %arg11[%c3_182, %c0_183, %c0_184] : memref<9x96x224xf32, #tpu.memory_space<vmem>>, vector<1x96x224xf32>
    %177 = vector.shape_cast %176 : vector<1x96x224xf32> to vector<96x224xf32>
    %cst_185 = arith.constant dense<0.000000e+00> : vector<6x224xf32>
    %178 = tpu.matmul %154, %177, %cst_185 {dimension_numbers = #tpu.dot_dimension_numbers<[1], [0], [0], [1], [0, 0, 1, 1], [], []>} : vector<6x96xf32>, vector<96x224xf32>, vector<6x224xf32> -> vector<6x224xf32>
    %179 = arith.addf %175, %178 : vector<6x224xf32>
    %c3_186 = arith.constant 3 : index
    %c0_187 = arith.constant 0 : index
    %180 = vector.load %arg17[%c3_186, %c0_187] : memref<14x224xf32, #tpu.memory_space<vmem>>, vector<6x224xf32>
    tpu.vector_store %arg17[%c3_186, %c0_187], %179 {strides = array<i32>} : memref<14x224xf32, #tpu.memory_space<vmem>>, vector<6x224xf32>,
    %c4_188 = arith.constant 4 : index
    %c0_189 = arith.constant 0 : index
    %181 = vector.load %arg17[%c4_188, %c0_189] : memref<14x224xf32, #tpu.memory_space<vmem>>, vector<6x224xf32>
    %c4_190 = arith.constant 4 : index
    %c0_191 = arith.constant 0 : index
    %c0_192 = arith.constant 0 : index
    %182 = vector.load %arg11[%c4_190, %c0_191, %c0_192] : memref<9x96x224xf32, #tpu.memory_space<vmem>>, vector<1x96x224xf32>
    %183 = vector.shape_cast %182 : vector<1x96x224xf32> to vector<96x224xf32>
    %cst_193 = arith.constant dense<0.000000e+00> : vector<6x224xf32>
    %184 = tpu.matmul %154, %183, %cst_193 {dimension_numbers = #tpu.dot_dimension_numbers<[1], [0], [0], [1], [0, 0, 1, 1], [], []>} : vector<6x96xf32>, vector<96x224xf32>, vector<6x224xf32> -> vector<6x224xf32>
    %185 = arith.addf %181, %184 : vector<6x224xf32>
    %c4_194 = arith.constant 4 : index
    %c0_195 = arith.constant 0 : index
    %186 = vector.load %arg17[%c4_194, %c0_195] : memref<14x224xf32, #tpu.memory_space<vmem>>, vector<6x224xf32>
    tpu.vector_store %arg17[%c4_194, %c0_195], %185 {strides = array<i32>} : memref<14x224xf32, #tpu.memory_space<vmem>>, vector<6x224xf32>,
    %c5 = arith.constant 5 : index
    %c0_196 = arith.constant 0 : index
    %187 = vector.load %arg17[%c5, %c0_196] : memref<14x224xf32, #tpu.memory_space<vmem>>, vector<6x224xf32>
    %c5_197 = arith.constant 5 : index
    %c0_198 = arith.constant 0 : index
    %c0_199 = arith.constant 0 : index
    %188 = vector.load %arg11[%c5_197, %c0_198, %c0_199] : memref<9x96x224xf32, #tpu.memory_space<vmem>>, vector<1x96x224xf32>
    %189 = vector.shape_cast %188 : vector<1x96x224xf32> to vector<96x224xf32>
    %cst_200 = arith.constant dense<0.000000e+00> : vector<6x224xf32>
    %190 = tpu.matmul %154, %189, %cst_200 {dimension_numbers = #tpu.dot_dimension_numbers<[1], [0], [0], [1], [0, 0, 1, 1], [], []>} : vector<6x96xf32>, vector<96x224xf32>, vector<6x224xf32> -> vector<6x224xf32>
    %191 = arith.addf %187, %190 : vector<6x224xf32>
    %c5_201 = arith.constant 5 : index
    %c0_202 = arith.constant 0 : index
    %192 = vector.load %arg17[%c5_201, %c0_202] : memref<14x224xf32, #tpu.memory_space<vmem>>, vector<6x224xf32>
    tpu.vector_store %arg17[%c5_201, %c0_202], %191 {strides = array<i32>} : memref<14x224xf32, #tpu.memory_space<vmem>>, vector<6x224xf32>,
    %c6 = arith.constant 6 : index
    %c0_203 = arith.constant 0 : index
    %193 = vector.load %arg17[%c6, %c0_203] : memref<14x224xf32, #tpu.memory_space<vmem>>, vector<6x224xf32>
    %c6_204 = arith.constant 6 : index
    %c0_205 = arith.constant 0 : index
    %c0_206 = arith.constant 0 : index
    %194 = vector.load %arg11[%c6_204, %c0_205, %c0_206] : memref<9x96x224xf32, #tpu.memory_space<vmem>>, vector<1x96x224xf32>
    %195 = vector.shape_cast %194 : vector<1x96x224xf32> to vector<96x224xf32>
    %cst_207 = arith.constant dense<0.000000e+00> : vector<6x224xf32>
    %196 = tpu.matmul %154, %195, %cst_207 {dimension_numbers = #tpu.dot_dimension_numbers<[1], [0], [0], [1], [0, 0, 1, 1], [], []>} : vector<6x96xf32>, vector<96x224xf32>, vector<6x224xf32> -> vector<6x224xf32>
    %197 = arith.addf %193, %196 : vector<6x224xf32>
    %c6_208 = arith.constant 6 : index
    %c0_209 = arith.constant 0 : index
    %198 = vector.load %arg17[%c6_208, %c0_209] : memref<14x224xf32, #tpu.memory_space<vmem>>, vector<6x224xf32>
    tpu.vector_store %arg17[%c6_208, %c0_209], %197 {strides = array<i32>} : memref<14x224xf32, #tpu.memory_space<vmem>>, vector<6x224xf32>,
    %c7 = arith.constant 7 : index
    %c0_210 = arith.constant 0 : index
    %199 = vector.load %arg17[%c7, %c0_210] : memref<14x224xf32, #tpu.memory_space<vmem>>, vector<6x224xf32>
    %c7_211 = arith.constant 7 : index
    %c0_212 = arith.constant 0 : index
    %c0_213 = arith.constant 0 : index
    %200 = vector.load %arg11[%c7_211, %c0_212, %c0_213] : memref<9x96x224xf32, #tpu.memory_space<vmem>>, vector<1x96x224xf32>
    %201 = vector.shape_cast %200 : vector<1x96x224xf32> to vector<96x224xf32>
    %cst_214 = arith.constant dense<0.000000e+00> : vector<6x224xf32>
    %202 = tpu.matmul %154, %201, %cst_214 {dimension_numbers = #tpu.dot_dimension_numbers<[1], [0], [0], [1], [0, 0, 1, 1], [], []>} : vector<6x96xf32>, vector<96x224xf32>, vector<6x224xf32> -> vector<6x224xf32>
    %203 = arith.addf %199, %202 : vector<6x224xf32>
    %c7_215 = arith.constant 7 : index
    %c0_216 = arith.constant 0 : index
    %204 = vector.load %arg17[%c7_215, %c0_216] : memref<14x224xf32, #tpu.memory_space<vmem>>, vector<6x224xf32>
    tpu.vector_store %arg17[%c7_215, %c0_216], %203 {strides = array<i32>} : memref<14x224xf32, #tpu.memory_space<vmem>>, vector<6x224xf32>,
    %c8 = arith.constant 8 : index
    %c0_217 = arith.constant 0 : index
    %205 = vector.load %arg17[%c8, %c0_217] : memref<14x224xf32, #tpu.memory_space<vmem>>, vector<6x224xf32>
    %c8_218 = arith.constant 8 : index
    %c0_219 = arith.constant 0 : index
    %c0_220 = arith.constant 0 : index
    %206 = vector.load %arg11[%c8_218, %c0_219, %c0_220] : memref<9x96x224xf32, #tpu.memory_space<vmem>>, vector<1x96x224xf32>
    %207 = vector.shape_cast %206 : vector<1x96x224xf32> to vector<96x224xf32>
    %cst_221 = arith.constant dense<0.000000e+00> : vector<6x224xf32>
    %208 = tpu.matmul %154, %207, %cst_221 {dimension_numbers = #tpu.dot_dimension_numbers<[1], [0], [0], [1], [0, 0, 1, 1], [], []>} : vector<6x96xf32>, vector<96x224xf32>, vector<6x224xf32> -> vector<6x224xf32>
    %209 = arith.addf %205, %208 : vector<6x224xf32>
    %c8_222 = arith.constant 8 : index
    %c0_223 = arith.constant 0 : index
    %210 = vector.load %arg17[%c8_222, %c0_223] : memref<14x224xf32, #tpu.memory_space<vmem>>, vector<6x224xf32>
    tpu.vector_store %arg17[%c8_222, %c0_223], %209 {strides = array<i32>} : memref<14x224xf32, #tpu.memory_space<vmem>>, vector<6x224xf32>,
    %c0_224 = arith.constant 0 : index
    %c0_225 = arith.constant 0 : index
    %211 = vector.load %arg17[%c0_224, %c0_225] : memref<14x224xf32, #tpu.memory_space<vmem>>, vector<14x224xf32>
    %c0_226 = arith.constant 0 : index
    %c0_227 = arith.constant 0 : index
    %212 = vector.load %arg12[%c0_226, %c0_227] : memref<1x224xf32, #tpu.memory_space<vmem>>, vector<1x224xf32>
    %213 = vector.broadcast %212 : vector<1x224xf32> to vector<14x224xf32>
    %214 = arith.addf %211, %213 : vector<14x224xf32>
    %cst_228 = arith.constant 0.000000e+00 : f32
    %215 = vector.broadcast %cst_228 : f32 to vector<14x224xf32>
    %216 = arith.maximumf %214, %215 : vector<14x224xf32>
    %cst_229 = arith.constant 0.000000e+00 : f32
    %217 = vector.broadcast %cst_229 : f32 to vector<22x22xf32>
    %c0_230 = arith.constant 0 : index
    %c0_231 = arith.constant 0 : index
    %218 = vector.load %arg18[%c0_230, %c0_231] : memref<22x22xf32, #tpu.memory_space<vmem>>, vector<22x22xf32>
    tpu.vector_store %arg18[%c0_230, %c0_231], %217 {strides = array<i32>} : memref<22x22xf32, #tpu.memory_space<vmem>>, vector<22x22xf32>,
    %c0_232 = arith.constant 0 : index
    %c0_233 = arith.constant 0 : index
    %219 = vector.load %arg18[%c0_232, %c0_233] : memref<22x22xf32, #tpu.memory_space<vmem>>, vector<14x22xf32>
    %c0_234 = arith.constant 0 : index
    %c0_235 = arith.constant 0 : index
    %c0_236 = arith.constant 0 : index
    %220 = vector.load %arg13[%c0_234, %c0_235, %c0_236] : memref<9x224x22xf32, #tpu.memory_space<vmem>>, vector<1x224x22xf32>
    %221 = vector.shape_cast %220 : vector<1x224x22xf32> to vector<224x22xf32>
    %cst_237 = arith.constant dense<0.000000e+00> : vector<14x22xf32>
    %222 = tpu.matmul %216, %221, %cst_237 {dimension_numbers = #tpu.dot_dimension_numbers<[1], [0], [0], [1], [0, 0, 1, 1], [], []>} : vector<14x224xf32>, vector<224x22xf32>, vector<14x22xf32> -> vector<14x22xf32>
    %223 = arith.addf %219, %222 : vector<14x22xf32>
    %c0_238 = arith.constant 0 : index
    %c0_239 = arith.constant 0 : index
    %224 = vector.load %arg18[%c0_238, %c0_239] : memref<22x22xf32, #tpu.memory_space<vmem>>, vector<14x22xf32>
    tpu.vector_store %arg18[%c0_238, %c0_239], %223 {strides = array<i32>} : memref<22x22xf32, #tpu.memory_space<vmem>>, vector<14x22xf32>,
    %c1_240 = arith.constant 1 : index
    %c0_241 = arith.constant 0 : index
    %225 = vector.load %arg18[%c1_240, %c0_241] : memref<22x22xf32, #tpu.memory_space<vmem>>, vector<14x22xf32>
    %c1_242 = arith.constant 1 : index
    %c0_243 = arith.constant 0 : index
    %c0_244 = arith.constant 0 : index
    %226 = vector.load %arg13[%c1_242, %c0_243, %c0_244] : memref<9x224x22xf32, #tpu.memory_space<vmem>>, vector<1x224x22xf32>
    %227 = vector.shape_cast %226 : vector<1x224x22xf32> to vector<224x22xf32>
    %cst_245 = arith.constant dense<0.000000e+00> : vector<14x22xf32>
    %228 = tpu.matmul %216, %227, %cst_245 {dimension_numbers = #tpu.dot_dimension_numbers<[1], [0], [0], [1], [0, 0, 1, 1], [], []>} : vector<14x224xf32>, vector<224x22xf32>, vector<14x22xf32> -> vector<14x22xf32>
    %229 = arith.addf %225, %228 : vector<14x22xf32>
    %c1_246 = arith.constant 1 : index
    %c0_247 = arith.constant 0 : index
    %230 = vector.load %arg18[%c1_246, %c0_247] : memref<22x22xf32, #tpu.memory_space<vmem>>, vector<14x22xf32>
    tpu.vector_store %arg18[%c1_246, %c0_247], %229 {strides = array<i32>} : memref<22x22xf32, #tpu.memory_space<vmem>>, vector<14x22xf32>,
    %c2_248 = arith.constant 2 : index
    %c0_249 = arith.constant 0 : index
    %231 = vector.load %arg18[%c2_248, %c0_249] : memref<22x22xf32, #tpu.memory_space<vmem>>, vector<14x22xf32>
    %c2_250 = arith.constant 2 : index
    %c0_251 = arith.constant 0 : index
    %c0_252 = arith.constant 0 : index
    %232 = vector.load %arg13[%c2_250, %c0_251, %c0_252] : memref<9x224x22xf32, #tpu.memory_space<vmem>>, vector<1x224x22xf32>
    %233 = vector.shape_cast %232 : vector<1x224x22xf32> to vector<224x22xf32>
    %cst_253 = arith.constant dense<0.000000e+00> : vector<14x22xf32>
    %234 = tpu.matmul %216, %233, %cst_253 {dimension_numbers = #tpu.dot_dimension_numbers<[1], [0], [0], [1], [0, 0, 1, 1], [], []>} : vector<14x224xf32>, vector<224x22xf32>, vector<14x22xf32> -> vector<14x22xf32>
    %235 = arith.addf %231, %234 : vector<14x22xf32>
    %c2_254 = arith.constant 2 : index
    %c0_255 = arith.constant 0 : index
    %236 = vector.load %arg18[%c2_254, %c0_255] : memref<22x22xf32, #tpu.memory_space<vmem>>, vector<14x22xf32>
    tpu.vector_store %arg18[%c2_254, %c0_255], %235 {strides = array<i32>} : memref<22x22xf32, #tpu.memory_space<vmem>>, vector<14x22xf32>,
    %c3_256 = arith.constant 3 : index
    %c0_257 = arith.constant 0 : index
    %237 = vector.load %arg18[%c3_256, %c0_257] : memref<22x22xf32, #tpu.memory_space<vmem>>, vector<14x22xf32>
    %c3_258 = arith.constant 3 : index
    %c0_259 = arith.constant 0 : index
    %c0_260 = arith.constant 0 : index
    %238 = vector.load %arg13[%c3_258, %c0_259, %c0_260] : memref<9x224x22xf32, #tpu.memory_space<vmem>>, vector<1x224x22xf32>
    %239 = vector.shape_cast %238 : vector<1x224x22xf32> to vector<224x22xf32>
    %cst_261 = arith.constant dense<0.000000e+00> : vector<14x22xf32>
    %240 = tpu.matmul %216, %239, %cst_261 {dimension_numbers = #tpu.dot_dimension_numbers<[1], [0], [0], [1], [0, 0, 1, 1], [], []>} : vector<14x224xf32>, vector<224x22xf32>, vector<14x22xf32> -> vector<14x22xf32>
    %241 = arith.addf %237, %240 : vector<14x22xf32>
    %c3_262 = arith.constant 3 : index
    %c0_263 = arith.constant 0 : index
    %242 = vector.load %arg18[%c3_262, %c0_263] : memref<22x22xf32, #tpu.memory_space<vmem>>, vector<14x22xf32>
    tpu.vector_store %arg18[%c3_262, %c0_263], %241 {strides = array<i32>} : memref<22x22xf32, #tpu.memory_space<vmem>>, vector<14x22xf32>,
    %c4_264 = arith.constant 4 : index
    %c0_265 = arith.constant 0 : index
    %243 = vector.load %arg18[%c4_264, %c0_265] : memref<22x22xf32, #tpu.memory_space<vmem>>, vector<14x22xf32>
    %c4_266 = arith.constant 4 : index
    %c0_267 = arith.constant 0 : index
    %c0_268 = arith.constant 0 : index
    %244 = vector.load %arg13[%c4_266, %c0_267, %c0_268] : memref<9x224x22xf32, #tpu.memory_space<vmem>>, vector<1x224x22xf32>
    %245 = vector.shape_cast %244 : vector<1x224x22xf32> to vector<224x22xf32>
    %cst_269 = arith.constant dense<0.000000e+00> : vector<14x22xf32>
    %246 = tpu.matmul %216, %245, %cst_269 {dimension_numbers = #tpu.dot_dimension_numbers<[1], [0], [0], [1], [0, 0, 1, 1], [], []>} : vector<14x224xf32>, vector<224x22xf32>, vector<14x22xf32> -> vector<14x22xf32>
    %247 = arith.addf %243, %246 : vector<14x22xf32>
    %c4_270 = arith.constant 4 : index
    %c0_271 = arith.constant 0 : index
    %248 = vector.load %arg18[%c4_270, %c0_271] : memref<22x22xf32, #tpu.memory_space<vmem>>, vector<14x22xf32>
    tpu.vector_store %arg18[%c4_270, %c0_271], %247 {strides = array<i32>} : memref<22x22xf32, #tpu.memory_space<vmem>>, vector<14x22xf32>,
    %c5_272 = arith.constant 5 : index
    %c0_273 = arith.constant 0 : index
    %249 = vector.load %arg18[%c5_272, %c0_273] : memref<22x22xf32, #tpu.memory_space<vmem>>, vector<14x22xf32>
    %c5_274 = arith.constant 5 : index
    %c0_275 = arith.constant 0 : index
    %c0_276 = arith.constant 0 : index
    %250 = vector.load %arg13[%c5_274, %c0_275, %c0_276] : memref<9x224x22xf32, #tpu.memory_space<vmem>>, vector<1x224x22xf32>
    %251 = vector.shape_cast %250 : vector<1x224x22xf32> to vector<224x22xf32>
    %cst_277 = arith.constant dense<0.000000e+00> : vector<14x22xf32>
    %252 = tpu.matmul %216, %251, %cst_277 {dimension_numbers = #tpu.dot_dimension_numbers<[1], [0], [0], [1], [0, 0, 1, 1], [], []>} : vector<14x224xf32>, vector<224x22xf32>, vector<14x22xf32> -> vector<14x22xf32>
    %253 = arith.addf %249, %252 : vector<14x22xf32>
    %c5_278 = arith.constant 5 : index
    %c0_279 = arith.constant 0 : index
    %254 = vector.load %arg18[%c5_278, %c0_279] : memref<22x22xf32, #tpu.memory_space<vmem>>, vector<14x22xf32>
    tpu.vector_store %arg18[%c5_278, %c0_279], %253 {strides = array<i32>} : memref<22x22xf32, #tpu.memory_space<vmem>>, vector<14x22xf32>,
    %c6_280 = arith.constant 6 : index
    %c0_281 = arith.constant 0 : index
    %255 = vector.load %arg18[%c6_280, %c0_281] : memref<22x22xf32, #tpu.memory_space<vmem>>, vector<14x22xf32>
    %c6_282 = arith.constant 6 : index
    %c0_283 = arith.constant 0 : index
    %c0_284 = arith.constant 0 : index
    %256 = vector.load %arg13[%c6_282, %c0_283, %c0_284] : memref<9x224x22xf32, #tpu.memory_space<vmem>>, vector<1x224x22xf32>
    %257 = vector.shape_cast %256 : vector<1x224x22xf32> to vector<224x22xf32>
    %cst_285 = arith.constant dense<0.000000e+00> : vector<14x22xf32>
    %258 = tpu.matmul %216, %257, %cst_285 {dimension_numbers = #tpu.dot_dimension_numbers<[1], [0], [0], [1], [0, 0, 1, 1], [], []>} : vector<14x224xf32>, vector<224x22xf32>, vector<14x22xf32> -> vector<14x22xf32>
    %259 = arith.addf %255, %258 : vector<14x22xf32>
    %c6_286 = arith.constant 6 : index
    %c0_287 = arith.constant 0 : index
    %260 = vector.load %arg18[%c6_286, %c0_287] : memref<22x22xf32, #tpu.memory_space<vmem>>, vector<14x22xf32>
    tpu.vector_store %arg18[%c6_286, %c0_287], %259 {strides = array<i32>} : memref<22x22xf32, #tpu.memory_space<vmem>>, vector<14x22xf32>,
    %c7_288 = arith.constant 7 : index
    %c0_289 = arith.constant 0 : index
    %261 = vector.load %arg18[%c7_288, %c0_289] : memref<22x22xf32, #tpu.memory_space<vmem>>, vector<14x22xf32>
    %c7_290 = arith.constant 7 : index
    %c0_291 = arith.constant 0 : index
    %c0_292 = arith.constant 0 : index
    %262 = vector.load %arg13[%c7_290, %c0_291, %c0_292] : memref<9x224x22xf32, #tpu.memory_space<vmem>>, vector<1x224x22xf32>
    %263 = vector.shape_cast %262 : vector<1x224x22xf32> to vector<224x22xf32>
    %cst_293 = arith.constant dense<0.000000e+00> : vector<14x22xf32>
    %264 = tpu.matmul %216, %263, %cst_293 {dimension_numbers = #tpu.dot_dimension_numbers<[1], [0], [0], [1], [0, 0, 1, 1], [], []>} : vector<14x224xf32>, vector<224x22xf32>, vector<14x22xf32> -> vector<14x22xf32>
    %265 = arith.addf %261, %264 : vector<14x22xf32>
    %c7_294 = arith.constant 7 : index
    %c0_295 = arith.constant 0 : index
    %266 = vector.load %arg18[%c7_294, %c0_295] : memref<22x22xf32, #tpu.memory_space<vmem>>, vector<14x22xf32>
    tpu.vector_store %arg18[%c7_294, %c0_295], %265 {strides = array<i32>} : memref<22x22xf32, #tpu.memory_space<vmem>>, vector<14x22xf32>,
    %c8_296 = arith.constant 8 : index
    %c0_297 = arith.constant 0 : index
    %267 = vector.load %arg18[%c8_296, %c0_297] : memref<22x22xf32, #tpu.memory_space<vmem>>, vector<14x22xf32>
    %c8_298 = arith.constant 8 : index
    %c0_299 = arith.constant 0 : index
    %c0_300 = arith.constant 0 : index
    %268 = vector.load %arg13[%c8_298, %c0_299, %c0_300] : memref<9x224x22xf32, #tpu.memory_space<vmem>>, vector<1x224x22xf32>
    %269 = vector.shape_cast %268 : vector<1x224x22xf32> to vector<224x22xf32>
    %cst_301 = arith.constant dense<0.000000e+00> : vector<14x22xf32>
    %270 = tpu.matmul %216, %269, %cst_301 {dimension_numbers = #tpu.dot_dimension_numbers<[1], [0], [0], [1], [0, 0, 1, 1], [], []>} : vector<14x224xf32>, vector<224x22xf32>, vector<14x22xf32> -> vector<14x22xf32>
    %271 = arith.addf %267, %270 : vector<14x22xf32>
    %c8_302 = arith.constant 8 : index
    %c0_303 = arith.constant 0 : index
    %272 = vector.load %arg18[%c8_302, %c0_303] : memref<22x22xf32, #tpu.memory_space<vmem>>, vector<14x22xf32>
    tpu.vector_store %arg18[%c8_302, %c0_303], %271 {strides = array<i32>} : memref<22x22xf32, #tpu.memory_space<vmem>>, vector<14x22xf32>,
    %c0_304 = arith.constant 0 : index
    %c0_305 = arith.constant 0 : index
    %273 = vector.load %arg18[%c0_304, %c0_305] : memref<22x22xf32, #tpu.memory_space<vmem>>, vector<22x22xf32>
    %c0_306 = arith.constant 0 : index
    %c0_307 = arith.constant 0 : index
    %274 = vector.load %arg14[%c0_306, %c0_307] : memref<1x22xf32, #tpu.memory_space<vmem>>, vector<1x22xf32>
    %275 = vector.broadcast %274 : vector<1x22xf32> to vector<22x22xf32>
    %276 = arith.addf %273, %275 : vector<22x22xf32>
    %cst_308 = arith.constant 0.000000e+00 : f32
    %277 = vector.broadcast %cst_308 : f32 to vector<22x22xf32>
    %278 = arith.subf %277, %276 : vector<22x22xf32>
    %279 = math.exp %278 : vector<22x22xf32>
    %cst_309 = arith.constant 1.000000e+00 : f32
    %280 = vector.broadcast %cst_309 : f32 to vector<22x22xf32>
    %281 = arith.addf %280, %279 : vector<22x22xf32>
    %cst_310 = arith.constant 1.000000e+00 : f32
    %282 = vector.broadcast %cst_310 : f32 to vector<22x22xf32>
    %283 = arith.divf %282, %281 : vector<22x22xf32>
    %c0_311 = arith.constant 0 : index
    %c0_312 = arith.constant 0 : index
    %c0_313 = arith.constant 0 : index
    %284 = vector.load %arg15[%c0_311, %c0_312, %c0_313] : memref<1x22x22xf32, #tpu.memory_space<vmem>>, vector<1x22x22xf32>
    %285 = vector.shape_cast %284 : vector<1x22x22xf32> to vector<22x22xf32>
    %286 = vector.shape_cast %283 : vector<22x22xf32> to vector<1x22x22xf32>
    tpu.vector_store %arg15[%c0_311, %c0_312, %c0_313], %286 {strides = array<i32>} : memref<1x22x22xf32, #tpu.memory_space<vmem>>, vector<1x22x22xf32>,
    return
  }
  func.func @transform_0(%arg0: i32) -> (i32, i32, i32) {
    %c0_i32 = arith.constant 0 : i32
    %c0_i32_0 = arith.constant 0 : i32
    %c0_i32_1 = arith.constant 0 : i32
    return %arg0, %c0_i32, %c0_i32_0 : i32, i32, i32
  }
  func.func @transform_1(%arg0: i32) -> (i32, i32, i32, i32) {
    %c0_i32 = arith.constant 0 : i32
    %c0_i32_0 = arith.constant 0 : i32
    %c0_i32_1 = arith.constant 0 : i32
    %c0_i32_2 = arith.constant 0 : i32
    %c0_i32_3 = arith.constant 0 : i32
    return %c0_i32, %c0_i32_0, %c0_i32_1, %c0_i32_2 : i32, i32, i32, i32
  }
  func.func @transform_2(%arg0: i32) -> (i32, i32, i32) {
    %c0_i32 = arith.constant 0 : i32
    %c0_i32_0 = arith.constant 0 : i32
    %c0_i32_1 = arith.constant 0 : i32
    %c0_i32_2 = arith.constant 0 : i32
    return %c0_i32, %c0_i32_0, %c0_i32_1 : i32, i32, i32
  }
  func.func @transform_3(%arg0: i32) -> (i32, i32) {
    %c0_i32 = arith.constant 0 : i32
    %c0_i32_0 = arith.constant 0 : i32
    %c0_i32_1 = arith.constant 0 : i32
    return %c0_i32, %c0_i32_0 : i32, i32
  }
  func.func @transform_4(%arg0: i32) -> (i32, i32, i32) {
    %c0_i32 = arith.constant 0 : i32
    %c0_i32_0 = arith.constant 0 : i32
    %c0_i32_1 = arith.constant 0 : i32
    %c0_i32_2 = arith.constant 0 : i32
    return %c0_i32, %c0_i32_0, %c0_i32_1 : i32, i32, i32
  }
  func.func @transform_5(%arg0: i32) -> (i32, i32) {
    %c0_i32 = arith.constant 0 : i32
    %c0_i32_0 = arith.constant 0 : i32
    %c0_i32_1 = arith.constant 0 : i32
    return %c0_i32, %c0_i32_0 : i32, i32
  }
  func.func @transform_6(%arg0: i32) -> (i32, i32, i32) {
    %c0_i32 = arith.constant 0 : i32
    %c0_i32_0 = arith.constant 0 : i32
    %c0_i32_1 = arith.constant 0 : i32
    %c0_i32_2 = arith.constant 0 : i32
    return %c0_i32, %c0_i32_0, %c0_i32_1 : i32, i32, i32
  }
  func.func @transform_7(%arg0: i32) -> (i32, i32) {
    %c0_i32 = arith.constant 0 : i32
    %c0_i32_0 = arith.constant 0 : i32
    %c0_i32_1 = arith.constant 0 : i32
    return %c0_i32, %c0_i32_0 : i32, i32
  }
  func.func @transform_8(%arg0: i32) -> (i32, i32, i32) {
    %c0_i32 = arith.constant 0 : i32
    %c0_i32_0 = arith.constant 0 : i32
    %c0_i32_1 = arith.constant 0 : i32
    %c0_i32_2 = arith.constant 0 : i32
    return %c0_i32, %c0_i32_0, %c0_i32_1 : i32, i32, i32
  }
  func.func @transform_9(%arg0: i32) -> (i32, i32) {
    %c0_i32 = arith.constant 0 : i32
    %c0_i32_0 = arith.constant 0 : i32
    %c0_i32_1 = arith.constant 0 : i32
    return %c0_i32, %c0_i32_0 : i32, i32
  }
  func.func @transform_10(%arg0: i32) -> (i32, i32, i32) {
    %c0_i32 = arith.constant 0 : i32
    %c0_i32_0 = arith.constant 0 : i32
    %c0_i32_1 = arith.constant 0 : i32
    %c0_i32_2 = arith.constant 0 : i32
    return %c0_i32, %c0_i32_0, %c0_i32_1 : i32, i32, i32
  }
  func.func @transform_11(%arg0: i32) -> (i32, i32) {
    %c0_i32 = arith.constant 0 : i32
    %c0_i32_0 = arith.constant 0 : i32
    %c0_i32_1 = arith.constant 0 : i32
    return %c0_i32, %c0_i32_0 : i32, i32
  }
  func.func @transform_12(%arg0: i32) -> (i32, i32, i32) {
    %c0_i32 = arith.constant 0 : i32
    %c0_i32_0 = arith.constant 0 : i32
    %c0_i32_1 = arith.constant 0 : i32
    %c0_i32_2 = arith.constant 0 : i32
    return %c0_i32, %c0_i32_0, %c0_i32_1 : i32, i32, i32
  }
  func.func @transform_13(%arg0: i32) -> (i32, i32) {
    %c0_i32 = arith.constant 0 : i32
    %c0_i32_0 = arith.constant 0 : i32
    %c0_i32_1 = arith.constant 0 : i32
    return %c0_i32, %c0_i32_0 : i32, i32
  }
  func.func @transform_14(%arg0: i32) -> (i32, i32, i32) {
    %c0_i32 = arith.constant 0 : i32
    %c0_i32_0 = arith.constant 0 : i32
    %c0_i32_1 = arith.constant 0 : i32
    return %arg0, %c0_i32, %c0_i32_0 : i32, i32, i32
  }
}

</mosaic_0001>

<bundles_post_ra>
// kernel: tile.54
= control target key start
LH: loop header
LB: loop body
LE: loop exit
PB: predicated region body
PF: predicated region fallthrough
CT: control target
= control target key end

     0   :  { %s19_s8 = smov 3  ;;  %s79_s9 = smov 112   ;;  %vm4_vm0 = vcmask 130048   ;;  %vm10_vm1 = vcmask 1048448   ;;  %vm16_vm2 = vcmask 917248   ;;  %vm23_vm3 = vcmask 786048   ;;  %s126_s0 = inlined_call_operand.vmem [shape: f32[14,16], index: 0, kind: input, shape index: {}]   ;;  %s127_s1 = inlined_call_operand.vmem [shape: f32[1,224], index: 1, kind: output, shape index: {}]  }
   0x1   :  { %v64_v0 = vld [vmem:[%s126_s0 + $0x7] sm:$0x1]   ;;  %v66_v1 = vld [vmem:[%s126_s0 + $0x5] ss:$8 sm:%s19_s8]   ;;  %s80_s12 = smov 80   ;;  %s26_s15 = smov 3 }
   0x2   :  { %8 = vrot.lane.b32.xlu0 %v64_v0, %s79_s9  ;;  %21 = vrot.lane.b32.xlu1 %v66_v1, %s80_s12  ;;  %v65_v2 = vld [vmem:[%s126_s0 + $0x6] sm:$0x1]   ;;  %s33_s18 = smov 3  ;;  %s40_s19 = smov 3  ;;  %vm30_vm4 = vcmask 654848   ;;  %vm37_vm5 = vcmask 523648  }
   0x3   :  { %v67_v3 = vld [vmem:[%s126_s0 + $0x4] ss:$8 sm:%s26_s15]   ;;  %s81_s20 = smov 96   ;;  %s82_s21 = smov 64   ;;  %v68_v4 = vld [vmem:[%s126_s0 + $0x3] ss:$8 sm:%s33_s18]  }
   0x4   :  { %s2_s24 = smov 3  ;;  %v69_v5 = vld [vmem:[%s126_s0 + $0x2] ss:$8 sm:%s40_s19]   ;;  %s47_s27 = smov 3  ;;  %vm44_vm6 = vcmask 392448   ;;  %vm51_vm7 = vcmask 261248  }
   0x5   :  { %v3_v6 = vld [vmem:[%s126_s0] ss:$8 sm:%s2_s24]   ;;  %s83_s30 = smov 48   ;;  %s84_s2 = smov 32   ;;  %v70_v7 = vld [vmem:[%s126_s0 + $0x1] ss:$8 sm:%s47_s27]  }
   0x6   :  { %14 = vrot.lane.b32.xlu0 %v65_v2, %s81_s20  ;;  %28 = vrot.lane.b32.xlu1 %v67_v3, %s82_s21  ;;  %5 = vst.msk [vmem:[#allocation0] ss:$8 sm:$0x3] %vm4_vm0, %v3_v6   ;;  %s85_s0 = smov 16  }
   0xa   :  { %35 = vrot.lane.b32.xlu0 %v68_v4, %s83_s30  ;;  %42 = vrot.lane.b32.xlu1 %v69_v5, %s84_s2 }
   0xe   :  { %49 = vrot.lane.b32.xlu0 %v70_v7, %s85_s0 }
  0x74   :  { %v9_v8 = vpop.permute.xlu0 %8   ;;  %v22_v9 = vpop.permute.xlu1 %21  }
  0x75   :  { %11 = vst.msk [vmem:[#allocation0] sm:$0x1] %vm10_vm1, %v9_v8  }
  0x78   :  { %v15_v10 = vpop.permute.xlu0 %14   ;;  %v29_v11 = vpop.permute.xlu1 %28  }
  0x79   :  { %17 = vst.msk [vmem:[#allocation0] sm:$0x1] %vm16_vm2, %v15_v10  }
  0x7a   :  { %24 = vst.msk [vmem:[#allocation0] ss:$8 sm:$0x3] %vm23_vm3, %v22_v9  }
  0x7b   :  { %31 = vst.msk [vmem:[#allocation0] ss:$8 sm:$0x3] %vm30_vm4, %v29_v11  }
  0x7c   :  { %v36_v12 = vpop.permute.xlu0 %35   ;;  %v43_v13 = vpop.permute.xlu1 %42  }
  0x7d   :  { %38 = vst.msk [vmem:[#allocation0] ss:$8 sm:$0x3] %vm37_vm5, %v36_v12  }
  0x7e   :  { %45 = vst.msk [vmem:[#allocation0] ss:$8 sm:$0x3] %vm44_vm6, %v43_v13  }
  0x80   :  { %v50_v14 = vpop.permute.xlu0 %49  }
  0x81   :  { %52 = vst.msk [vmem:[#allocation0] ss:$8 sm:$0x3] %vm51_vm7, %v50_v14  }
  0x88   :  { %v56_v15 = vld [vmem:[#allocation0] sm:$0x1]  ;;  %v60_v16 = vld [vmem:[#allocation0 + $0x8] sm:$0x1] }
  0x89   :  { %58 = vst [vmem:[%s127_s1] sm:$0x1] %v56_v15  ;;  %71 = vst [vmem:[%s127_s1 + $0x1] sm:$0x1] %v60_v16 }

// kernel: tile.53
= control target key start
LH: loop header
LB: loop body
LE: loop exit
PB: predicated region body
PF: predicated region fallthrough
CT: control target
= control target key end

     0   :  { %s28_s0 = inlined_call_operand.vmem [shape: f32[16], index: 0, kind: input, shape index: {}]   ;;  %s29_s1 = inlined_call_operand.vmem [shape: f32[14,16], index: 1, kind: output, shape index: {}]  }
   0x1   :  { %v4_v0 = vld [vmem:[%s28_s0] ss:$0 sm:$0xff] }
   0x2   :  { %5 = vst [vmem:[%s29_s1] sm:$0xff] %v4_v0  ;;  %8 = vst [vmem:[%s29_s1 + $0x8] sm:$0xff] %v4_v0 }

// kernel: tile.33
= control target key start
LH: loop header
LB: loop body
LE: loop exit
PB: predicated region body
PF: predicated region fallthrough
CT: control target
= control target key end

     0   :  { %s22_s0 = inlined_call_operand.vmem [shape: f32[32], index: 0, kind: input, shape index: {}]   ;;  %s23_s1 = inlined_call_operand.vmem [shape: f32[6,32], index: 1, kind: output, shape index: {}]  }
   0x1   :  { %v4_v0 = vld [vmem:[%s22_s0] ss:$0 sm:$0xff] }
   0x2   :  { %5 = vst [vmem:[%s23_s1] sm:$0xff] %v4_v0 }

// kernel: tile.34
= control target key start
LH: loop header
LB: loop body
LE: loop exit
PB: predicated region body
PF: predicated region fallthrough
CT: control target
= control target key end

     0   :  { %s43_s8 = smov 96   ;;  %s19_s9 = smov 3  ;;  %vm4_vm0 = vcmask 261120   ;;  %vm10_vm1 = vcmask 1048320   ;;  %vm16_vm2 = vcmask 785920   ;;  %vm23_vm3 = vcmask 523520   ;;  %s74_s0 = inlined_call_operand.vmem [shape: f32[6,32], index: 0, kind: input, shape index: {}]   ;;  %s75_s1 = inlined_call_operand.vmem [shape: f32[1,192], index: 1, kind: output, shape index: {}]  }
   0x1   :  { %v36_v0 = vld [vmem:[%s74_s0 + $0x3] sm:$0x1]   ;;  %v37_v1 = vld [vmem:[%s74_s0 + $0x2] sm:$0x1]   ;;  %v38_v2 = vld [vmem:[%s74_s0 + $0x1] ss:$4 sm:%s19_s9]  }
   0x2   :  { %8 = vrot.lane.b32.xlu0 %v36_v0, %s43_s8  ;;  %s2_s14 = smov 3  ;;  %s44_s15 = smov 32  }
   0x3   :  { %21 = vrot.lane.b32.xlu1 %v38_v2, %s44_s15  ;;  %v3_v3 = vld [vmem:[%s74_s0] ss:$4 sm:%s2_s14]   ;;  %s45_s0 = smov 64  }
   0x4   :  { %5 = vst.msk [vmem:[#allocation0] ss:$8 sm:$0x3] %vm4_vm0, %v3_v3  }
   0x6   :  { %14 = vrot.lane.b32.xlu0 %v37_v1, %s45_s0 }
  0x74   :  { %v9_v4 = vpop.permute.xlu0 %8  }
  0x75   :  { %11 = vst.msk [vmem:[#allocation0] sm:$0x1] %vm10_vm1, %v9_v4   ;;  %v22_v5 = vpop.permute.xlu1 %21  }
  0x78   :  { %v15_v6 = vpop.permute.xlu0 %14  }
  0x79   :  { %17 = vst.msk [vmem:[#allocation0] sm:$0x1] %vm16_vm2, %v15_v6  }
  0x7a   :  { %24 = vst.msk [vmem:[#allocation0] ss:$8 sm:$0x3] %vm23_vm3, %v22_v5  }
  0x81   :  { %v28_v7 = vld [vmem:[#allocation0] sm:$0x1]  ;;  %v32_v8 = vld [vmem:[#allocation0 + $0x8] sm:$0x1] }
  0x82   :  { %30 = vst [vmem:[%s75_s1] sm:$0x1] %v28_v7  ;;  %39 = vst [vmem:[%s75_s1 + $0x1] sm:$0x1] %v32_v8 }

// kernel: tile.48
= control target key start
LH: loop header
LB: loop body
LE: loop exit
PB: predicated region body
PF: predicated region fallthrough
CT: control target
= control target key end

     0   :  { %s22_s0 = inlined_call_operand.vmem [shape: f32[16], index: 0, kind: input, shape index: {}]   ;;  %s23_s1 = inlined_call_operand.vmem [shape: f32[6,16], index: 1, kind: output, shape index: {}]  }
   0x1   :  { %v4_v0 = vld [vmem:[%s22_s0] ss:$0 sm:$0xff] }
   0x2   :  { %5 = vst [vmem:[%s23_s1] sm:$0xff] %v4_v0 }

// kernel: tile.38
= control target key start
LH: loop header
LB: loop body
LE: loop exit
PB: predicated region body
PF: predicated region fallthrough
CT: control target
= control target key end

     0   :  { %s22_s0 = inlined_call_operand.vmem [shape: f32[16], index: 0, kind: input, shape index: {}]   ;;  %s23_s1 = inlined_call_operand.vmem [shape: f32[4,16], index: 1, kind: output, shape index: {}]  }
   0x1   :  { %v4_v0 = vld [vmem:[%s22_s0] ss:$0 sm:$0xff] }
   0x2   :  { %5 = vst [vmem:[%s23_s1] sm:$0xf] %v4_v0 }

// kernel: tile.49
= control target key start
LH: loop header
LB: loop body
LE: loop exit
PB: predicated region body
PF: predicated region fallthrough
CT: control target
= control target key end

     0   :  { %s51_s10 = smov 80   ;;  %s52_s11 = smov 48   ;;  %vm3_vm0 = vcmask 130048   ;;  %vm9_vm1 = vcmask 786048   ;;  %vm15_vm2 = vcmask 654848   ;;  %vm21_vm3 = vcmask 523648   ;;  %s87_s0 = inlined_call_operand.vmem [shape: f32[6,16], index: 0, kind: input, shape index: {}]   ;;  %s88_s1 = inlined_call_operand.vmem [shape: f32[1,96], index: 1, kind: output, shape index: {}]  }
   0x1   :  { %v41_v0 = vld [vmem:[%s87_s0 + $0x5] sm:$0x1]   ;;  %v43_v1 = vld [vmem:[%s87_s0 + $0x3] sm:$0x1]   ;;  %v42_v2 = vld [vmem:[%s87_s0 + $0x4] sm:$0x1]  }
   0x2   :  { %7 = vrot.lane.b32.xlu0 %v41_v0, %s51_s10  ;;  %19 = vrot.lane.b32.xlu1 %v43_v1, %s52_s11  ;;  %v44_v3 = vld [vmem:[%s87_s0 + $0x2] sm:$0x1]   ;;  %v2_v4 = vld [vmem:[%s87_s0] sm:$0x1]   ;;  %s53_s18 = smov 64   ;;  %s54_s19 = smov 32  }
   0x3   :  { %4 = vst.msk [vmem:[#allocation0] sm:$0x1] %vm3_vm0, %v2_v4   ;;  %v45_v5 = vld [vmem:[%s87_s0 + $0x1] sm:$0x1]   ;;  %s55_s0 = smov 16   ;;  %vm27_vm4 = vcmask 392448  }
   0x4   :  { %vm33_vm5 = vcmask 261248  }
   0x6   :  { %13 = vrot.lane.b32.xlu0 %v42_v2, %s53_s18  ;;  %25 = vrot.lane.b32.xlu1 %v44_v3, %s54_s19 }
   0xa   :  { %31 = vrot.lane.b32.xlu0 %v45_v5, %s55_s0 }
  0x74   :  { %v8_v6 = vpop.permute.xlu0 %7   ;;  %v20_v7 = vpop.permute.xlu1 %19  }
  0x75   :  { %10 = vst.msk [vmem:[#allocation0] sm:$0x1] %vm9_vm1, %v8_v6  }
  0x78   :  { %v14_v8 = vpop.permute.xlu0 %13   ;;  %v26_v9 = vpop.permute.xlu1 %25  }
  0x79   :  { %16 = vst.msk [vmem:[#allocation0] sm:$0x1] %vm15_vm2, %v14_v8  }
  0x7a   :  { %22 = vst.msk [vmem:[#allocation0] sm:$0x1] %vm21_vm3, %v20_v7  }
  0x7b   :  { %28 = vst.msk [vmem:[#allocation0] sm:$0x1] %vm27_vm4, %v26_v9  }
  0x7c   :  { %v32_v10 = vpop.permute.xlu0 %31  }
  0x7d   :  { %34 = vst.msk [vmem:[#allocation0] sm:$0x1] %vm33_vm5, %v32_v10  }
  0x84   :  { %v38_v11 = vld [vmem:[#allocation0] sm:$0x1] }
  0x85   :  { %40 = vst [vmem:[%s88_s1] sm:$0x1] %v38_v11 }

// kernel: tile.39
= control target key start
LH: loop header
LB: loop body
LE: loop exit
PB: predicated region body
PF: predicated region fallthrough
CT: control target
= control target key end

     0   :  { %vm7_vm0 = vcmask 130048   ;;  %s37_s8 = smov 16   ;;  %s38_s9 = smov 32   ;;  %vm13_vm1 = vcmask 523648   ;;  %vm19_vm2 = vcmask 392448   ;;  %vm25_vm3 = vcmask 261248   ;;  %s55_s0 = inlined_call_operand.vmem [shape: f32[4,16], index: 0, kind: input, shape index: {}]   ;;  %s56_s1 = inlined_call_operand.vmem [shape: f32[1,64], index: 1, kind: output, shape index: {}]  }
   0x1   :  { %v4_v0 = vld [vmem:[%s55_s0] sm:$0xf]  ;;  %s36_s0 = smov 48  }
   0x2   :  { %5 = vst [vmem:[#allocation1] sm:$0xf] %v4_v0 }
   0x9   :  { %v10_v1 = vld [vmem:[#allocation1 + $0x3] sm:$0x1]   ;;  %v22_v2 = vld [vmem:[#allocation1 + $0x1] sm:$0x1]   ;;  %v6_v3 = vld [vmem:[#allocation1] sm:$0x1]  }
   0xa   :  { %11 = vrot.lane.b32.xlu0 %v10_v1, %s36_s0  ;;  %23 = vrot.lane.b32.xlu1 %v22_v2, %s37_s8  ;;  %v16_v4 = vld [vmem:[#allocation1 + $0x2] sm:$0x1]   ;;  %8 = vst.msk [vmem:[#allocation0] sm:$0x1] %vm7_vm0, %v6_v3  }
   0xe   :  { %17 = vrot.lane.b32.xlu0 %v16_v4, %s38_s9 }
  0x7c   :  { %v12_v5 = vpop.permute.xlu0 %11   ;;  %v24_v6 = vpop.permute.xlu1 %23  }
  0x7d   :  { %14 = vst.msk [vmem:[#allocation0] sm:$0x1] %vm13_vm1, %v12_v5  }
  0x80   :  { %v18_v7 = vpop.permute.xlu0 %17  }
  0x81   :  { %20 = vst.msk [vmem:[#allocation0] sm:$0x1] %vm19_vm2, %v18_v7  }
  0x82   :  { %26 = vst.msk [vmem:[#allocation0] sm:$0x1] %vm25_vm3, %v24_v6  }
  0x89   :  { %v30_v8 = vld [vmem:[#allocation0] sm:$0x1] }
  0x8a   :  { %32 = vst [vmem:[%s56_s1] sm:$0x1] %v30_v8 }

// kernel: tile.43
= control target key start
LH: loop header
LB: loop body
LE: loop exit
PB: predicated region body
PF: predicated region fallthrough
CT: control target
= control target key end

     0   :  { %s22_s0 = inlined_call_operand.vmem [shape: f32[16], index: 0, kind: input, shape index: {}]   ;;  %s23_s1 = inlined_call_operand.vmem [shape: f32[2,16], index: 1, kind: output, shape index: {}]  }
   0x1   :  { %v4_v0 = vld [vmem:[%s22_s0] ss:$0 sm:$0xff] }
   0x2   :  { %5 = vst [vmem:[%s23_s1] sm:$0x3] %v4_v0 }

// kernel: tile.44
= control target key start
LH: loop header
LB: loop body
LE: loop exit
PB: predicated region body
PF: predicated region fallthrough
CT: control target
= control target key end

     0   :  { %vm7_vm0 = vcmask 130048   ;;  %vm13_vm1 = vcmask 261248   ;;  %s39_s0 = inlined_call_operand.vmem [shape: f32[2,16], index: 0, kind: input, shape index: {}]   ;;  %s40_s1 = inlined_call_operand.vmem [shape: f32[1,32], index: 1, kind: output, shape index: {}]  }
   0x1   :  { %v4_v0 = vld [vmem:[%s39_s0] sm:$0x3]  ;;  %s22_s0 = smov 16  }
   0x2   :  { %5 = vst [vmem:[#allocation1] sm:$0x3] %v4_v0 }
   0x9   :  { %v10_v1 = vld [vmem:[#allocation1 + $0x1] sm:$0x1]   ;;  %v6_v2 = vld [vmem:[#allocation1] sm:$0x1]  }
   0xa   :  { %11 = vrot.lane.b32.xlu0 %v10_v1, %s22_s0  ;;  %8 = vst.msk [vmem:[#allocation0] sm:$0x1] %vm7_vm0, %v6_v2  }
  0x7c   :  { %v12_v3 = vpop.permute.xlu0 %11  }
  0x7d   :  { %14 = vst.msk [vmem:[#allocation0] sm:$0x1] %vm13_vm1, %v12_v3  }
  0x84   :  { %v18_v4 = vld [vmem:[#allocation0] sm:$0x1] }
  0x85   :  { %20 = vst [vmem:[%s40_s1] sm:$0x1] %v18_v4 }

// kernel: ae_forward.1
= control target key start
LH: loop header
LB: loop body
LE: loop exit
PB: predicated region body
PF: predicated region fallthrough
CT: control target
= control target key end

     0   :  { %s7238_s29 = smov 0   ;;  %s9971_s0 = inlined_call_operand.vmem [shape: f32[2,28,28], index: 0, kind: input, shape index: {}]   ;;  %s9972_s1 = inlined_call_operand.vmem [shape: f32[4,3,28,192], index: 1, kind: input, shape index: {}]   ;;  %s9973_s2 = inlined_call_operand.vmem [shape: f32[4,6,26], index: 2, kind: input, shape index: {}]   ;;  %s9974_s3 = inlined_call_operand.vmem [shape: f32[1,192], index: 3, kind: input, shape index: {}]   ;;  %s9975_s4 = inlined_call_operand.vmem [shape: f32[3,192,64], index: 4, kind: input, shape index: {}]   ;;  %s9976_s5 = inlined_call_operand.vmem [shape: f32[1,64], index: 5, kind: input, shape index: {}]   ;;  %s9977_s6 = inlined_call_operand.vmem [shape: f32[3,64,32], index: 6, kind: input, shape index: {}]   ;;  %s9978_s7 = inlined_call_operand.vmem [shape: f32[1,32], index: 7, kind: input, shape index: {}]   ;;  %s9979_s8 = inlined_call_operand.vmem [shape: f32[5,32,96], index: 8, kind: input, shape index: {}]   ;;  %s9980_s9 = inlined_call_operand.vmem [shape: f32[1,96], index: 9, kind: input, shape index: {}]   ;;  %s9981_s10 = inlined_call_operand.vmem [shape: f32[9,96,224], index: 10, kind: input, shape index: {}]   ;;  %s9982_s11 = inlined_call_operand.vmem [shape: f32[1,224], index: 11, kind: input, shape index: {}]   ;;  %s9983_s12 = inlined_call_operand.vmem [shape: f32[9,224,22], index: 12, kind: input, shape index: {}]   ;;  %s9984_s13 = inlined_call_operand.vmem [shape: f32[1,22], index: 13, kind: input, shape index: {}]   ;;  %s9985_s14 = inlined_call_operand.vmem [shape: f32[2,22,22], index: 14, kind: output, shape index: {}]  }
   0x1 LB: > { %s5244_s30 = sadd.s32 4294967295, %s7157_s29   ;;  %p5248_p0 = scmp.ge.s32.totalorder %s7157_s29, 1  ;;  %s7157_s29 = sphi %s7238_s29, %s24_s29  }
   0x2   : > { %p412_p1 = scmp.lt.s32.totalorder %s7157_s29, 3 }
   0x4   : > { %p413_p2 = pnand %p5248_p0, %p412_p1 }
   0x5   : > { %v5253_v0 = vld [vmem:[%s9972_s1 + $0x48] sm:$0xff] (!%p413_p2)  ;;  %v5255_v1 = vld [vmem:[%s9972_s1 + $0x58] sm:$0xff] (!%p413_p2)  ;;  %vm510_vm0 = vcmask (!%p413_p2), 1043456   ;;  %v5252_v5 = vld [vmem:[%s9972_s1 + $0x40] sm:$0xff] (!%p413_p2)  ;;  %v7159_v7 = vmov (!%p413_p2), 0.0   ;;  %p458_p3 = scmp.lt.s32.totalorder (!%p413_p2), %s5244_s30, 1 }
   0x6   : > { %416 = sbr.rel (%p413_p2) target bundleno = 2159 (0x86f), region = 76  ;;  %v473_v2 = vld [vmem:[%s9972_s1 + $0x8] sm:$0xff] (!%p413_p2)  ;;  %v6132_v3 = vpack.c.bf16 (!%p413_p2), %v5255_v1, %v5253_v0  ;;  %v475_v4 = vld [vmem:[%s9972_s1 + $0x18] sm:$0xff] (!%p413_p2)  ;;  %v5254_v6 = vld [vmem:[%s9972_s1 + $0x50] sm:$0xff] (!%p413_p2)  ;;  %581 = vmatprep.mubr.f32.mxu1 (!%p413_p2), %v7159_v7  ;;  %3123 = vst [vmem:[#allocation3] sm:$0xff] (!%p413_p2), %v7159_v7  ;;  %684 = vmatprep.mubr.f32.mxu0 (!%p413_p2), %v7159_v7  ;;  %vm7160_vm1 = vmmov (!%p413_p2), 1  }
   0x7   : > { %3126 = vst [vmem:[#allocation3 + $0x10] sm:$0x3f] (!%p413_p2), %v7159_v7  ;;  %v6142_v8 = vpack.c.bf16 (!%p413_p2), %v475_v4, %v473_v2  ;;  %v6134_v9 = vpack.c.bf16 (!%p413_p2), %v5254_v6, %v5252_v5  ;;  %v472_v10 = vld [vmem:[%s9972_s1] sm:$0xff] (!%p413_p2)  ;;  %v474_v11 = vld [vmem:[%s9972_s1 + $0x10] sm:$0xff] (!%p413_p2)  ;;  %v5257_v12 = vld [vmem:[%s9972_s1 + $0x68] sm:$0xff] (!%p413_p2)  ;;  %vm493_vm3 = vcmask (!%p413_p2), 1046528  }
   0x8   : > { %6133 = vmatprep.subr.bf16.mxu1 (!%p413_p2), %v6132_v3  ;;  %v6144_v13 = vpack.c.bf16 (!%p413_p2), %v474_v11, %v472_v10  ;;  %v5259_v14 = vld [vmem:[%s9972_s1 + $0x78] sm:$0xf] (!%p413_p2)  ;;  %vm7284_vm2 = vmpackc.low (!%p413_p2), %vm510_vm0, %vm7160_vm1  ;;  %v477_v16 = vld [vmem:[%s9972_s1 + $0x28] sm:$0xff] (!%p413_p2)  ;;  %vm501_vm4 = vcmask (!%p413_p2), 228352   ;;  %vm718_vm5 = vcmask (!%p413_p2), 1045504   ;;  %vm1826_vm6 = vcmask (!%p413_p2), 1041408  }
   0x9   : > { %6143 = vmatprep.subr.bf16.mxu0 (!%p413_p2), %v6142_v8  ;;  %6135 = vmatpush1.bf16.msra.mxu1 (!%p413_p2), %v6134_v9  ;;  %v6136_v17 = vpack.c.bf16 (!%p413_p2), %v5259_v14, %v5257_v12  ;;  %v479_v18 = vld [vmem:[%s9972_s1 + $0x38] sm:$0xf] (!%p413_p2)  ;;  %v5256_v19 = vld [vmem:[%s9972_s1 + $0x60] sm:$0xff] (!%p413_p2)  ;;  %v5258_v20 = vld [vmem:[%s9972_s1 + $0x70] sm:$0xf] (!%p413_p2)  ;;  %vm1822_vm8 = vcmask (!%p413_p2), 211968  }
   0xa   : > { %6145 = vmatpush1.bf16.msra.mxu0 (!%p413_p2), %v6144_v13  ;;  %v6146_v21 = vpack.c.bf16 (!%p413_p2), %v479_v18, %v477_v16  ;;  %v6139_v22 = vpack.c.bf16 (!%p413_p2), %v5258_v20, %v5256_v19  ;;  %v476_v23 = vld [vmem:[%s9972_s1 + $0x20] sm:$0xff] (!%p413_p2)  ;;  %v478_v24 = vld [vmem:[%s9972_s1 + $0x30] sm:$0xf] (!%p413_p2)  ;;  %v5295_v25 = vld [vmem:[%s9972_s1 + $0x108] sm:$0xff] (!%p413_p2)  ;;  %vm2208_vm9 = vcmask (!%p413_p2), 523264   ;;  %vm7162_vm10 = vmmov (!%p413_p2), 0  }
   0xb   : > { %6138 = vmatprep.subr.msk.bf16.mxu1 (!%p413_p2), %vm7284_vm2, %v6136_v17  ;;  %v6149_v26 = vpack.c.bf16 (!%p413_p2), %v478_v24, %v476_v23  ;;  %v5297_v27 = vld [vmem:[%s9972_s1 + $0x118] sm:$0xff] (!%p413_p2)  ;;  %v5294_v28 = vld [vmem:[%s9972_s1 + $0x100] sm:$0xff] (!%p413_p2)  ;;  %v5296_v29 = vld [vmem:[%s9972_s1 + $0x110] sm:$0xff] (!%p413_p2)  ;;  %vm2717_vm11 = vcmask (!%p413_p2), 783360   ;;  %vm2724_vm12 = vcmask (!%p413_p2), 261120   ;;  %vm3124_vm13 = vcmask (!%p413_p2), 785408  }
   0xc   : > { %6148 = vmatprep.subr.msk.bf16.mxu0 (!%p413_p2), %vm7284_vm2, %v6146_v21  ;;  %v6162_v32 = vpack.c.bf16 (!%p413_p2), %v5297_v27, %v5295_v25  ;;  %v5273_v38 = vld [vmem:[%s9972_s1 + $0x88] sm:$0xff] (!%p413_p2)  ;;  %v6164_v39 = vpack.c.bf16 (!%p413_p2), %v5296_v29, %v5294_v28  ;;  %v5275_v40 = vld [vmem:[%s9972_s1 + $0x98] sm:$0xff] (!%p413_p2)  ;;  %v5272_v41 = vld [vmem:[%s9972_s1 + $0x80] sm:$0xff] (!%p413_p2)  ;;  %vm2799_vm14 = vcmask (!%p413_p2), 779264   ;;  %vm3339_vm15 = vcmask (!%p413_p2), 784385  }
   0xd   : > { %s9991_s30 = smov (!%p458_p3, %s5244_s30), 1  ;;  %6141 = vmatpush1.bf16.msk.msra.mxu1 %vm7284_vm2, %v6139_v22  ;;  %v5274_v42 = vld [vmem:[%s9972_s1 + $0x90] sm:$0xff]  ;;  %v6152_v44 = vpack.c.bf16 %v5275_v40, %v5273_v38  ;;  %v5299_v45 = vld [vmem:[%s9972_s1 + $0x128] sm:$0xff]  ;;  %v5301_v46 = vld [vmem:[%s9972_s1 + $0x138] sm:$0xf]  ;;  %vm3448_vm0 = vcmask 785410  }
   0xe   : > { %s5967_s19 = sshll.u32 %s9991_s30, 5  ;;  %6151 = vmatpush1.bf16.msk.msra.mxu0 %vm7284_vm2, %v6149_v26  ;;  %6163 = vmatprep.subr.bf16.mxu1 %v6162_v32  ;;  %v5277_v47 = vld [vmem:[%s9972_s1 + $0xa8] sm:$0xff]  ;;  %v6154_v48 = vpack.c.bf16 %v5274_v42, %v5272_v41  ;;  %v6166_v49 = vpack.c.bf16 %v5301_v46, %v5299_v45  ;;  %v5279_v50 = vld [vmem:[%s9972_s1 + $0xb8] sm:$0xf]  ;;  %v5298_v51 = vld [vmem:[%s9972_s1 + $0x120] sm:$0xff]  ;;  %s7124_s27 = smul.u32 24, %s9991_s30 }
   0xf   : > { %s462_s24 = scalar_lea.vmem %s9971_s0, %s5967_s19  ;;  %v5300_v52 = vld [vmem:[%s9972_s1 + $0x130] sm:$0xf]  ;;  %v5276_v55 = vld [vmem:[%s9972_s1 + $0xa0] sm:$0xff]  ;;  %v6156_v57 = vpack.c.bf16 %v5279_v50, %v5277_v47  ;;  %6153 = vmatprep.subr.bf16.mxu0 %v6152_v44  ;;  %v5287_v59 = vld [vmem:[%s9972_s1 + $0xc8] sm:$0xff] }
  0x10   : > { %v7330_v30 = vld [vmem:[%s462_s24] sm:$0xff]  ;;  %v7332_v31 = vld [vmem:[%s462_s24 + $0x8] sm:$0xff]  ;;  %v7334_v33 = vld [vmem:[%s462_s24 + $0x10] sm:$0xff]  ;;  %v6169_v58 = vpack.c.bf16 %v5300_v52, %v5298_v51  ;;  %s9958_s16 = scalar_lea.vmem %s9985_s14, %s7124_s27 }
  0x11   : > { %v494_v34 = vrot.slane %v7330_v30, 1  ;;  %v495_v35 = vrot.slane %v7332_v31, 1  ;;  %v497_v36 = vrot.slane %v7334_v33, 1  ;;  %v7341_v37 = vld [vmem:[%s462_s24 + $0x18] sm:$0xf]  ;;  %5268 = vmatmul.mubr.msk.f32.vlgmr.msra.gmra.mrb[0].mxu0 %vm501_vm4, %v7330_v30  ;;  %v5337_v62 = vld [vmem:[%s9972_s1 + $0x1c8] sm:$0xff]  ;;  %vm7787_vm7 = vmpackc.low %vm1826_vm6, %vm7160_vm1 }
  0x12   : > { %v7387_v54 = vrot.slane %v7341_v37, 1  ;;  %v5278_v56 = vld [vmem:[%s9972_s1 + $0xb0] sm:$0xf]  ;;  %690 = vmatprep.mubr.f32.mxu0 %v7159_v7  ;;  %v5289_v60 = vld [vmem:[%s9972_s1 + $0xd8] sm:$0xff]  ;;  %6155 = vmatpush1.bf16.msra.mxu0 %v6154_v48  ;;  %v719_v3 = vrot.slane %v7330_v30, 2  ;;  %v720_v4 = vrot.slane %v7332_v31, 2 }
  0x13   : > { %v7358_v43 = vsel %vm493_vm3, %v494_v34, %v495_v35  ;;  %v7384_v53 = vsel %vm493_vm3, %v495_v35, %v497_v36  ;;  %v6159_v61 = vpack.c.bf16 %v5278_v56, %v5276_v55  ;;  %v5339_v63 = vld [vmem:[%s9972_s1 + $0x1d8] sm:$0xff]  ;;  %6158 = vmatprep.subr.msk.bf16.mxu0 %vm7284_vm2, %v6156_v57  ;;  %v6172_v1 = vpack.c.bf16 %v5289_v60, %v5287_v59  ;;  %v5286_v5 = vld [vmem:[%s9972_s1 + $0xc0] sm:$0xff]  ;;  %v5288_v6 = vld [vmem:[%s9972_s1 + $0xd0] sm:$0xff] }
  0x14   : > { %5262 = vmatmul.mubr.msk.f32.vlgmr.msra.gmra.mrb[0].mxu1 %vm501_vm4, %v7358_v43  ;;  %v7417_v0 = vsel %vm493_vm3, %v497_v36, %v7387_v54  ;;  %v6192_v2 = vpack.c.bf16 %v5339_v63, %v5337_v62  ;;  %v5336_v8 = vld [vmem:[%s9972_s1 + $0x1c0] sm:$0xff]  ;;  %v5338_v9 = vld [vmem:[%s9972_s1 + $0x1d0] sm:$0xff]  ;;  %v5291_v10 = vld [vmem:[%s9972_s1 + $0xe8] sm:$0xff]  ;;  %v7465_v14 = vsel %vm718_vm5, %v719_v3, %v720_v4  ;;  %v722_v16 = vrot.slane %v7334_v33, 2 }
  0x15   : > { %587 = vmatprep.mubr.f32.mxu1 %v7159_v7  ;;  %6165 = vmatpush1.bf16.msra.mxu1 %v6164_v39  ;;  %v5293_v11 = vld [vmem:[%s9972_s1 + $0xf8] sm:$0xf]  ;;  %v5341_v12 = vld [vmem:[%s9972_s1 + $0x1e8] sm:$0xff]  ;;  %v6174_v17 = vpack.c.bf16 %v5288_v6, %v5286_v5  ;;  %v6194_v18 = vpack.c.bf16 %v5338_v9, %v5336_v8  ;;  %v5290_v20 = vld [vmem:[%s9972_s1 + $0xe0] sm:$0xff]  ;;  %v7502_v32 = vrot.slane %v7341_v37, 2  ;;  %vm3564_vm1 = vcmask 778240  }
  0x16   : > { %6168 = vmatprep.subr.msk.bf16.mxu1 %vm7284_vm2, %v6166_v49  ;;  %5269 = vmatmul.mubr.msk.f32.gmra.mrb[2].mxu0 %vm501_vm4, %v7332_v31  ;;  %v5343_v13 = vld [vmem:[%s9972_s1 + $0x1f8] sm:$0xf]  ;;  %v6176_v19 = vpack.c.bf16 %v5293_v11, %v5291_v10  ;;  %v5292_v21 = vld [vmem:[%s9972_s1 + $0xf0] sm:$0xf]  ;;  %v5340_v22 = vld [vmem:[%s9972_s1 + $0x1e0] sm:$0xff]  ;;  %v7499_v29 = vsel %vm718_vm5, %v720_v4, %v722_v16  ;;  %vm3677_vm3 = vcmask 785412  }
  0x17   : > { %696 = vmatprep.mubr.f32.mxu0 %v7159_v7  ;;  %6161 = vmatpush1.bf16.msk.msra.mxu0 %vm7284_vm2, %v6159_v61  ;;  %v6196_v23 = vpack.c.bf16 %v5343_v13, %v5341_v12  ;;  %v5342_v24 = vld [vmem:[%s9972_s1 + $0x1f0] sm:$0xf]  ;;  %v5315_v25 = vld [vmem:[%s9972_s1 + $0x148] sm:$0xff]  ;;  %v5317_v26 = vld [vmem:[%s9972_s1 + $0x158] sm:$0xff]  ;;  %v6179_v34 = vpack.c.bf16 %v5292_v21, %v5290_v20  ;;  %v7516_v39 = vsel %vm718_vm5, %v722_v16, %v7502_v32  ;;  %vm3795_vm5 = vcmask 780288  }
  0x18   : > { %5263 = vmatmul.mubr.msk.f32.gmra.mrb[2].mxu1 %vm501_vm4, %v7384_v53  ;;  %6193 = vmatprep.subr.bf16.mxu0 %v6192_v2  ;;  %v5329_v27 = vld [vmem:[%s9972_s1 + $0x188] sm:$0xff]  ;;  %v5331_v28 = vld [vmem:[%s9972_s1 + $0x198] sm:$0xff]  ;;  %v6199_v35 = vpack.c.bf16 %v5342_v24, %v5340_v22  ;;  %v6182_v36 = vpack.c.bf16 %v5317_v26, %v5315_v25  ;;  %v5314_v40 = vld [vmem:[%s9972_s1 + $0x140] sm:$0xff]  ;;  %vm3908_vm6 = vcmask 785414  }
  0x19   : > { %593 = vmatprep.mubr.f32.mxu1 %v7159_v7  ;;  %6171 = vmatpush1.bf16.msk.msra.mxu1 %vm7284_vm2, %v6169_v58  ;;  %v6202_v38 = vpack.c.bf16 %v5331_v28, %v5329_v27  ;;  %v5316_v41 = vld [vmem:[%s9972_s1 + $0x150] sm:$0xff]  ;;  %v5328_v42 = vld [vmem:[%s9972_s1 + $0x180] sm:$0xff]  ;;  %v5319_v45 = vld [vmem:[%s9972_s1 + $0x168] sm:$0xff] }
  0x1a   : > { %5270 = vmatmul.mubr.msk.f32.gmra.mrb[4].mxu0 %vm501_vm4, %v7334_v33  ;;  %6173 = vmatprep.subr.bf16.mxu1 %v6172_v1  ;;  %v5330_v44 = vld [vmem:[%s9972_s1 + $0x190] sm:$0xff]  ;;  %v5321_v46 = vld [vmem:[%s9972_s1 + $0x178] sm:$0xf]  ;;  %v5333_v47 = vld [vmem:[%s9972_s1 + $0x1a8] sm:$0xff]  ;;  %v6184_v49 = vpack.c.bf16 %v5316_v41, %v5314_v40 }
  0x1b   : > { %702 = vmatprep.mubr.f32.mxu0 %v7159_v7  ;;  %v5335_v48 = vld [vmem:[%s9972_s1 + $0x1b8] sm:$0xf]  ;;  %v6204_v50 = vpack.c.bf16 %v5330_v44, %v5328_v42  ;;  %v6186_v51 = vpack.c.bf16 %v5321_v46, %v5319_v45  ;;  %v5318_v52 = vld [vmem:[%s9972_s1 + $0x160] sm:$0xff]  ;;  %v5320_v55 = vld [vmem:[%s9972_s1 + $0x170] sm:$0xf] }
  0x1c   : > { %5264 = vmatmul.mubr.msk.f32.gmra.mrb[4].mxu1 %vm501_vm4, %v7417_v0  ;;  %v5332_v56 = vld [vmem:[%s9972_s1 + $0x1a0] sm:$0xff]  ;;  %v6206_v57 = vpack.c.bf16 %v5335_v48, %v5333_v47  ;;  %v5334_v58 = vld [vmem:[%s9972_s1 + $0x1b0] sm:$0xf]  ;;  %v5379_v59 = vld [vmem:[%s9972_s1 + $0x288] sm:$0xff]  ;;  %v6189_v63 = vpack.c.bf16 %v5320_v55, %v5318_v52 }
  0x1d   : > { %599 = vmatprep.mubr.f32.mxu1 %v7159_v7  ;;  %v5381_v60 = vld [vmem:[%s9972_s1 + $0x298] sm:$0xff]  ;;  %v5357_v61 = vld [vmem:[%s9972_s1 + $0x208] sm:$0xff]  ;;  %v6209_v1 = vpack.c.bf16 %v5334_v58, %v5332_v56  ;;  %v5378_v4 = vld [vmem:[%s9972_s1 + $0x280] sm:$0xff] }
  0x1e   : > { %5271 = vmatmul.mubr.msk.f32.gmra.mrb[6].mxu0 %vm501_vm4, %v7341_v37  ;;  %v5359_v62 = vld [vmem:[%s9972_s1 + $0x218] sm:$0xff]  ;;  %v6222_v2 = vpack.c.bf16 %v5381_v60, %v5379_v59  ;;  %v5380_v5 = vld [vmem:[%s9972_s1 + $0x290] sm:$0xff]  ;;  %v5356_v6 = vld [vmem:[%s9972_s1 + $0x200] sm:$0xff] }
  0x1f   : > { %804 = vmatprep.mubr.f32.mxu0 %v7159_v7  ;;  %v6212_v3 = vpack.c.bf16 %v5359_v62, %v5357_v61  ;;  %v5358_v8 = vld [vmem:[%s9972_s1 + $0x210] sm:$0xff]  ;;  %v5383_v9 = vld [vmem:[%s9972_s1 + $0x2a8] sm:$0xff]  ;;  %v5385_v10 = vld [vmem:[%s9972_s1 + $0x2b8] sm:$0xf]  ;;  %v6224_v13 = vpack.c.bf16 %v5380_v5, %v5378_v4 }
  0x20   : > { %5265 = vmatmul.mubr.msk.f32.gmra.mrb[6].mxu1 %vm501_vm4, %v7387_v54  ;;  %v5361_v11 = vld [vmem:[%s9972_s1 + $0x228] sm:$0xff]  ;;  %v5363_v12 = vld [vmem:[%s9972_s1 + $0x238] sm:$0xf]  ;;  %v6214_v16 = vpack.c.bf16 %v5358_v8, %v5356_v6  ;;  %v5360_v20 = vld [vmem:[%s9972_s1 + $0x220] sm:$0xff] }
  0x21   : > { %925 = vmatprep.mubr.f32.mxu1 %v7159_v7  ;;  %v6216_v21 = vpack.c.bf16 %v5363_v12, %v5361_v11  ;;  %v5362_v22 = vld [vmem:[%s9972_s1 + $0x230] sm:$0xf]  ;;  %v5373_v24 = vld [vmem:[%s9972_s1 + $0x258] sm:$0xff]  ;;  %v5370_v28 = vld [vmem:[%s9972_s1 + $0x240] sm:$0xff] }
  0x22   : > { %5282 = vmatmul.mubr.msk.f32.vlgmr.msra.gmra.mrb[0].mxu0 %vm501_vm4, %v7465_v14  ;;  %v6219_v26 = vpack.c.bf16 %v5362_v22, %v5360_v20  ;;  %v5374_v41 = vld [vmem:[%s9972_s1 + $0x260] sm:$0xff]  ;;  %v5376_v42 = vld [vmem:[%s9972_s1 + $0x270] sm:$0xf]  ;;  %v5399_v44 = vld [vmem:[%s9972_s1 + $0x2c8] sm:$0xff] }
  0x23   : > { %810 = vmatprep.mubr.f32.mxu0 %v7159_v7  ;;  %6195 = vmatpush1.bf16.msra.mxu0 %v6194_v18  ;;  %v5382_v18 = vld [vmem:[%s9972_s1 + $0x2a0] sm:$0xff]  ;;  %v5401_v45 = vld [vmem:[%s9972_s1 + $0x2d8] sm:$0xff]  ;;  %v6239_v46 = vpack.c.bf16 %v5376_v42, %v5374_v41  ;;  %v5400_v47 = vld [vmem:[%s9972_s1 + $0x2d0] sm:$0xff] }
  0x24   : > { %5304 = vmatmul.mubr.msk.f32.vlgmr.msra.gmra.mrb[8].mxu1 %vm501_vm4, %v7358_v43  ;;  %6198 = vmatprep.subr.msk.bf16.mxu0 %vm7284_vm2, %v6196_v23  ;;  %v5371_v23 = vld [vmem:[%s9972_s1 + $0x248] sm:$0xff]  ;;  %v5404_v52 = vld [vmem:[%s9972_s1 + $0x2f0] sm:$0xf] }
  0x25   : > { %931 = vmatprep.mubr.f32.mxu1 %v7159_v7  ;;  %6175 = vmatpush1.bf16.msra.mxu1 %v6174_v17  ;;  %v6226_v17 = vpack.c.bf16 %v5385_v10, %v5383_v9  ;;  %v6232_v27 = vpack.c.bf16 %v5373_v24, %v5371_v23  ;;  %v5403_v48 = vld [vmem:[%s9972_s1 + $0x2e8] sm:$0xff] }
  0x26   : > { %6178 = vmatprep.subr.msk.bf16.mxu1 %vm7284_vm2, %v6176_v19  ;;  %5283 = vmatmul.mubr.msk.f32.gmra.mrb[2].mxu0 %vm501_vm4, %v7499_v29  ;;  %v5384_v19 = vld [vmem:[%s9972_s1 + $0x2b0] sm:$0xf] }
  0x27   : > { %816 = vmatprep.mubr.f32.mxu0 %v7159_v7  ;;  %6201 = vmatpush1.bf16.msk.msra.mxu0 %vm7284_vm2, %v6199_v35  ;;  %v6229_v25 = vpack.c.bf16 %v5384_v19, %v5382_v18  ;;  %v5375_v35 = vld [vmem:[%s9972_s1 + $0x268] sm:$0xff] }
  0x28   : > { %5305 = vmatmul.mubr.msk.f32.gmra.mrb[10].mxu1 %vm501_vm4, %v7384_v53  ;;  %6203 = vmatprep.subr.bf16.mxu0 %v6202_v38 }
  0x29   : > { %937 = vmatprep.mubr.f32.mxu1 %v7159_v7  ;;  %6181 = vmatpush1.bf16.msk.msra.mxu1 %vm7284_vm2, %v6179_v34  ;;  %v5372_v34 = vld [vmem:[%s9972_s1 + $0x250] sm:$0xff] }
  0x2a   : > { %6183 = vmatprep.subr.bf16.mxu1 %v6182_v36  ;;  %5284 = vmatmul.mubr.msk.f32.gmra.mrb[4].mxu0 %vm501_vm4, %v7516_v39  ;;  %v5377_v36 = vld [vmem:[%s9972_s1 + $0x278] sm:$0xf]  ;;  %v6234_v38 = vpack.c.bf16 %v5372_v34, %v5370_v28 }
  0x2b   : > { %822 = vmatprep.mubr.f32.mxu0 %v7159_v7  ;;  %v6236_v40 = vpack.c.bf16 %v5377_v36, %v5375_v35 }
  0x2c   : > { %5306 = vmatmul.mubr.msk.f32.gmra.mrb[12].mxu1 %vm501_vm4, %v7417_v0 }
  0x2d   : > { %943 = vmatprep.mubr.f32.mxu1 %v7159_v7 }
  0x2e   : > { %5285 = vmatmul.mubr.msk.f32.gmra.mrb[6].mxu0 %vm501_vm4, %v7502_v32 }
  0x2f   : > { %1253 = vmatprep.mubr.f32.mxu0 %v7159_v7 }
  0x30   : > { %5307 = vmatmul.mubr.msk.f32.gmra.mrb[14].mxu1 %vm501_vm4, %v7387_v54 }
  0x31   : > { %1020 = vmatprep.mubr.f32.mxu1 %v7159_v7 }
  0x32   : > { %5346 = vmatmul.mubr.msk.f32.vlgmr.msra.gmra.mrb[8].mxu0 %vm501_vm4, %v7358_v43 }
  0x33   : > { %1259 = vmatprep.mubr.f32.mxu0 %v7159_v7  ;;  %6205 = vmatpush1.bf16.msra.mxu0 %v6204_v50 }
  0x34   : > { %5310 = vmatmul.mubr.msk.f32.vlgmr.msra.gmra.mrb[8].mxu1 %vm501_vm4, %v7330_v30  ;;  %6208 = vmatprep.subr.msk.bf16.mxu0 %vm7284_vm2, %v6206_v57 }
  0x35   : > { %1026 = vmatprep.mubr.f32.mxu1 %v7159_v7  ;;  %6185 = vmatpush1.bf16.msra.mxu1 %v6184_v49 }
  0x36   : > { %6188 = vmatprep.subr.msk.bf16.mxu1 %vm7284_vm2, %v6186_v51  ;;  %5347 = vmatmul.mubr.msk.f32.gmra.mrb[10].mxu0 %vm501_vm4, %v7384_v53  ;;  %v5402_v51 = vld [vmem:[%s9972_s1 + $0x2e0] sm:$0xff] }
  0x37   : > { %1265 = vmatprep.mubr.f32.mxu0 %v7159_v7  ;;  %6211 = vmatpush1.bf16.msk.msra.mxu0 %vm7284_vm2, %v6209_v1 }
  0x38   : > { %5311 = vmatmul.mubr.msk.f32.gmra.mrb[10].mxu1 %vm501_vm4, %v7332_v31  ;;  %6213 = vmatprep.subr.bf16.mxu0 %v6212_v3 }
  0x39   : > { %1032 = vmatprep.mubr.f32.mxu1 %v7159_v7  ;;  %6191 = vmatpush1.bf16.msk.msra.mxu1 %vm7284_vm2, %v6189_v63 }
  0x3a   : > { %6223 = vmatprep.subr.bf16.mxu1 %v6222_v2  ;;  %5348 = vmatmul.mubr.msk.f32.gmra.mrb[12].mxu0 %vm501_vm4, %v7417_v0 }
  0x3b   : > { %1271 = vmatprep.mubr.f32.mxu0 %v7159_v7 }
  0x3c   : > { %5312 = vmatmul.mubr.msk.f32.gmra.mrb[12].mxu1 %vm501_vm4, %v7334_v33 }
  0x3d   : > { %1038 = vmatprep.mubr.f32.mxu1 %v7159_v7 }
  0x3e   : > { %5349 = vmatmul.mubr.msk.f32.gmra.mrb[14].mxu0 %vm501_vm4, %v7387_v54 }
  0x3f   : > { %1348 = vmatprep.mubr.f32.mxu0 %v7159_v7 }
  0x40   : > { %5313 = vmatmul.mubr.msk.f32.gmra.mrb[14].mxu1 %vm501_vm4, %v7341_v37 }
  0x41   : > { %1124 = vmatprep.mubr.f32.mxu1 %v7159_v7 }
  0x42   : > { %5352 = vmatmul.mubr.msk.f32.vlgmr.msra.gmra.mrb[8].mxu0 %vm501_vm4, %v7330_v30 }
  0x43   : > { %1354 = vmatprep.mubr.f32.mxu0 %v7159_v7  ;;  %6215 = vmatpush1.bf16.msra.mxu0 %v6214_v16 }
  0x44   : > { %5324 = vmatmul.mubr.msk.f32.vlgmr.msra.gmra.mrb[8].mxu1 %vm501_vm4, %v7465_v14  ;;  %6218 = vmatprep.subr.msk.bf16.mxu0 %vm7284_vm2, %v6216_v21 }
  0x45   : > { %1130 = vmatprep.mubr.f32.mxu1 %v7159_v7  ;;  %6225 = vmatpush1.bf16.msra.mxu1 %v6224_v13 }
  0x46   : > { %6228 = vmatprep.subr.msk.bf16.mxu1 %vm7284_vm2, %v6226_v17  ;;  %5353 = vmatmul.mubr.msk.f32.gmra.mrb[10].mxu0 %vm501_vm4, %v7332_v31 }
  0x47   : > { %1360 = vmatprep.mubr.f32.mxu0 %v7159_v7  ;;  %6221 = vmatpush1.bf16.msk.msra.mxu0 %vm7284_vm2, %v6219_v26 }
  0x48   : > { %5325 = vmatmul.mubr.msk.f32.gmra.mrb[10].mxu1 %vm501_vm4, %v7499_v29 }
  0x49   : > { %1136 = vmatprep.mubr.f32.mxu1 %v7159_v7  ;;  %6231 = vmatpush1.bf16.msk.msra.mxu1 %vm7284_vm2, %v6229_v25 }
  0x4a   : > { %6233 = vmatprep.subr.bf16.mxu1 %v6232_v27  ;;  %5354 = vmatmul.mubr.msk.f32.gmra.mrb[12].mxu0 %vm501_vm4, %v7334_v33 }
  0x4b   : > { %1366 = vmatprep.mubr.f32.mxu0 %v7159_v7 }
  0x4c   : > { %5326 = vmatmul.mubr.msk.f32.gmra.mrb[12].mxu1 %vm501_vm4, %v7516_v39 }
  0x4d   : > { %1142 = vmatprep.mubr.f32.mxu1 %v7159_v7 }
  0x4e   : > { %5355 = vmatmul.mubr.msk.f32.gmra.mrb[14].mxu0 %vm501_vm4, %v7341_v37 }
  0x4f   : > { %1452 = vmatprep.mubr.f32.mxu0 %v7159_v7 }
  0x50   : > { %5327 = vmatmul.mubr.msk.f32.gmra.mrb[14].mxu1 %vm501_vm4, %v7502_v32 }
  0x51   : > { %1581 = vmatprep.mubr.f32.mxu1 %v7159_v7 }
  0x52   : > { %5366 = vmatmul.mubr.msk.f32.vlgmr.msra.gmra.mrb[8].mxu0 %vm501_vm4, %v7465_v14 }
  0x53   : > { %1458 = vmatprep.mubr.f32.mxu0 %v7159_v7 }
  0x54   : > { %5388 = vmatmul.mubr.msk.f32.vlgmr.msra.gmra.mrb[16].mxu1 %vm501_vm4, %v7358_v43  ;;  %v6242_v43 = vpack.c.bf16 %v5401_v45, %v5399_v44 }
  0x55   : > { %1587 = vmatprep.mubr.f32.mxu1 %v7159_v7  ;;  %6235 = vmatpush1.bf16.msra.mxu1 %v6234_v38 }
  0x56   : > { %6238 = vmatprep.subr.msk.bf16.mxu1 %vm7284_vm2, %v6236_v40  ;;  %5367 = vmatmul.mubr.msk.f32.gmra.mrb[10].mxu0 %vm501_vm4, %v7499_v29 }
  0x57   : > { %1464 = vmatprep.mubr.f32.mxu0 %v7159_v7 }
  0x58   : > { %5389 = vmatmul.mubr.msk.f32.gmra.mrb[18].mxu1 %vm501_vm4, %v7384_v53  ;;  %v5398_v53 = vld [vmem:[%s9972_s1 + $0x2c0] sm:$0xff] }
  0x59   : > { %1593 = vmatprep.mubr.f32.mxu1 %v7159_v7  ;;  %6241 = vmatpush1.bf16.msk.msra.mxu1 %vm7284_vm2, %v6239_v46  ;;  %v6244_v49 = vpack.c.bf16 %v5400_v47, %v5398_v53 }
  0x5a   : > { %6243 = vmatprep.subr.bf16.mxu1 %v6242_v43  ;;  %5368 = vmatmul.mubr.msk.f32.gmra.mrb[12].mxu0 %vm501_vm4, %v7516_v39 }
  0x5b   : > { %1470 = vmatprep.mubr.f32.mxu0 %v7159_v7 }
  0x5c   : > { %5390 = vmatmul.mubr.msk.f32.gmra.mrb[20].mxu1 %vm501_vm4, %v7417_v0  ;;  %v5405_v0 = vld [vmem:[%s9972_s1 + $0x2f8] sm:$0xf] }
  0x5d   : > { %1599 = vmatprep.mubr.f32.mxu1 %v7159_v7  ;;  %v6246_v50 = vpack.c.bf16 %v5405_v0, %v5403_v48 }
  0x5e   : > { %5369 = vmatmul.mubr.msk.f32.gmra.mrb[14].mxu0 %vm501_vm4, %v7502_v32 }
  0x5f   : > { %1897 = vmatprep.mubr.f32.mxu0 %v7159_v7 }
  0x60   : > { %5391 = vmatmul.mubr.msk.f32.gmra.mrb[22].mxu1 %vm501_vm4, %v7387_v54  ;;  %v6249_v54 = vpack.c.bf16 %v5404_v52, %v5402_v51 }
  0x61   : > { %1676 = vmatprep.mubr.f32.mxu1 %v7159_v7 }
  0x64   : > { %5394 = vmatmul.mubr.msk.f32.vlgmr.msra.gmra.mrb[16].mxu1 %vm501_vm4, %v7330_v30 }
  0x65   : > { %1682 = vmatprep.mubr.f32.mxu1 %v7159_v7  ;;  %6245 = vmatpush1.bf16.msra.mxu1 %v6244_v49 }
  0x66   : > { %6248 = vmatprep.subr.msk.bf16.mxu1 %vm7284_vm2, %v6246_v50 }
  0x68   : > { %5395 = vmatmul.mubr.msk.f32.gmra.mrb[18].mxu1 %vm501_vm4, %v7332_v31 }
  0x69   : > { %1688 = vmatprep.mubr.f32.mxu1 %v7159_v7  ;;  %6251 = vmatpush1.bf16.msk.msra.mxu1 %vm7284_vm2, %v6249_v54  ;;  %vm3561_vm2 = vcmask 785411  }
  0x6c   : > { %5396 = vmatmul.mubr.msk.f32.gmra.mrb[20].mxu1 %vm501_vm4, %v7334_v33 }
  0x6d   : > { %1694 = vmatprep.mubr.f32.mxu1 %v7159_v7 }
  0x70   : > { %5397 = vmatmul.mubr.msk.f32.gmra.mrb[22].mxu1 %vm501_vm4, %v7341_v37 }
  0x71   : > { %1780 = vmatprep.mubr.f32.mxu1 %v7159_v7 }
  0x74   : > { %5408 = vmatmul.mubr.msk.f32.vlgmr.msra.gmra.mrb[16].mxu1 %vm501_vm4, %v7465_v14 }
  0x75   : > { %1786 = vmatprep.mubr.f32.mxu1 %v7159_v7 }
  0x78   : > { %5409 = vmatmul.mubr.msk.f32.gmra.mrb[18].mxu1 %vm501_vm4, %v7499_v29 }
  0x79   : > { %1792 = vmatprep.mubr.f32.mxu1 %v7159_v7 }
  0x7c   : > { %5410 = vmatmul.mubr.msk.f32.gmra.mrb[20].mxu1 %vm501_vm4, %v7516_v39 }
  0x7d   : > { %1798 = vmatprep.mubr.f32.mxu1 %v7159_v7 }
  0x80   : > { %5411 = vmatmul.mubr.msk.f32.gmra.mrb[22].mxu1 %vm501_vm4, %v7502_v32  ;;  %vm3792_vm4 = vcmask 785413  }
  0x81   : > { %1973 = vmatprep.mubr.f32.mxu1 %v7159_v7 }
  0xe7   : > { %v583_v15 = vpop.f32.mrb[0].mxu1 }
  0xe8   : > { %v585_v30 = vpop.f32.mrb[1].mxu1 }
  0xeb   : > { %v589_v31 = vpop.f32.mrb[2].mxu1 }
  0xec   : > { %v591_v33 = vpop.f32.mrb[3].mxu1 }
  0xef   : > { %v595_v37 = vpop.f32.mrb[4].mxu1 }
  0xf0   : > { %v597_v14 = vpop.f32.mrb[5].mxu1 }
  0xf3   : > { %v601_v55 = vpop.f32.mrb[6].mxu1 }
  0xf4   : > { %v603_v29 = vpop.f32.mrb[7].mxu1 }
  0xf5   : > { %v806_v56 = vpop.f32.mrb[0].mxu0 }
  0xf6   : > { %v7060_v57 = vadd.f32 %v806_v56, %v583_v15  ;;  %v808_v58 = vpop.f32.mrb[1].mxu0 }
  0xf7   : > { %v7061_v59 = vadd.f32 %v808_v58, %v585_v30 }
  0xf9   : > { %v812_v39 = vpop.f32.mrb[2].mxu0 }
  0xfa   : > { %v7062_v60 = vadd.f32 %v812_v39, %v589_v31  ;;  %v814_v61 = vpop.f32.mrb[3].mxu0  ;;  %v5445_v39 = vld [vmem:[%s9975_s4 + $0x150] sm:$0xff] }
  0xfb   : > { %v7063_v62 = vadd.f32 %v814_v61, %v591_v33  ;;  %v1821_v61 = vld [vmem:[%s9973_s2] sm:$0x3f] }
  0xfd   : > { %v818_v63 = vpop.f32.mrb[4].mxu0 }
  0xfe   : > { %v7064_v32 = vadd.f32 %v818_v63, %v595_v37  ;;  %v820_v1 = vpop.f32.mrb[5].mxu0  ;;  %v2154_v63 = vld [vmem:[%s9975_s4] sm:$0xff] }
  0xff   : > { %v7065_v2 = vadd.f32 %v820_v1, %v597_v14  ;;  %v5427_v1 = vld [vmem:[%s9975_s4 + $0xc0] sm:$0xff] }
 0x101   : > { %v824_v3 = vpop.f32.mrb[6].mxu0 }
 0x102   : > { %v7066_v4 = vadd.f32 %v824_v3, %v601_v55  ;;  %v826_v5 = vpop.f32.mrb[7].mxu0  ;;  %v5419_v3 = vld [vmem:[%s9973_s2 + $0x10] sm:$0x3f] }
 0x103   : > { %v7067_v6 = vadd.f32 %v826_v5, %v603_v29 }
 0x117   : > { %v1126_v8 = vpop.f32.mrb[8].mxu1 }
 0x118   : > { %v1157_v9 = vmax.f32 %v7060_v57, %v1126_v8  ;;  %v1128_v10 = vpop.f32.mrb[9].mxu1  ;;  %v7161_v8 = vmov 0.0|0.0  }
 0x119   : > { %v1158_v11 = vmax.f32 %v7061_v59, %v1128_v10  ;;  %v5429_v10 = vld [vmem:[%s9975_s4 + $0xd0] sm:$0xff] }
 0x11b   : > { %v1132_v12 = vpop.f32.mrb[10].mxu1 }
 0x11c   : > { %v1159_v13 = vmax.f32 %v7062_v60, %v1132_v12  ;;  %v1134_v16 = vpop.f32.mrb[11].mxu1 }
 0x11d   : > { %v1160_v17 = vmax.f32 %v7063_v62, %v1134_v16  ;;  %v5415_v62 = vld [vmem:[%s9973_s2 + $0x8] sm:$0x3f]  ;;  %v2158_v16 = vld [vmem:[%s9975_s4 + $0x20] sm:$0xff] }
 0x11f   : > { %v1138_v18 = vpop.f32.mrb[12].mxu1 }
 0x120   : > { %v1161_v19 = vmax.f32 %v7064_v32, %v1138_v18  ;;  %v1140_v20 = vpop.f32.mrb[13].mxu1  ;;  %v2155_v32 = vld [vmem:[%s9975_s4 + $0x8] sm:$0xff]  ;;  %v5431_v18 = vld [vmem:[%s9975_s4 + $0xe0] sm:$0xff] }
 0x121   : > { %v1162_v21 = vmax.f32 %v7065_v2, %v1140_v20  ;;  %v5428_v2 = vld [vmem:[%s9975_s4 + $0xc8] sm:$0xff]  ;;  %v6329_v5 = vpack.c.bf16 %v2155_v32, %v2154_v63 }
 0x122   : > { %v2175_v63 = vld [vmem:[%s9975_s4 + $0xa8] sm:$0xff] }
 0x123   : > { %v1144_v22 = vpop.f32.mrb[14].mxu1 }
 0x124   : > { %v1163_v23 = vmax.f32 %v7066_v4, %v1144_v22  ;;  %v1146_v24 = vpop.f32.mrb[15].mxu1  ;;  %v5423_v4 = vld [vmem:[%s9973_s2 + $0x18] sm:$0x3f]  ;;  %v2160_v22 = vld [vmem:[%s9975_s4 + $0x30] sm:$0xff] }
 0x125   : > { %v1164_v25 = vmax.f32 %v7067_v6, %v1146_v24  ;;  %v1454_v26 = vpop.f32.mrb[8].mxu0  ;;  %v6293_v6 = vpack.c.bf16 %v5428_v2, %v5427_v1  ;;  %v5433_v24 = vld [vmem:[%s9975_s4 + $0xf0] sm:$0xff]  ;;  %v5447_v1 = vld [vmem:[%s9975_s4 + $0x160] sm:$0xff]  ;;  %v5448_v2 = vld [vmem:[%s9975_s4 + $0x168] sm:$0xff] }
 0x126   : > { %v1485_v27 = vmax.f32 %v1157_v9, %v1454_v26  ;;  %v1456_v28 = vpop.f32.mrb[9].mxu0  ;;  %v2157_v9 = vld [vmem:[%s9975_s4 + $0x18] sm:$0xff] }
 0x127   : > { %v1486_v34 = vmax.f32 %v1158_v11, %v1456_v28  ;;  %v5430_v11 = vld [vmem:[%s9975_s4 + $0xd8] sm:$0xff]  ;;  %v2162_v28 = vld [vmem:[%s9975_s4 + $0x40] sm:$0xff] }
 0x129   : > { %v1460_v35 = vpop.f32.mrb[10].mxu0 }
 0x12a   : > { %v1487_v36 = vmax.f32 %v1159_v13, %v1460_v35  ;;  %v1462_v38 = vpop.f32.mrb[11].mxu0  ;;  %v6296_v13 = vpack.c.bf16 %v5430_v11, %v5429_v10  ;;  %v5435_v35 = vld [vmem:[%s9975_s4 + $0x100] sm:$0xff]  ;;  %v2140_v11 = vlaneseq }
 0x12b   : > { %v1488_v40 = vmax.f32 %v1160_v17, %v1462_v38  ;;  %v2159_v17 = vld [vmem:[%s9975_s4 + $0x28] sm:$0xff] }
 0x12c   : > { %v6335_v20 = vpack.c.bf16 %v2159_v17, %v2158_v16 }
 0x12d   : > { %v1466_v41 = vpop.f32.mrb[12].mxu0 }
 0x12e   : > { %v1489_v42 = vmax.f32 %v1161_v19, %v1466_v41  ;;  %v1468_v44 = vpop.f32.mrb[13].mxu0  ;;  %v5432_v19 = vld [vmem:[%s9975_s4 + $0xe8] sm:$0xff]  ;;  %v2164_v41 = vld [vmem:[%s9975_s4 + $0x50] sm:$0xff] }
 0x12f   : > { %v1490_v45 = vmax.f32 %v1162_v21, %v1468_v44  ;;  %v6299_v21 = vpack.c.bf16 %v5432_v19, %v5431_v18  ;;  %v5437_v44 = vld [vmem:[%s9975_s4 + $0x110] sm:$0xff]  ;;  %v7995_v19 = vshrl.u32 %v2140_v11, 7 }
 0x131   : > { %v1472_v46 = vpop.f32.mrb[14].mxu0 }
 0x132   : > { %v1491_v43 = vmax.f32 %v1163_v23, %v1472_v46  ;;  %v1474_v53 = vpop.f32.mrb[15].mxu0  ;;  %v2161_v23 = vld [vmem:[%s9975_s4 + $0x38] sm:$0xff] }
 0x133   : > { %v1492_v47 = vmax.f32 %v1164_v25, %v1474_v53  ;;  %v5434_v25 = vld [vmem:[%s9975_s4 + $0xf8] sm:$0xff]  ;;  %v6338_v26 = vpack.c.bf16 %v2161_v23, %v2160_v22  ;;  %v2166_v53 = vld [vmem:[%s9975_s4 + $0x60] sm:$0xff]  ;;  %v2146_v23 = vsub.s32 1, %v7995_v19 }
 0x134   : > { %v2138_v22 = vld [vmem:[%s9974_s3] sm:$0x3] }
 0x147   : > { %v1782_v48 = vpop.f32.mrb[16].mxu1 }
 0x148   : > { %v1813_v0 = vmax.f32 %v1485_v27, %v1782_v48  ;;  %v1784_v49 = vpop.f32.mrb[17].mxu1  ;;  %v6302_v27 = vpack.c.bf16 %v5434_v25, %v5433_v24  ;;  %v5439_v48 = vld [vmem:[%s9975_s4 + $0x120] sm:$0xff] }
 0x149   : > { %v1814_v50 = vmax.f32 %v1486_v34, %v1784_v49  ;;  %v2163_v34 = vld [vmem:[%s9975_s4 + $0x48] sm:$0xff] }
 0x14a   : > { %v6341_v38 = vpack.c.bf16 %v2163_v34, %v2162_v28 }
 0x14b   : > { %v1788_v51 = vpop.f32.mrb[18].mxu1 }
 0x14c   : > { %v1815_v52 = vmax.f32 %v1487_v36, %v1788_v51  ;;  %v1790_v54 = vpop.f32.mrb[19].mxu1  ;;  %v5436_v36 = vld [vmem:[%s9975_s4 + $0x108] sm:$0xff]  ;;  %v2168_v51 = vld [vmem:[%s9975_s4 + $0x70] sm:$0xff] }
 0x14d   : > { %v1816_v15 = vmax.f32 %v1488_v40, %v1790_v54  ;;  %v6305_v40 = vpack.c.bf16 %v5436_v36, %v5435_v35  ;;  %v5441_v54 = vld [vmem:[%s9975_s4 + $0x130] sm:$0xff]  ;;  %v2147_v36 = vrot.slane %v2138_v22, %v2146_v23 }
 0x14e   : > { %v6254_v30 = vpack.c.bf16 %v1815_v52, %v1813_v0  ;;  %v5440_v0 = vld [vmem:[%s9975_s4 + $0x128] sm:$0xff]  ;;  %v2169_v52 = vld [vmem:[%s9975_s4 + $0x78] sm:$0xff] }
 0x14f   : > { %v6252_v31 = vpack.c.bf16 %v1816_v15, %v1814_v50  ;;  %v1794_v33 = vpop.f32.mrb[20].mxu1  ;;  %v6311_v50 = vpack.c.bf16 %v5440_v0, %v5439_v48  ;;  %v5442_v15 = vld [vmem:[%s9975_s4 + $0x138] sm:$0xff]  ;;  %v5455_v0 = vld [vmem:[%s9975_s4 + $0x190] sm:$0xff] }
 0x150   : > { %v1817_v37 = vmax.f32 %v1489_v42, %v1794_v33  ;;  %v1796_v14 = vpop.f32.mrb[21].mxu1  ;;  %v2165_v42 = vld [vmem:[%s9975_s4 + $0x58] sm:$0xff]  ;;  %v2170_v33 = vld [vmem:[%s9975_s4 + $0x80] sm:$0xff] }
 0x151   : > { %v1818_v55 = vmax.f32 %v1490_v45, %v1796_v14  ;;  %6253 = vmatprep.subr.bf16.mxu0 %v6252_v31  ;;  %6263 = vmatprep.subr.bf16.mxu1 %v6252_v31  ;;  %v5438_v45 = vld [vmem:[%s9975_s4 + $0x118] sm:$0xff]  ;;  %v6344_v46 = vpack.c.bf16 %v2165_v42, %v2164_v41 }
 0x152   : > { %6255 = vmatpush1.bf16.msra.mxu0 %v6254_v30  ;;  %6265 = vmatpush1.bf16.msra.mxu1 %v6254_v30 }
 0x153   : > { %v1800_v29 = vpop.f32.mrb[22].mxu1 }
 0x154   : > { %v1819_v56 = vmax.f32 %v1491_v43, %v1800_v29  ;;  %v1802_v57 = vpop.f32.mrb[23].mxu1  ;;  %v6308_v43 = vpack.c.bf16 %v5438_v45, %v5437_v44  ;;  %v5444_v29 = vld [vmem:[%s9975_s4 + $0x148] sm:$0xff]  ;;  %v5453_v45 = vld [vmem:[%s9975_s4 + $0x180] sm:$0xff] }
 0x155   : > { %v1820_v58 = vmax.f32 %v1492_v47, %v1802_v57  ;;  %v2167_v47 = vld [vmem:[%s9975_s4 + $0x68] sm:$0xff]  ;;  %v2172_v57 = vld [vmem:[%s9975_s4 + $0x90] sm:$0xff] }
 0x156   : > { %v6259_v59 = vpack.c.bf16 %v1819_v56, %v1817_v37  ;;  %v6347_v49 = vpack.c.bf16 %v2167_v47, %v2166_v53  ;;  %v2171_v37 = vld [vmem:[%s9975_s4 + $0x88] sm:$0xff] }
 0x157   : > { %v6256_v60 = vpack.c.bf16 %v1820_v58, %v1818_v55  ;;  %v6353_v14 = vpack.c.bf16 %v2171_v37, %v2170_v33  ;;  %v5443_v55 = vld [vmem:[%s9975_s4 + $0x140] sm:$0xff]  ;;  %v2173_v58 = vld [vmem:[%s9975_s4 + $0x98] sm:$0xff] }
 0x158   : > { %v6317_v56 = vpack.c.bf16 %v5444_v29, %v5443_v55  ;;  %v5461_v37 = vld [vmem:[%s9975_s4 + $0x1c0] sm:$0xff]  ;;  %v5463_v29 = vld [vmem:[%s9975_s4 + $0x1d0] sm:$0xff] }
 0x159   : > { %6258 = vmatprep.subr.msk.bf16.mxu0 %vm7787_vm7, %v6256_v60  ;;  %6268 = vmatprep.subr.msk.bf16.mxu1 %vm7787_vm7, %v6256_v60 }
 0x15a   : > { %6261 = vmatpush1.bf16.msk.msra.mxu0 %vm7787_vm7, %v6259_v59  ;;  %6271 = vmatpush1.bf16.msk.msra.mxu1 %vm7787_vm7, %v6259_v59 }
 0x15b   : > { %6273 = vmatprep.subr.bf16.mxu0 %v6252_v31  ;;  %6283 = vmatprep.subr.bf16.mxu1 %v6252_v31  ;;  %v6314_v31 = vpack.c.bf16 %v5442_v15, %v5441_v54  ;;  %v5458_v54 = vld [vmem:[%s9975_s4 + $0x1a8] sm:$0xff] }
 0x15d   : > { %5414 = vmatmul.mubr.msk.f32.vlgmr.msra.gmra.mrb[16].mxu0 %vm1822_vm8, %v1821_v61  ;;  %5418 = vmatmul.mubr.msk.f32.vlgmr.msra.gmra.mrb[24].mxu1 %vm1822_vm8, %v5415_v62  ;;  %v2174_v62 = vld [vmem:[%s9975_s4 + $0xa0] sm:$0xff] }
 0x15e   : > { %6275 = vmatpush1.bf16.msra.mxu0 %v6254_v30  ;;  %6285 = vmatpush1.bf16.msra.mxu1 %v6254_v30  ;;  %v6350_v30 = vpack.c.bf16 %v2169_v52, %v2168_v51  ;;  %v6359_v32 = vpack.c.bf16 %v2175_v63, %v2174_v62  ;;  %v5457_v52 = vld [vmem:[%s9975_s4 + $0x1a0] sm:$0xff] }
 0x15f   : > { %6278 = vmatprep.subr.msk.bf16.mxu0 %vm7787_vm7, %v6256_v60  ;;  %6288 = vmatprep.subr.msk.bf16.mxu1 %vm7787_vm7, %v6256_v60  ;;  %v5446_v60 = vld [vmem:[%s9975_s4 + $0x158] sm:$0xff]  ;;  %v6371_v15 = vpack.c.bf16 %v5458_v54, %v5457_v52  ;;  %v5469_v63 = vld [vmem:[%s9975_s4 + $0x200] sm:$0xff] }
 0x160   : > { %2051 = vmatprep.mubr.f32.mxu0 %v7159_v7  ;;  %2129 = vmatprep.mubr.f32.mxu1 %v7159_v7  ;;  %v2156_v7 = vld [vmem:[%s9975_s4 + $0x10] sm:$0xff]  ;;  %v6320_v61 = vpack.c.bf16 %v5446_v60, %v5445_v39  ;;  %v2466_v52 = vld [vmem:[%s9977_s6 + $0x18] sm:$0xff] }
 0x161   : > { %v6332_v12 = vpack.c.bf16 %v2157_v9, %v2156_v7  ;;  %v5449_v7 = vld [vmem:[%s9975_s4 + $0x170] sm:$0xff]  ;;  %v5450_v9 = vld [vmem:[%s9975_s4 + $0x178] sm:$0xff] }
 0x162   : > { %6281 = vmatpush1.bf16.msk.msra.mxu0 %vm7787_vm7, %v6259_v59  ;;  %6291 = vmatpush1.bf16.msk.msra.mxu1 %vm7787_vm7, %v6259_v59  ;;  %v6356_v59 = vpack.c.bf16 %v2173_v58, %v2172_v57  ;;  %v6326_v10 = vpack.c.bf16 %v5450_v9, %v5449_v7  ;;  %v5465_v58 = vld [vmem:[%s9975_s4 + $0x1e0] sm:$0xff]  ;;  %v5467_v60 = vld [vmem:[%s9975_s4 + $0x1f0] sm:$0xff]  ;;  %vm3911_vm7 = vcmask 781312  }
 0x163   : > { %6328 = vmatprep.subr.bf16.mxu1 %v7161_v8  ;;  %6292 = vmatprep.subr.bf16.mxu0 %v7161_v8  ;;  %v5475_v9 = vld [vmem:[%s9975_s4 + $0x230] sm:$0xff] }
 0x165   : > { %5422 = vmatmul.mubr.msk.f32.vlgmr.msra.gmra.mrb[18].mxu0 %vm1822_vm8, %v5419_v3  ;;  %5426 = vmatmul.mubr.msk.f32.vlgmr.msra.gmra.mrb[26].mxu1 %vm1822_vm8, %v5423_v4  ;;  %v6323_v3 = vpack.c.bf16 %v5448_v2, %v5447_v1  ;;  %v2176_v4 = vld [vmem:[%s9975_s4 + $0xb0] sm:$0xff]  ;;  %vm4024_vm8 = vcmask 785415  }
 0x166   : > { %6330 = vmatpush1.bf16.msra.mxu1 %v6329_v5  ;;  %6294 = vmatpush1.bf16.msra.mxu0 %v6293_v6  ;;  %v2177_v5 = vld [vmem:[%s9975_s4 + $0xb8] sm:$0xff]  ;;  %v5471_v2 = vld [vmem:[%s9975_s4 + $0x210] sm:$0xff] }
 0x167   : > { %6331 = vmatprep.subr.bf16.mxu1 %v7161_v8  ;;  %6295 = vmatprep.subr.bf16.mxu0 %v7161_v8  ;;  %v6362_v6 = vpack.c.bf16 %v2177_v5, %v2176_v4  ;;  %v5473_v5 = vld [vmem:[%s9975_s4 + $0x220] sm:$0xff] }
 0x16a   : > { %6333 = vmatpush1.bf16.msra.mxu1 %v6332_v12  ;;  %6297 = vmatpush1.bf16.msra.mxu0 %v6296_v13 }
 0x16b   : > { %6334 = vmatprep.subr.bf16.mxu1 %v7161_v8  ;;  %6298 = vmatprep.subr.bf16.mxu0 %v7161_v8 }
 0x16e   : > { %6336 = vmatpush1.bf16.msra.mxu1 %v6335_v20  ;;  %6300 = vmatpush1.bf16.msra.mxu0 %v6299_v21  ;;  %v2142_v21 = vsub.s32 0, %v7995_v19  ;;  %v5785_v19 = vld [vmem:[%s9983_s12 + $0x2a8] sm:$0xff] }
 0x16f   : > { %6337 = vmatprep.subr.bf16.mxu1 %v7161_v8  ;;  %6301 = vmatprep.subr.bf16.mxu0 %v7161_v8 }
 0x170   : > { %v2143_v28 = vrot.slane %v2138_v22, %v2142_v21 }
 0x172   : > { %6339 = vmatpush1.bf16.msra.mxu1 %v6338_v26  ;;  %6303 = vmatpush1.bf16.msra.mxu0 %v6302_v27 }
 0x173   : > { %6340 = vmatprep.subr.bf16.mxu1 %v7161_v8  ;;  %6304 = vmatprep.subr.bf16.mxu0 %v7161_v8 }
 0x176   : > { %6342 = vmatpush1.bf16.msra.mxu1 %v6341_v38  ;;  %6306 = vmatpush1.bf16.msra.mxu0 %v6305_v40 }
 0x177   : > { %6343 = vmatprep.subr.bf16.mxu1 %v7161_v8  ;;  %6307 = vmatprep.subr.bf16.mxu0 %v7161_v8 }
 0x17a   : > { %6345 = vmatpush1.bf16.msra.mxu1 %v6344_v46  ;;  %6309 = vmatpush1.bf16.msra.mxu0 %v6308_v43  ;;  %v5454_v46 = vld [vmem:[%s9975_s4 + $0x188] sm:$0xff] }
 0x17b   : > { %6346 = vmatprep.subr.bf16.mxu1 %v7161_v8  ;;  %6310 = vmatprep.subr.bf16.mxu0 %v7161_v8  ;;  %v6365_v47 = vpack.c.bf16 %v5454_v46, %v5453_v45  ;;  %v5478_v45 = vld [vmem:[%s9976_s5] ss:$0 sm:$0xff] }
 0x17e   : > { %6348 = vmatpush1.bf16.msra.mxu1 %v6347_v49  ;;  %6312 = vmatpush1.bf16.msra.mxu0 %v6311_v50  ;;  %v5456_v49 = vld [vmem:[%s9975_s4 + $0x198] sm:$0xff] }
 0x17f   : > { %6349 = vmatprep.subr.bf16.mxu1 %v7161_v8  ;;  %6313 = vmatprep.subr.bf16.mxu0 %v7161_v8  ;;  %v6368_v51 = vpack.c.bf16 %v5456_v49, %v5455_v0 }
 0x182   : > { %6351 = vmatpush1.bf16.msra.mxu1 %v6350_v30  ;;  %6315 = vmatpush1.bf16.msra.mxu0 %v6314_v31  ;;  %v5459_v30 = vld [vmem:[%s9975_s4 + $0x1b0] sm:$0xff]  ;;  %v5460_v31 = vld [vmem:[%s9975_s4 + $0x1b8] sm:$0xff] }
 0x183   : > { %6352 = vmatprep.subr.bf16.mxu1 %v7161_v8  ;;  %6316 = vmatprep.subr.bf16.mxu0 %v7161_v8  ;;  %v6374_v33 = vpack.c.bf16 %v5460_v31, %v5459_v30  ;;  %v2468_v30 = vld [vmem:[%s9977_s6 + $0x28] sm:$0xff] }
 0x186   : > { %6354 = vmatpush1.bf16.msra.mxu1 %v6353_v14  ;;  %6318 = vmatpush1.bf16.msra.mxu0 %v6317_v56  ;;  %v5462_v14 = vld [vmem:[%s9975_s4 + $0x1c8] sm:$0xff]  ;;  %v5464_v56 = vld [vmem:[%s9975_s4 + $0x1d8] sm:$0xff] }
 0x187   : > { %6355 = vmatprep.subr.bf16.mxu1 %v7161_v8  ;;  %6319 = vmatprep.subr.bf16.mxu0 %v7161_v8  ;;  %v6377_v55 = vpack.c.bf16 %v5462_v14, %v5461_v37  ;;  %v6380_v57 = vpack.c.bf16 %v5464_v56, %v5463_v29  ;;  %v2470_v37 = vld [vmem:[%s9977_s6 + $0x38] sm:$0xff]  ;;  %v5490_v29 = vld [vmem:[%s9977_s6 + $0x88] sm:$0xff] }
 0x18a   : > { %6357 = vmatpush1.bf16.msra.mxu1 %v6356_v59  ;;  %6321 = vmatpush1.bf16.msra.mxu0 %v6320_v61  ;;  %v5466_v59 = vld [vmem:[%s9975_s4 + $0x1e8] sm:$0xff]  ;;  %v5468_v61 = vld [vmem:[%s9975_s4 + $0x1f8] sm:$0xff] }
 0x18b   : > { %6358 = vmatprep.subr.bf16.mxu1 %v7161_v8  ;;  %6322 = vmatprep.subr.bf16.mxu0 %v7161_v8  ;;  %v6383_v39 = vpack.c.bf16 %v5466_v59, %v5465_v58  ;;  %v6386_v62 = vpack.c.bf16 %v5468_v61, %v5467_v60  ;;  %v5492_v58 = vld [vmem:[%s9977_s6 + $0x98] sm:$0xff]  ;;  %v5494_v60 = vld [vmem:[%s9977_s6 + $0xa8] sm:$0xff] }
 0x18e   : > { %6360 = vmatpush1.bf16.msra.mxu1 %v6359_v32  ;;  %6324 = vmatpush1.bf16.msra.mxu0 %v6323_v3  ;;  %v5470_v32 = vld [vmem:[%s9975_s4 + $0x208] sm:$0xff]  ;;  %v5472_v3 = vld [vmem:[%s9975_s4 + $0x218] sm:$0xff] }
 0x18f   : > { %6361 = vmatprep.subr.bf16.mxu1 %v7161_v8  ;;  %6325 = vmatprep.subr.bf16.mxu0 %v7161_v8  ;;  %v6389_v1 = vpack.c.bf16 %v5470_v32, %v5469_v63  ;;  %v6392_v4 = vpack.c.bf16 %v5472_v3, %v5471_v2  ;;  %v5496_v63 = vld [vmem:[%s9977_s6 + $0xb8] sm:$0xff]  ;;  %v2720_v2 = vld [vmem:[%s9979_s8] sm:$0xff]  ;;  %v2721_v3 = vld [vmem:[%s9979_s8 + $0x8] sm:$0xff] }
 0x192   : > { %6363 = vmatpush1.bf16.msra.mxu1 %v6362_v6  ;;  %6327 = vmatpush1.bf16.msra.mxu0 %v6326_v10  ;;  %v5474_v6 = vld [vmem:[%s9975_s4 + $0x228] sm:$0xff]  ;;  %v5476_v10 = vld [vmem:[%s9975_s4 + $0x238] sm:$0xff] }
 0x193   : > { %6400 = vmatprep.subr.bf16.mxu1 %v7161_v8  ;;  %6364 = vmatprep.subr.bf16.mxu0 %v7161_v8  ;;  %v6395_v7 = vpack.c.bf16 %v5474_v6, %v5473_v5  ;;  %v6398_v11 = vpack.c.bf16 %v5476_v10, %v5475_v9  ;;  %v6437_v5 = vpack.c.bf16 %v2721_v3, %v2720_v2  ;;  %v5501_v6 = vld [vmem:[%s9979_s8 + $0x28] sm:$0xff]  ;;  %v2722_v9 = vld [vmem:[%s9979_s8 + $0x10] sm:$0xff]  ;;  %v2723_v10 = vld [vmem:[%s9979_s8 + $0x18] sm:$0xff] }
 0x230   : > { %v1899_v12 = vpop.f32.mrb[16].mxu0  ;;  %v1975_v13 = vpop.f32.mrb[24].mxu1 }
 0x231   : > { %v1980_v16 = vmax.f32 %v1899_v12, %v1975_v13  ;;  %v1901_v17 = vpop.f32.mrb[17].mxu0  ;;  %v1977_v18 = vpop.f32.mrb[25].mxu1  ;;  %v5479_v13 = vld [vmem:[%s9977_s6 + $0x40] sm:$0xff] }
 0x232   : > { %v1981_v20 = vmax.f32 %v1901_v17, %v1977_v18  ;;  %v5481_v17 = vld [vmem:[%s9977_s6 + $0x50] sm:$0xff] }
 0x238   : > { %v2053_v24 = vpop.f32.mrb[18].mxu0  ;;  %v2131_v25 = vpop.f32.mrb[26].mxu1 }
 0x239   : > { %v2058_v26 = vmax.f32 %v1980_v16, %v2053_v24  ;;  %v2055_v27 = vpop.f32.mrb[19].mxu0  ;;  %v2133_v34 = vpop.f32.mrb[27].mxu1  ;;  %v5480_v16 = vld [vmem:[%s9977_s6 + $0x48] sm:$0xff]  ;;  %v5483_v24 = vld [vmem:[%s9977_s6 + $0x60] sm:$0xff] }
 0x23a   : > { %v2059_v35 = vmax.f32 %v1981_v20, %v2055_v27  ;;  %v6401_v18 = vpack.c.bf16 %v5480_v16, %v5479_v13  ;;  %v5482_v20 = vld [vmem:[%s9977_s6 + $0x58] sm:$0xff]  ;;  %v5485_v27 = vld [vmem:[%s9977_s6 + $0x70] sm:$0xff] }
 0x23b   : > { %v2136_v38 = vmax.f32 %v2058_v26, %v2131_v25  ;;  %v6404_v22 = vpack.c.bf16 %v5482_v20, %v5481_v17  ;;  %v5484_v25 = vld [vmem:[%s9977_s6 + $0x68] sm:$0xff]  ;;  %v5503_v13 = vld [vmem:[%s9979_s8 + $0x38] sm:$0xff] }
 0x23c   : > { %v2137_v40 = vmax.f32 %v2059_v35, %v2133_v34  ;;  %v6407_v26 = vpack.c.bf16 %v5484_v25, %v5483_v24  ;;  %v8126_v35 = vld [vmem:[#allocation3] sm:$0xff]  ;;  %v5505_v25 = vld [vmem:[%s9979_s8 + $0x40] sm:$0xff] }
 0x23d   : > { %v2150_v41 = vadd.f32 %v2143_v28, %v2136_v38  ;;  %v5486_v28 = vld [vmem:[%s9977_s6 + $0x78] sm:$0xff]  ;;  %2718 = vst.msk [vmem:[#allocation2] sm:$0x3f] %vm2717_vm11, %v8126_v35  ;;  %3127 = vst.msk [vmem:[#allocation3 + $0x18] sm:$0x3f] %vm2717_vm11, %v8126_v35 }
 0x23e   : > { %v2151_v42 = vadd.f32 %v2147_v36, %v2137_v40  ;;  %v6410_v34 = vpack.c.bf16 %v5486_v28, %v5485_v27  ;;  %v5510_v27 = vld [vmem:[%s9979_s8 + $0x60] sm:$0xff]  ;;  %v5511_v28 = vld [vmem:[%s9979_s8 + $0x68] sm:$0xff]  ;;  %3125 = vst.msk [vmem:[#allocation3 + $0x8] sm:$0xff] %vm3124_vm13, %v8126_v35 }
 0x23f   : > { %v8006_v44 = vmax.f32 %v2150_v41, 0.0 }
 0x240   : > { %v2153_v43 = vmax.f32 %v2151_v42, 0.0 }
 0x241   : > { %v2205_v48 = vrot.slane %v8006_v44, 1  ;;  %v2378_v12 = vrot.slane %v8006_v44, 2 }
 0x242   : > { %5452 = vmatprep.mubr.msk.f32.mxu1 %vm2208_vm9, %v2153_v43  ;;  %v2206_v53 = vrot.slane %v2153_v43, 1  ;;  %v2379_v50 = vrot.slane %v2153_v43, 2 }
 0x243   : > { %2348 = vmatmul.mubr.f32.vlgmr.msra.gmra.mrb[28].mxu1 %v8006_v44 }
 0x244   : > { %5451 = vmatprep.mubr.msk.f32.mxu0 %vm2208_vm9, %v2206_v53  ;;  %6402 = vmatpush3.bf16.msra.mxu1 %v6401_v18 }
 0x245   : > { %2276 = vmatmul.mubr.f32.vlgmr.msra.gmra.mrb[20].mxu0 %v2205_v48  ;;  %6403 = vmatprep.subr.bf16.mxu1 %v7161_v8  ;;  %v2464_v48 = vld [vmem:[%s9977_s6 + $0x8] sm:$0xff] }
 0x246   : > { %6366 = vmatpush1.bf16.msra.mxu0 %v6365_v47  ;;  %5477 = vmatprep.mubr.msk.f32.mxu0 %vm2208_vm9, %v2379_v50  ;;  %v2463_v47 = vld [vmem:[%s9977_s6] sm:$0xff] }
 0x247   : > { %6367 = vmatprep.subr.bf16.mxu0 %v7161_v8  ;;  %6036 = vmatprep.mubr.msk.f32.mxu1 %vm7162_vm10, %v8126_v35  ;;  %v6413_v49 = vpack.c.bf16 %v2464_v48, %v2463_v47 }
 0x248   : > { %6405 = vmatpush3.bf16.msra.mxu1 %v6404_v22 }
 0x249   : > { %6406 = vmatprep.subr.bf16.mxu1 %v7161_v8 }
 0x24a   : > { %6369 = vmatpush1.bf16.msra.mxu0 %v6368_v51  ;;  %v2465_v51 = vld [vmem:[%s9977_s6 + $0x10] sm:$0xff] }
 0x24b   : > { %6370 = vmatprep.subr.bf16.mxu0 %v7161_v8  ;;  %v6416_v54 = vpack.c.bf16 %v2466_v52, %v2465_v51  ;;  %v5517_v51 = vld [vmem:[%s9979_s8 + $0x90] sm:$0xff]  ;;  %v5518_v52 = vld [vmem:[%s9979_s8 + $0x98] sm:$0xff] }
 0x24c   : > { %6408 = vmatpush3.bf16.msra.mxu1 %v6407_v26  ;;  %v5506_v26 = vld [vmem:[%s9979_s8 + $0x48] sm:$0xff] }
 0x24d   : > { %6409 = vmatprep.subr.bf16.mxu1 %v7161_v8 }
 0x24e   : > { %6372 = vmatpush1.bf16.msra.mxu0 %v6371_v15  ;;  %v2467_v15 = vld [vmem:[%s9977_s6 + $0x20] sm:$0xff] }
 0x24f   : > { %6373 = vmatprep.subr.bf16.mxu0 %v7161_v8  ;;  %v6419_v31 = vpack.c.bf16 %v2468_v30, %v2467_v15  ;;  %v3131_v15 = vld [vmem:[%s9981_s10 + $0x8] sm:$0xff]  ;;  %v3133_v30 = vld [vmem:[%s9981_s10 + $0x18] sm:$0xff] }
 0x250   : > { %6411 = vmatpush3.bf16.msra.mxu1 %v6410_v34 }
 0x251   : > { %6412 = vmatprep.subr.bf16.mxu1 %v7161_v8 }
 0x252   : > { %6375 = vmatpush1.bf16.msra.mxu0 %v6374_v33  ;;  %v2469_v33 = vld [vmem:[%s9977_s6 + $0x30] sm:$0xff] }
 0x253   : > { %6376 = vmatprep.subr.bf16.mxu0 %v7161_v8  ;;  %v6422_v14 = vpack.c.bf16 %v2470_v37, %v2469_v33  ;;  %v6466_v33 = vpack.c.bf16 %v3133_v30, %v3131_v15  ;;  %v5525_v37 = vld [vmem:[%s9981_s10 + $0xd8] sm:$0xff]  ;;  %v3151_v15 = vld [vmem:[%s9981_s10 + $0xa8] sm:$0xff] }
 0x256   : > { %6378 = vmatpush1.bf16.msra.mxu0 %v6377_v55  ;;  %v5489_v55 = vld [vmem:[%s9977_s6 + $0x80] sm:$0xff] }
 0x257   : > { %6379 = vmatprep.subr.bf16.mxu0 %v7161_v8  ;;  %v6425_v56 = vpack.c.bf16 %v5490_v29, %v5489_v55  ;;  %v3132_v55 = vld [vmem:[%s9981_s10 + $0x10] sm:$0xff] }
 0x25a   : > { %6381 = vmatpush1.bf16.msra.mxu0 %v6380_v57  ;;  %v5491_v57 = vld [vmem:[%s9977_s6 + $0x90] sm:$0xff] }
 0x25b   : > { %6382 = vmatprep.subr.bf16.mxu0 %v7161_v8  ;;  %v6428_v59 = vpack.c.bf16 %v5492_v58, %v5491_v57  ;;  %v5522_v57 = vld [vmem:[%s9981_s10 + $0xc0] sm:$0xff]  ;;  %v5524_v58 = vld [vmem:[%s9981_s10 + $0xd0] sm:$0xff] }
 0x25e   : > { %6384 = vmatpush1.bf16.msra.mxu0 %v6383_v39  ;;  %v5493_v39 = vld [vmem:[%s9977_s6 + $0xa0] sm:$0xff] }
 0x25f   : > { %6385 = vmatprep.subr.bf16.mxu0 %v7161_v8  ;;  %v6431_v61 = vpack.c.bf16 %v5494_v60, %v5493_v39  ;;  %v3135_v39 = vld [vmem:[%s9981_s10 + $0x28] sm:$0xff]  ;;  %v3137_v60 = vld [vmem:[%s9981_s10 + $0x38] sm:$0xff] }
 0x262   : > { %6387 = vmatpush1.bf16.msra.mxu0 %v6386_v62  ;;  %v5495_v62 = vld [vmem:[%s9977_s6 + $0xb0] sm:$0xff] }
 0x263   : > { %6388 = vmatprep.subr.bf16.mxu0 %v7161_v8  ;;  %v6434_v32 = vpack.c.bf16 %v5496_v63, %v5495_v62  ;;  %v6470_v62 = vpack.c.bf16 %v3137_v60, %v3135_v39  ;;  %v5529_v63 = vld [vmem:[%s9981_s10 + $0xf8] sm:$0xff]  ;;  %v5548_v39 = vld [vmem:[%s9981_s10 + $0x188] sm:$0xff] }
 0x264   : > { %v5550_v60 = vld [vmem:[%s9981_s10 + $0x198] sm:$0xff] }
 0x266   : > { %6390 = vmatpush1.bf16.msra.mxu0 %v6389_v1 }
 0x267   : > { %6391 = vmatprep.subr.bf16.mxu0 %v7161_v8 }
 0x26a   : > { %6393 = vmatpush1.bf16.msra.mxu0 %v6392_v4  ;;  %v5500_v4 = vld [vmem:[%s9979_s8 + $0x20] sm:$0xff] }
 0x26b   : > { %6394 = vmatprep.subr.bf16.mxu0 %v7161_v8 }
 0x26e   : > { %6396 = vmatpush1.bf16.msra.mxu0 %v6395_v7  ;;  %v6443_v7 = vpack.c.bf16 %v5501_v6, %v5500_v4  ;;  %v5526_v4 = vld [vmem:[%s9981_s10 + $0xe0] sm:$0xff] }
 0x26f   : > { %6397 = vmatprep.subr.bf16.mxu0 %v7161_v8 }
 0x272   : > { %6399 = vmatpush1.bf16.msra.mxu0 %v6398_v11  ;;  %v5502_v11 = vld [vmem:[%s9979_s8 + $0x30] sm:$0xff] }
 0x273   : > { %6436 = vmatprep.subr.bf16.mxu0 %v7161_v8  ;;  %v6446_v16 = vpack.c.bf16 %v5503_v13, %v5502_v11  ;;  %v3138_v13 = vld [vmem:[%s9981_s10 + $0x40] sm:$0xff] }
 0x275   : > { %2448 = vmatmul.mubr.f32.vlgmr.msra.gmra.mrb[22].mxu0 %v2378_v12  ;;  %v6440_v12 = vpack.c.bf16 %v2723_v10, %v2722_v9  ;;  %v3141_v9 = vld [vmem:[%s9981_s10 + $0x58] sm:$0xff]  ;;  %v5531_v10 = vld [vmem:[%s9981_s10 + $0x108] sm:$0xff] }
 0x276   : > { %6085 = vmatprep.mubr.msk.f32.mxu0 %vm7162_vm10, %v8126_v35  ;;  %6438 = vmatpush3.bf16.msra.mxu0 %v6437_v5  ;;  %v5528_v5 = vld [vmem:[%s9981_s10 + $0xf0] sm:$0xff] }
 0x277   : > { %6439 = vmatprep.subr.bf16.mxu0 %v7161_v8  ;;  %v6496_v6 = vpack.c.bf16 %v5528_v5, %v5526_v4 }
 0x27a   : > { %6441 = vmatpush3.bf16.msra.mxu0 %v6440_v12  ;;  %v5533_v12 = vld [vmem:[%s9981_s10 + $0x118] sm:$0xff] }
 0x27b   : > { %6448 = vmatprep.subr.bf16.mxu0 %v7161_v8 }
 0x316   : > { %v2349_v36 = vpop.f32.mrb[28].mxu1 }
 0x317   : > { %v2351_v38 = vpop.f32.mrb[29].mxu1 }
 0x318   : > { %v2277_v40 = vpop.f32.mrb[20].mxu0 }
 0x319   : > { %v2350_v41 = vadd.f32 %v2349_v36, %v2277_v40  ;;  %v2279_v42 = vpop.f32.mrb[21].mxu0  ;;  %v5498_v36 = vld [vmem:[%s9978_s7] ss:$0 sm:$0xff] }
 0x31a   : > { %v6455_v42 = vpack.c.bf16 %v5511_v28, %v5510_v27  ;;  %v5535_v27 = vld [vmem:[%s9981_s10 + $0x128] sm:$0xff] }
 0x348   : > { %v2449_v44 = vpop.f32.mrb[22].mxu0 }
 0x349   : > { %v2453_v46 = vadd.f32 %v2449_v44, %v2350_v41  ;;  %v2451_v43 = vpop.f32.mrb[23].mxu0  ;;  %v6449_v41 = vpack.c.bf16 %v5506_v26, %v5505_v25  ;;  %v5507_v44 = vld [vmem:[%s9979_s8 + $0x50] sm:$0xff]  ;;  %v3143_v25 = vld [vmem:[%s9981_s10 + $0x68] sm:$0xff]  ;;  %v3145_v26 = vld [vmem:[%s9981_s10 + $0x78] sm:$0xff] }
 0x34a   : > { %v5512_v43 = vld [vmem:[%s9979_s8 + $0x70] sm:$0xff]  ;;  %v6478_v28 = vpack.c.bf16 %v3145_v26, %v3143_v25 }
 0x34b   : > { %v2461_v53 = vadd.f32 %v5478_v45, %v2453_v46  ;;  %v5508_v46 = vld [vmem:[%s9979_s8 + $0x58] sm:$0xff] }
 0x34c   : > { %v6452_v47 = vpack.c.bf16 %v5508_v46, %v5507_v44  ;;  %v5536_v44 = vld [vmem:[%s9981_s10 + $0x130] sm:$0xff]  ;;  %v3147_v46 = vld [vmem:[%s9981_s10 + $0x88] sm:$0xff] }
 0x34d   : > { %v2462_v0 = vmax.f32 %v2461_v53, 0.0  ;;  %v5513_v53 = vld [vmem:[%s9979_s8 + $0x78] sm:$0xff] }
 0x34e   : > { %v6458_v48 = vpack.c.bf16 %v5513_v53, %v5512_v43  ;;  %v3149_v43 = vld [vmem:[%s9981_s10 + $0x98] sm:$0xff]  ;;  %v5539_v53 = vld [vmem:[%s9981_s10 + $0x148] sm:$0xff] }
 0x34f   : > { %v2481_v50 = vrot.slane %v2462_v0, 1  ;;  %v2635_v1 = vrot.slane %v2462_v0, 2 }
 0x351   : > { %6037 = vmatmul.mubr.msk.f32.vlgmr.msra.gmra.mrb[30].mxu1 %vm2208_vm9, %v2481_v50 }
 0x352   : > { %6414 = vmatpush3.bf16.msra.mxu1 %v6413_v49  ;;  %6055 = vmatprep.mubr.msk.f32.mxu1 %vm7162_vm10, %v8126_v35  ;;  %v5516_v49 = vld [vmem:[%s9979_s8 + $0x88] sm:$0xff] }
 0x353   : > { %6415 = vmatprep.subr.bf16.mxu1 %v7161_v8 }
 0x356   : > { %6417 = vmatpush3.bf16.msra.mxu1 %v6416_v54  ;;  %v6464_v54 = vpack.c.bf16 %v5518_v52, %v5517_v51  ;;  %v5538_v52 = vld [vmem:[%s9981_s10 + $0x140] sm:$0xff] }
 0x357   : > { %6418 = vmatprep.subr.bf16.mxu1 %v7161_v8 }
 0x35a   : > { %6420 = vmatpush3.bf16.msra.mxu1 %v6419_v31  ;;  %v5523_v31 = vld [vmem:[%s9981_s10 + $0xc8] sm:$0xff] }
 0x35b   : > { %6421 = vmatprep.subr.bf16.mxu1 %v7161_v8  ;;  %v6490_v29 = vpack.c.bf16 %v5525_v37, %v5523_v31  ;;  %v3153_v31 = vld [vmem:[%s9981_s10 + $0xb8] sm:$0xff] }
 0x35c   : > { %v5545_v37 = vld [vmem:[%s9981_s10 + $0x178] sm:$0xff] }
 0x35e   : > { %6423 = vmatpush3.bf16.msra.mxu1 %v6422_v14  ;;  %v3130_v14 = vld [vmem:[%s9981_s10] sm:$0xff] }
 0x35f   : > { %6424 = vmatprep.subr.bf16.mxu1 %v7161_v8 }
 0x361   : > { %6056 = vmatmul.mubr.msk.f32.vlgmr.msra.gmra.mrb[32].mxu1 %vm2208_vm9, %v2462_v0  ;;  %v5515_v0 = vld [vmem:[%s9979_s8 + $0x80] sm:$0xff] }
 0x362   : > { %6426 = vmatpush3.bf16.msra.mxu1 %v6425_v56  ;;  %6074 = vmatprep.mubr.msk.f32.mxu1 %vm7162_vm10, %v8126_v35  ;;  %v6461_v50 = vpack.c.bf16 %v5516_v49, %v5515_v0  ;;  %v6468_v56 = vpack.c.bf16 %v3132_v55, %v3130_v14  ;;  %v3146_v0 = vld [vmem:[%s9981_s10 + $0x80] sm:$0xff]  ;;  %v3148_v49 = vld [vmem:[%s9981_s10 + $0x90] sm:$0xff]  ;;  %v6486_v14 = vpack.c.bf16 %v3153_v31, %v3151_v15  ;;  %v5556_v15 = vld [vmem:[%s9981_s10 + $0x1c8] sm:$0xff] }
 0x363   : > { %6427 = vmatprep.subr.bf16.mxu1 %v7161_v8  ;;  %v6484_v51 = vpack.c.bf16 %v3148_v49, %v3146_v0  ;;  %v5553_v0 = vld [vmem:[%s9981_s10 + $0x1b0] sm:$0xff]  ;;  %v5581_v31 = vld [vmem:[%s9981_s10 + $0x288] sm:$0xff] }
 0x366   : > { %6429 = vmatpush3.bf16.msra.mxu1 %v6428_v59  ;;  %v6492_v59 = vpack.c.bf16 %v5524_v58, %v5522_v57  ;;  %v5542_v57 = vld [vmem:[%s9981_s10 + $0x160] sm:$0xff] }
 0x367   : > { %6430 = vmatprep.subr.bf16.mxu1 %v7161_v8 }
 0x36a   : > { %6432 = vmatpush3.bf16.msra.mxu1 %v6431_v61  ;;  %v5527_v61 = vld [vmem:[%s9981_s10 + $0xe8] sm:$0xff] }
 0x36b   : > { %6433 = vmatprep.subr.bf16.mxu1 %v7161_v8  ;;  %v6494_v2 = vpack.c.bf16 %v5529_v63, %v5527_v61  ;;  %v5573_v63 = vld [vmem:[%s9981_s10 + $0x248] sm:$0xff] }
 0x36e   : > { %6435 = vmatpush3.bf16.msra.mxu1 %v6434_v32  ;;  %v3134_v32 = vld [vmem:[%s9981_s10 + $0x20] sm:$0xff] }
 0x36f   : > { %6442 = vmatprep.subr.bf16.mxu1 %v7161_v8 }
 0x371   : > { %6075 = vmatmul.mubr.msk.f32.vlgmr.msra.gmra.mrb[34].mxu1 %vm2208_vm9, %v2635_v1  ;;  %v3136_v1 = vld [vmem:[%s9981_s10 + $0x30] sm:$0xff]  ;;  %vm4027_vm9 = vcmask 782336  }
 0x372   : > { %6096 = vmatprep.mubr.msk.f32.mxu1 %vm7162_vm10, %v8126_v35  ;;  %6444 = vmatpush3.bf16.msra.mxu1 %v6443_v7  ;;  %v6472_v3 = vpack.c.bf16 %v3136_v1, %v3134_v32  ;;  %v3139_v7 = vld [vmem:[%s9981_s10 + $0x48] sm:$0xff]  ;;  %v5575_v32 = vld [vmem:[%s9981_s10 + $0x258] sm:$0xff] }
 0x373   : > { %6445 = vmatprep.subr.bf16.mxu1 %v7161_v8  ;;  %v6474_v11 = vpack.c.bf16 %v3141_v9, %v3139_v7  ;;  %v6538_v1 = vpack.c.bf16 %v5575_v32, %v5573_v63 }
 0x376   : > { %6447 = vmatpush3.bf16.msra.mxu1 %v6446_v16  ;;  %v3140_v16 = vld [vmem:[%s9981_s10 + $0x50] sm:$0xff] }
 0x377   : > { %6454 = vmatprep.subr.bf16.mxu1 %v7161_v8 }
 0x424   : > { %v2550_v17 = vpop.f32.mrb[30].mxu1 }
 0x425   : > { %v6038_v18 = vpop.f32.mrb[31].mxu1 }
 0x426   : > { %v6476_v18 = vpack.c.bf16 %v3140_v16, %v3138_v13 }
 0x434   : > { %v2622_v20 = vpop.f32.mrb[32].mxu1 }
 0x435   : > { %v2623_v22 = vadd.f32 %v2622_v20, %v2550_v17  ;;  %v6057_v24 = vpop.f32.mrb[33].mxu1  ;;  %v6498_v17 = vpack.c.bf16 %v5533_v12, %v5531_v10  ;;  %v5530_v20 = vld [vmem:[%s9981_s10 + $0x100] sm:$0xff] }
 0x444   : > { %v2704_v34 = vpop.f32.mrb[34].mxu1 }
 0x445   : > { %v2708_v38 = vadd.f32 %v2704_v34, %v2623_v22  ;;  %v6076_v40 = vpop.f32.mrb[35].mxu1  ;;  %v5532_v22 = vld [vmem:[%s9981_s10 + $0x110] sm:$0xff]  ;;  %v5537_v34 = vld [vmem:[%s9981_s10 + $0x138] sm:$0xff] }
 0x446   : > { %v6500_v24 = vpack.c.bf16 %v5532_v22, %v5530_v20  ;;  %v6502_v40 = vpack.c.bf16 %v5537_v34, %v5535_v27  ;;  %v5547_v34 = vld [vmem:[%s9981_s10 + $0x180] sm:$0xff] }
 0x447   : > { %v2716_v45 = vadd.f32 %v5498_v36, %v2708_v38  ;;  %v3142_v36 = vld [vmem:[%s9981_s10 + $0x60] sm:$0xff]  ;;  %v3144_v38 = vld [vmem:[%s9981_s10 + $0x70] sm:$0xff] }
 0x449   : > { %6086 = vmatmul.mubr.msk.f32.vlgmr.msra.gmra.mrb[24].mxu0 %vm2724_vm12, %v2716_v45  ;;  %6097 = vmatmul.mubr.msk.f32.vlgmr.msra.gmra.mrb[36].mxu1 %vm2724_vm12, %v2716_v45 }
 0x44a   : > { %6450 = vmatpush3.bf16.msra.mxu0 %v6449_v41  ;;  %6456 = vmatpush3.bf16.msra.mxu1 %v6455_v42  ;;  %v6480_v41 = vpack.c.bf16 %v3144_v38, %v3142_v36  ;;  %v5534_v42 = vld [vmem:[%s9981_s10 + $0x120] sm:$0xff]  ;;  %v5549_v36 = vld [vmem:[%s9981_s10 + $0x190] sm:$0xff] }
 0x44b   : > { %6451 = vmatprep.subr.bf16.mxu0 %v7161_v8  ;;  %6457 = vmatprep.subr.bf16.mxu1 %v7161_v8  ;;  %v5572_v38 = vld [vmem:[%s9981_s10 + $0x240] sm:$0xff] }
 0x44c   : > { %6107 = vmatprep.mubr.msk.f32.mxu0 %vm7162_vm10, %v8126_v35  ;;  %6118 = vmatprep.mubr.msk.f32.mxu1 %vm7162_vm10, %v8126_v35 }
 0x44e   : > { %6453 = vmatpush3.bf16.msra.mxu0 %v6452_v47  ;;  %6459 = vmatpush3.bf16.msra.mxu1 %v6458_v48  ;;  %v6482_v47 = vpack.c.bf16 %v3149_v43, %v3147_v46  ;;  %v5541_v48 = vld [vmem:[%s9981_s10 + $0x158] sm:$0xff] }
 0x44f   : > { %6460 = vmatprep.subr.bf16.mxu0 %v7161_v8  ;;  %6467 = vmatprep.subr.bf16.mxu1 %v6466_v33  ;;  %v5543_v33 = vld [vmem:[%s9981_s10 + $0x168] sm:$0xff]  ;;  %v5579_v46 = vld [vmem:[%s9981_s10 + $0x278] sm:$0xff] }
 0x450   : > { %v6510_v55 = vpack.c.bf16 %v5545_v37, %v5543_v33  ;;  %v5583_v33 = vld [vmem:[%s9981_s10 + $0x298] sm:$0xff] }
 0x451   : > { %6108 = vmatmul.mubr.msk.f32.vlgmr.msra.gmra.mrb[26].mxu0 %vm2724_vm12, %v2716_v45  ;;  %6119 = vmatmul.mubr.msk.f32.vlgmr.msra.gmra.mrb[38].mxu1 %vm2724_vm12, %v2716_v45 }
 0x452   : > { %6462 = vmatpush3.bf16.msra.mxu0 %v6461_v50  ;;  %6129 = vmatprep.mubr.msk.f32.mxu0 %vm7162_vm10, %v8126_v35  ;;  %v6506_v50 = vpack.c.bf16 %v5541_v48, %v5539_v53  ;;  %v6516_v53 = vpack.c.bf16 %v5549_v36, %v5547_v34  ;;  %v5551_v48 = vld [vmem:[%s9981_s10 + $0x1a0] sm:$0xff]  ;;  %vm4155_vm10 = vcmask 179200  }
 0x453   : > { %6463 = vmatprep.subr.bf16.mxu0 %v7161_v8  ;;  %3221 = vmatprep.mubr.f32.mxu1 %v8126_v35  ;;  %v6520_v37 = vpack.c.bf16 %v5553_v0, %v5551_v48 }
 0x454   : > { %6469 = vmatpush1.bf16.msra.mxu1 %v6468_v56  ;;  %v3152_v56 = vld [vmem:[%s9981_s10 + $0xb0] sm:$0xff] }
 0x455   : > { %6471 = vmatprep.subr.bf16.mxu1 %v6470_v62  ;;  %v6514_v62 = vpack.c.bf16 %v5550_v60, %v5548_v39  ;;  %v5560_v39 = vld [vmem:[%s9981_s10 + $0x1e8] sm:$0xff]  ;;  %v5562_v60 = vld [vmem:[%s9981_s10 + $0x1f8] sm:$0xff] }
 0x456   : > { %6465 = vmatpush3.bf16.msra.mxu0 %v6464_v54  ;;  %v5540_v54 = vld [vmem:[%s9981_s10 + $0x150] sm:$0xff] }
 0x457   : > { %6491 = vmatprep.subr.bf16.mxu0 %v6490_v29  ;;  %v6508_v30 = vpack.c.bf16 %v5540_v54, %v5538_v52  ;;  %v3150_v29 = vld [vmem:[%s9981_s10 + $0xa0] sm:$0xff]  ;;  %v5578_v54 = vld [vmem:[%s9981_s10 + $0x270] sm:$0xff] }
 0x458   : > { %6473 = vmatpush1.bf16.msra.mxu1 %v6472_v3  ;;  %v6488_v58 = vpack.c.bf16 %v3152_v56, %v3150_v29  ;;  %v5576_v52 = vld [vmem:[%s9981_s10 + $0x260] sm:$0xff]  ;;  %v5557_v29 = vld [vmem:[%s9981_s10 + $0x1d0] sm:$0xff] }
 0x459   : > { %6130 = vmatmul.mubr.msk.f32.vlgmr.msra.gmra.mrb[28].mxu0 %vm2724_vm12, %v2716_v45  ;;  %6475 = vmatprep.subr.bf16.mxu1 %v6474_v11  ;;  %v6504_v45 = vpack.c.bf16 %v5536_v44, %v5534_v42  ;;  %v5554_v42 = vld [vmem:[%s9981_s10 + $0x1b8] sm:$0xff] }
 0x45a   : > { %3323 = vmatprep.mubr.f32.mxu0 %v8126_v35  ;;  %6493 = vmatpush1.bf16.msra.mxu0 %v6492_v59  ;;  %v5544_v59 = vld [vmem:[%s9981_s10 + $0x170] sm:$0xff] }
 0x45b   : > { %6495 = vmatprep.subr.bf16.mxu0 %v6494_v2  ;;  %v6512_v61 = vpack.c.bf16 %v5544_v59, %v5542_v57  ;;  %v2719_v2 = vld [vmem:[#allocation2] sm:$0x3]  ;;  %v6546_v57 = vpack.c.bf16 %v5583_v33, %v5581_v31  ;;  %v5582_v59 = vld [vmem:[%s9981_s10 + $0x290] sm:$0xff]  ;;  %v5602_v31 = vld [vmem:[%s9981_s10 + $0x328] sm:$0xff] }
 0x45c   : > { %6477 = vmatpush1.bf16.msra.mxu1 %v6476_v18  ;;  %v5604_v33 = vld [vmem:[%s9981_s10 + $0x338] sm:$0xff] }
 0x45d   : > { %6479 = vmatprep.subr.bf16.mxu1 %v6478_v28  ;;  %v5520_v28 = vld [vmem:[%s9980_s9] ss:$0 sm:$0xff] }
 0x45e   : > { %6497 = vmatpush1.bf16.msra.mxu0 %v6496_v6 }
 0x45f   : > { %6499 = vmatprep.subr.bf16.mxu0 %v6498_v17 }
 0x460   : > { %6481 = vmatpush1.bf16.msra.mxu1 %v6480_v41  ;;  %v5552_v41 = vld [vmem:[%s9981_s10 + $0x1a8] sm:$0xff] }
 0x461   : > { %6483 = vmatprep.subr.bf16.mxu1 %v6482_v47 }
 0x462   : > { %6501 = vmatpush1.bf16.msra.mxu0 %v6500_v24 }
 0x463   : > { %6503 = vmatprep.subr.bf16.mxu0 %v6502_v40  ;;  %v5574_v40 = vld [vmem:[%s9981_s10 + $0x250] sm:$0xff] }
 0x464   : > { %6485 = vmatpush1.bf16.msra.mxu1 %v6484_v51  ;;  %v6540_v47 = vpack.c.bf16 %v5574_v40, %v5572_v38  ;;  %v5567_v38 = vld [vmem:[%s9981_s10 + $0x220] sm:$0xff]  ;;  %v5569_v40 = vld [vmem:[%s9981_s10 + $0x230] sm:$0xff] }
 0x465   : > { %6487 = vmatprep.subr.bf16.mxu1 %v6486_v14  ;;  %v6544_v14 = vpack.c.bf16 %v5578_v54, %v5576_v52  ;;  %v6536_v48 = vpack.c.bf16 %v5569_v40, %v5567_v38 }
 0x466   : > { %6505 = vmatpush1.bf16.msra.mxu0 %v6504_v45  ;;  %v5577_v45 = vld [vmem:[%s9981_s10 + $0x268] sm:$0xff] }
 0x467   : > { %6507 = vmatprep.subr.bf16.mxu0 %v6506_v50  ;;  %v6518_v50 = vpack.c.bf16 %v5554_v42, %v5552_v41  ;;  %v6542_v51 = vpack.c.bf16 %v5579_v46, %v5577_v45  ;;  %v5594_v45 = vld [vmem:[%s9981_s10 + $0x2f0] sm:$0xff]  ;;  %v5598_v46 = vld [vmem:[%s9981_s10 + $0x308] sm:$0xff] }
 0x468   : > { %6489 = vmatpush1.bf16.msra.mxu1 %v6488_v58  ;;  %v5580_v58 = vld [vmem:[%s9981_s10 + $0x280] sm:$0xff] }
 0x469   : > { %6515 = vmatprep.subr.bf16.mxu1 %v6514_v62  ;;  %v5587_v62 = vld [vmem:[%s9981_s10 + $0x2b8] sm:$0xff]  ;;  %v6548_v32 = vpack.c.bf16 %v5582_v59, %v5580_v58  ;;  %v6566_v58 = vpack.c.bf16 %v5604_v33, %v5602_v31  ;;  %v5642_v31 = vld [vmem:[%s9981_s10 + $0x460] sm:$0xff]  ;;  %v5644_v33 = vld [vmem:[%s9981_s10 + $0x470] sm:$0xff] }
 0x46a   : > { %6509 = vmatpush1.bf16.msra.mxu0 %v6508_v30  ;;  %v5558_v30 = vld [vmem:[%s9981_s10 + $0x1d8] sm:$0xff] }
 0x46b   : > { %6511 = vmatprep.subr.bf16.mxu0 %v6510_v55  ;;  %v5555_v55 = vld [vmem:[%s9981_s10 + $0x1c0] sm:$0xff]  ;;  %v6522_v56 = vpack.c.bf16 %v5558_v30, %v5556_v15  ;;  %v5624_v30 = vld [vmem:[%s9981_s10 + $0x3d0] sm:$0xff] }
 0x46c   : > { %v6524_v63 = vpack.c.bf16 %v5557_v29, %v5555_v55  ;;  %v5622_v15 = vld [vmem:[%s9981_s10 + $0x3c0] sm:$0xff] }
 0x46d   : > { %v6588_v29 = vpack.c.bf16 %v5624_v30, %v5622_v15 }
 0x46e   : > { %6513 = vmatpush1.bf16.msra.mxu0 %v6512_v61  ;;  %v5585_v61 = vld [vmem:[%s9981_s10 + $0x2a8] sm:$0xff] }
 0x46f   : > { %6539 = vmatprep.subr.bf16.mxu0 %v6538_v1  ;;  %v5559_v1 = vld [vmem:[%s9981_s10 + $0x1e0] sm:$0xff] }
 0x51c   : > { %v2794_v3 = vpop.f32.mrb[24].mxu0  ;;  %v2873_v4 = vpop.f32.mrb[36].mxu1 }
 0x51d   : > { %v2798_v5 = vadd.f32 %v2794_v3, %v2719_v2  ;;  %v6087_v6 = vpop.f32.mrb[25].mxu0  ;;  %v6098_v7 = vpop.f32.mrb[37].mxu1  ;;  %v5561_v2 = vld [vmem:[%s9981_s10 + $0x1f0] sm:$0xff]  ;;  %v6526_v3 = vpack.c.bf16 %v5562_v60, %v5560_v39  ;;  %v5626_v39 = vld [vmem:[%s9981_s10 + $0x3e0] sm:$0xff] }
 0x51e   : > { %v5586_v6 = vld [vmem:[%s9981_s10 + $0x2b0] sm:$0xff]  ;;  %v5564_v7 = vld [vmem:[%s9981_s10 + $0x208] sm:$0xff] }
 0x51f   : > { %2800 = vst.msk [vmem:[#allocation2] sm:$0x3] %vm2799_vm14, %v2798_v5  ;;  %v5584_v5 = vld [vmem:[%s9981_s10 + $0x2a0] sm:$0xff]  ;;  %v5628_v60 = vld [vmem:[%s9981_s10 + $0x3f0] sm:$0xff] }
 0x524   : > { %v2951_v9 = vpop.f32.mrb[26].mxu0  ;;  %v3029_v10 = vpop.f32.mrb[38].mxu1 }
 0x525   : > { %v6109_v11 = vpop.f32.mrb[27].mxu0  ;;  %v6120_v12 = vpop.f32.mrb[39].mxu1 }
 0x526   : > { %v2801_v13 = vld [vmem:[#allocation2 + $0x1] sm:$0x3]  ;;  %v5591_v11 = vld [vmem:[%s9981_s10 + $0x2d8] sm:$0xff]  ;;  %v6528_v12 = vpack.c.bf16 %v5561_v2, %v5559_v1  ;;  %v6592_v2 = vpack.c.bf16 %v5628_v60, %v5626_v39 }
 0x527   : > { %v2877_v16 = vadd.f32 %v2873_v4, %v2801_v13  ;;  %v6550_v4 = vpack.c.bf16 %v5587_v62, %v5585_v61  ;;  %v6552_v13 = vpack.c.bf16 %v5586_v6, %v5584_v5  ;;  %v5606_v61 = vld [vmem:[%s9981_s10 + $0x348] sm:$0xff]  ;;  %v5608_v62 = vld [vmem:[%s9981_s10 + $0x358] sm:$0xff] }
 0x528   : > { %v6570_v5 = vpack.c.bf16 %v5608_v62, %v5606_v61  ;;  %v5672_v61 = vld [vmem:[%s9981_s10 + $0x540] sm:$0xff]  ;;  %v5674_v62 = vld [vmem:[%s9981_s10 + $0x550] sm:$0xff] }
 0x529   : > { %2878 = vst.msk [vmem:[#allocation2 + $0x1] sm:$0x3] %vm2799_vm14, %v2877_v16  ;;  %v5563_v16 = vld [vmem:[%s9981_s10 + $0x200] sm:$0xff] }
 0x52c   : > { %v3107_v17 = vpop.f32.mrb[28].mxu0 }
 0x52d   : > { %v6131_v18 = vpop.f32.mrb[29].mxu0 }
 0x530   : > { %v2879_v20 = vld [vmem:[#allocation2 + $0x2] sm:$0x3] }
 0x531   : > { %v2955_v22 = vadd.f32 %v2951_v9, %v2879_v20  ;;  %v5566_v9 = vld [vmem:[%s9981_s10 + $0x218] sm:$0xff] }
 0x532   : > { %v6530_v18 = vpack.c.bf16 %v5566_v9, %v5564_v7  ;;  %v5630_v7 = vld [vmem:[%s9981_s10 + $0x400] sm:$0xff]  ;;  %v5632_v9 = vld [vmem:[%s9981_s10 + $0x410] sm:$0xff] }
 0x533   : > { %2956 = vst.msk [vmem:[#allocation2 + $0x2] sm:$0x3] %vm2799_vm14, %v2955_v22  ;;  %v5588_v22 = vld [vmem:[%s9981_s10 + $0x2c0] sm:$0xff] }
 0x53a   : > { %v2957_v24 = vld [vmem:[#allocation2 + $0x3] sm:$0x3] }
 0x53b   : > { %v3033_v25 = vadd.f32 %v3029_v10, %v2957_v24  ;;  %v5589_v10 = vld [vmem:[%s9981_s10 + $0x2c8] sm:$0xff]  ;;  %v5590_v24 = vld [vmem:[%s9981_s10 + $0x2d0] sm:$0xff] }
 0x53c   : > { %v6554_v20 = vpack.c.bf16 %v5591_v11, %v5589_v10  ;;  %v6556_v36 = vpack.c.bf16 %v5590_v24, %v5588_v22  ;;  %v5610_v10 = vld [vmem:[%s9981_s10 + $0x368] sm:$0xff]  ;;  %v5612_v11 = vld [vmem:[%s9981_s10 + $0x378] sm:$0xff] }
 0x53d   : > { %3034 = vst.msk [vmem:[#allocation2 + $0x3] sm:$0x3] %vm2799_vm14, %v3033_v25  ;;  %v5568_v25 = vld [vmem:[%s9981_s10 + $0x228] sm:$0xff]  ;;  %v6574_v22 = vpack.c.bf16 %v5612_v11, %v5610_v10  ;;  %v5676_v10 = vld [vmem:[%s9981_s10 + $0x560] sm:$0xff]  ;;  %v5678_v11 = vld [vmem:[%s9981_s10 + $0x570] sm:$0xff] }
 0x544   : > { %v3035_v26 = vld [vmem:[#allocation2 + $0x4] sm:$0x3] }
 0x545   : > { %v3111_v27 = vadd.f32 %v3107_v17, %v3035_v26  ;;  %v5565_v17 = vld [vmem:[%s9981_s10 + $0x210] sm:$0xff]  ;;  %v5570_v26 = vld [vmem:[%s9981_s10 + $0x238] sm:$0xff] }
 0x546   : > { %v6532_v34 = vpack.c.bf16 %v5565_v17, %v5563_v16  ;;  %v6534_v41 = vpack.c.bf16 %v5570_v26, %v5568_v25  ;;  %v6596_v17 = vpack.c.bf16 %v5632_v9, %v5630_v7  ;;  %v5634_v25 = vld [vmem:[%s9981_s10 + $0x420] sm:$0xff]  ;;  %v5636_v26 = vld [vmem:[%s9981_s10 + $0x430] sm:$0xff] }
 0x547   : > { %3112 = vst.msk [vmem:[#allocation2 + $0x4] sm:$0x3] %vm2799_vm14, %v3111_v27  ;;  %v5593_v27 = vld [vmem:[%s9981_s10 + $0x2e8] sm:$0xff]  ;;  %v6600_v40 = vpack.c.bf16 %v5636_v26, %v5634_v25 }
 0x54e   : > { %v3113_v44 = vld [vmem:[#allocation2] sm:$0x3f] }
 0x54f   : > { %v3121_v43 = vadd.f32 %v5520_v28, %v3113_v44  ;;  %v5595_v28 = vld [vmem:[%s9981_s10 + $0x2f8] sm:$0xff]  ;;  %v5592_v44 = vld [vmem:[%s9981_s10 + $0x2e0] sm:$0xff] }
 0x550   : > { %v6558_v42 = vpack.c.bf16 %v5595_v28, %v5593_v27  ;;  %v6560_v0 = vpack.c.bf16 %v5594_v45, %v5592_v44  ;;  %v5614_v27 = vld [vmem:[%s9981_s10 + $0x388] sm:$0xff]  ;;  %v5616_v28 = vld [vmem:[%s9981_s10 + $0x398] sm:$0xff] }
 0x551   : > { %v8484_v49 = vmax.f32 %v3121_v43, 0.0  ;;  %v5600_v43 = vld [vmem:[%s9981_s10 + $0x318] sm:$0xff]  ;;  %v6578_v44 = vpack.c.bf16 %v5616_v28, %v5614_v27  ;;  %v5680_v27 = vld [vmem:[%s9981_s10 + $0x580] sm:$0xff]  ;;  %v5682_v28 = vld [vmem:[%s9981_s10 + $0x590] sm:$0xff] }
 0x552   : > { %v6562_v52 = vpack.c.bf16 %v5600_v43, %v5598_v46  ;;  %v5638_v46 = vld [vmem:[%s9981_s10 + $0x440] sm:$0xff]  ;;  %v5640_v43 = vld [vmem:[%s9981_s10 + $0x450] sm:$0xff] }
 0x553   : > { %5521 = vmatmul.mubr.msk.f32.vlgmr.msra.gmra.mrb[40].mxu1 %vm3124_vm13, %v8484_v49  ;;  %5546 = vmatmul.mubr.msk.f32.vlgmr.msra.gmra.mrb[30].mxu0 %vm3124_vm13, %v8484_v49 }
 0x554   : > { %6517 = vmatpush1.bf16.msra.mxu1 %v6516_v53  ;;  %6541 = vmatpush1.bf16.msra.mxu0 %v6540_v47  ;;  %v5623_v53 = vld [vmem:[%s9981_s10 + $0x3c8] sm:$0xff]  ;;  %v5625_v47 = vld [vmem:[%s9981_s10 + $0x3d8] sm:$0xff] }
 0x555   : > { %6519 = vmatprep.subr.bf16.mxu1 %v6518_v50  ;;  %6543 = vmatprep.subr.bf16.mxu0 %v6542_v51  ;;  %v5597_v50 = vld [vmem:[%s9981_s10 + $0x300] sm:$0xff]  ;;  %v5599_v51 = vld [vmem:[%s9981_s10 + $0x310] sm:$0xff]  ;;  %v6586_v54 = vpack.c.bf16 %v5625_v47, %v5623_v53  ;;  %v5618_v53 = vld [vmem:[%s9981_s10 + $0x3a8] sm:$0xff] }
 0x556   : > { %3432 = vmatprep.mubr.f32.mxu1 %v8126_v35  ;;  %3543 = vmatprep.mubr.f32.mxu0 %v8126_v35  ;;  %v6564_v55 = vpack.c.bf16 %v5599_v51, %v5597_v50  ;;  %v5620_v47 = vld [vmem:[%s9981_s10 + $0x3b8] sm:$0xff]  ;;  %v6604_v51 = vpack.c.bf16 %v5640_v43, %v5638_v46 }
 0x557   : > { %v6582_v15 = vpack.c.bf16 %v5620_v47, %v5618_v53  ;;  %v5686_v53 = vld [vmem:[%s9981_s10 + $0x5b0] sm:$0xff]  ;;  %v5664_v47 = vld [vmem:[%s9981_s10 + $0x508] sm:$0xff] }
 0x558   : > { %6521 = vmatpush1.bf16.msra.mxu1 %v6520_v37  ;;  %6545 = vmatpush1.bf16.msra.mxu0 %v6544_v14  ;;  %v5627_v37 = vld [vmem:[%s9981_s10 + $0x3e8] sm:$0xff]  ;;  %v5629_v14 = vld [vmem:[%s9981_s10 + $0x3f8] sm:$0xff] }
 0x559   : > { %6523 = vmatprep.subr.bf16.mxu1 %v6522_v56  ;;  %6547 = vmatprep.subr.bf16.mxu0 %v6546_v57  ;;  %v5601_v56 = vld [vmem:[%s9981_s10 + $0x320] sm:$0xff]  ;;  %v5603_v57 = vld [vmem:[%s9981_s10 + $0x330] sm:$0xff]  ;;  %v6590_v59 = vpack.c.bf16 %v5629_v14, %v5627_v37  ;;  %v5648_v37 = vld [vmem:[%s9981_s10 + $0x488] sm:$0xff] }
 0x55a   : > { %v6568_v1 = vpack.c.bf16 %v5603_v57, %v5601_v56  ;;  %v5650_v14 = vld [vmem:[%s9981_s10 + $0x498] sm:$0xff]  ;;  %v6608_v57 = vpack.c.bf16 %v5644_v33, %v5642_v31  ;;  %v5688_v33 = vld [vmem:[%s9981_s10 + $0x5c0] sm:$0xff] }
 0x55b   : > { %v6610_v39 = vpack.c.bf16 %v5650_v14, %v5648_v37  ;;  %v5690_v37 = vld [vmem:[%s9981_s10 + $0x5d0] sm:$0xff]  ;;  %v5668_v14 = vld [vmem:[%s9981_s10 + $0x528] sm:$0xff] }
 0x55c   : > { %6525 = vmatpush1.bf16.msra.mxu1 %v6524_v63  ;;  %6549 = vmatpush1.bf16.msra.mxu0 %v6548_v32  ;;  %v5631_v63 = vld [vmem:[%s9981_s10 + $0x408] sm:$0xff]  ;;  %v5633_v32 = vld [vmem:[%s9981_s10 + $0x418] sm:$0xff] }
 0x55d   : > { %6527 = vmatprep.subr.bf16.mxu1 %v6526_v3  ;;  %6551 = vmatprep.subr.bf16.mxu0 %v6550_v4  ;;  %v5605_v3 = vld [vmem:[%s9981_s10 + $0x340] sm:$0xff]  ;;  %v5607_v4 = vld [vmem:[%s9981_s10 + $0x350] sm:$0xff]  ;;  %v6594_v6 = vpack.c.bf16 %v5633_v32, %v5631_v63  ;;  %v5652_v63 = vld [vmem:[%s9981_s10 + $0x4a8] sm:$0xff] }
 0x55e   : > { %v6572_v16 = vpack.c.bf16 %v5607_v4, %v5605_v3  ;;  %v5654_v32 = vld [vmem:[%s9981_s10 + $0x4b8] sm:$0xff]  ;;  %v6636_v4 = vpack.c.bf16 %v5674_v62, %v5672_v61  ;;  %v5669_v61 = vld [vmem:[%s9981_s10 + $0x530] sm:$0xff]  ;;  %v5692_v62 = vld [vmem:[%s9981_s10 + $0x5e0] sm:$0xff] }
 0x55f   : > { %v6614_v7 = vpack.c.bf16 %v5654_v32, %v5652_v63  ;;  %v5694_v63 = vld [vmem:[%s9981_s10 + $0x5f0] sm:$0xff]  ;;  %v5698_v32 = vld [vmem:[%s9981_s10 + $0x608] sm:$0xff] }
 0x560   : > { %6529 = vmatpush1.bf16.msra.mxu1 %v6528_v12  ;;  %6553 = vmatpush1.bf16.msra.mxu0 %v6552_v13  ;;  %v5635_v12 = vld [vmem:[%s9981_s10 + $0x428] sm:$0xff]  ;;  %v5637_v13 = vld [vmem:[%s9981_s10 + $0x438] sm:$0xff] }
 0x561   : > { %6531 = vmatprep.subr.bf16.mxu1 %v6530_v18  ;;  %6555 = vmatprep.subr.bf16.mxu0 %v6554_v20  ;;  %v5609_v18 = vld [vmem:[%s9981_s10 + $0x360] sm:$0xff]  ;;  %v5611_v20 = vld [vmem:[%s9981_s10 + $0x370] sm:$0xff]  ;;  %v6598_v24 = vpack.c.bf16 %v5637_v13, %v5635_v12  ;;  %v5656_v12 = vld [vmem:[%s9981_s10 + $0x4c8] sm:$0xff] }
 0x562   : > { %v6576_v38 = vpack.c.bf16 %v5611_v20, %v5609_v18  ;;  %v5658_v13 = vld [vmem:[%s9981_s10 + $0x4d8] sm:$0xff]  ;;  %v6640_v20 = vpack.c.bf16 %v5678_v11, %v5676_v10 }
 0x563   : > { %v6618_v25 = vpack.c.bf16 %v5658_v13, %v5656_v12  ;;  %v5701_v12 = vld [vmem:[%s9981_s10 + $0x620] sm:$0xff]  ;;  %v5703_v13 = vld [vmem:[%s9981_s10 + $0x630] sm:$0xff] }
 0x564   : > { %6533 = vmatpush1.bf16.msra.mxu1 %v6532_v34  ;;  %6557 = vmatpush1.bf16.msra.mxu0 %v6556_v36  ;;  %v5639_v34 = vld [vmem:[%s9981_s10 + $0x448] sm:$0xff]  ;;  %v5641_v36 = vld [vmem:[%s9981_s10 + $0x458] sm:$0xff] }
 0x565   : > { %6535 = vmatprep.subr.bf16.mxu1 %v6534_v41  ;;  %6559 = vmatprep.subr.bf16.mxu0 %v6558_v42  ;;  %v5613_v41 = vld [vmem:[%s9981_s10 + $0x380] sm:$0xff]  ;;  %v5615_v42 = vld [vmem:[%s9981_s10 + $0x390] sm:$0xff]  ;;  %v6602_v45 = vpack.c.bf16 %v5641_v36, %v5639_v34  ;;  %v5660_v34 = vld [vmem:[%s9981_s10 + $0x4e8] sm:$0xff] }
 0x566   : > { %v6580_v50 = vpack.c.bf16 %v5615_v42, %v5613_v41  ;;  %v5662_v36 = vld [vmem:[%s9981_s10 + $0x4f8] sm:$0xff]  ;;  %v6644_v42 = vpack.c.bf16 %v5682_v28, %v5680_v27 }
 0x567   : > { %v6622_v46 = vpack.c.bf16 %v5662_v36, %v5660_v34  ;;  %v5712_v27 = vld [vmem:[%s9981_s10 + $0x678] sm:$0xff]  ;;  %v5709_v36 = vld [vmem:[%s9981_s10 + $0x660] sm:$0xff] }
 0x568   : > { %6537 = vmatpush1.bf16.msra.mxu1 %v6536_v48  ;;  %6561 = vmatpush1.bf16.msra.mxu0 %v6560_v0  ;;  %v5643_v48 = vld [vmem:[%s9981_s10 + $0x468] sm:$0xff]  ;;  %v5645_v0 = vld [vmem:[%s9981_s10 + $0x478] sm:$0xff] }
 0x569   : > { %6563 = vmatprep.subr.bf16.mxu1 %v6562_v52  ;;  %6587 = vmatprep.subr.bf16.mxu0 %v6586_v54  ;;  %v5617_v52 = vld [vmem:[%s9981_s10 + $0x3a0] sm:$0xff]  ;;  %v5619_v54 = vld [vmem:[%s9981_s10 + $0x3b0] sm:$0xff]  ;;  %v6606_v30 = vpack.c.bf16 %v5645_v0, %v5643_v48  ;;  %v5666_v48 = vld [vmem:[%s9981_s10 + $0x518] sm:$0xff] }
 0x56a   : > { %v6584_v56 = vpack.c.bf16 %v5619_v54, %v5617_v52  ;;  %v5689_v0 = vld [vmem:[%s9981_s10 + $0x5c8] sm:$0xff]  ;;  %v5663_v54 = vld [vmem:[%s9981_s10 + $0x500] sm:$0xff] }
 0x56b   : > { %5571 = vmatmul.mubr.msk.f32.vlgmr.msra.gmra.mrb[42].mxu1 %vm3124_vm13, %v8484_v49  ;;  %5596 = vmatmul.mubr.msk.f32.vlgmr.msra.gmra.mrb[32].mxu0 %vm3124_vm13, %v8484_v49 }
 0x56c   : > { %6565 = vmatpush1.bf16.msra.mxu1 %v6564_v55  ;;  %6589 = vmatpush1.bf16.msra.mxu0 %v6588_v29  ;;  %v5673_v55 = vld [vmem:[%s9981_s10 + $0x548] sm:$0xff]  ;;  %v5675_v29 = vld [vmem:[%s9981_s10 + $0x558] sm:$0xff] }
 0x56d   : > { %6567 = vmatprep.subr.bf16.mxu1 %v6566_v58  ;;  %6591 = vmatprep.subr.bf16.mxu0 %v6590_v59  ;;  %v5647_v58 = vld [vmem:[%s9981_s10 + $0x480] sm:$0xff]  ;;  %v5649_v59 = vld [vmem:[%s9981_s10 + $0x490] sm:$0xff]  ;;  %v6634_v60 = vpack.c.bf16 %v5675_v29, %v5673_v55  ;;  %v5670_v55 = vld [vmem:[%s9981_s10 + $0x538] sm:$0xff] }
 0x56e   : > { %3659 = vmatprep.mubr.f32.mxu1 %v8126_v35  ;;  %3774 = vmatprep.mubr.f32.mxu0 %v8126_v35  ;;  %v6612_v3 = vpack.c.bf16 %v5649_v59, %v5647_v58  ;;  %v5693_v29 = vld [vmem:[%s9981_s10 + $0x5e8] sm:$0xff]  ;;  %v6652_v58 = vpack.c.bf16 %v5690_v37, %v5688_v33  ;;  %v5667_v59 = vld [vmem:[%s9981_s10 + $0x520] sm:$0xff]  ;;  %v4165_v33 = vld [vmem:[%s9983_s12 + $0x18] sm:$0xff] }
 0x56f   : > { %v5726_v37 = vld [vmem:[%s9983_s12 + $0xf0] sm:$0xff] }
 0x570   : > { %6569 = vmatpush1.bf16.msra.mxu1 %v6568_v1  ;;  %6593 = vmatpush1.bf16.msra.mxu0 %v6592_v2  ;;  %v5677_v1 = vld [vmem:[%s9981_s10 + $0x568] sm:$0xff]  ;;  %v5679_v2 = vld [vmem:[%s9981_s10 + $0x578] sm:$0xff] }
 0x571   : > { %6571 = vmatprep.subr.bf16.mxu1 %v6570_v5  ;;  %6595 = vmatprep.subr.bf16.mxu0 %v6594_v6  ;;  %v5651_v5 = vld [vmem:[%s9981_s10 + $0x4a0] sm:$0xff]  ;;  %v5653_v6 = vld [vmem:[%s9981_s10 + $0x4b0] sm:$0xff]  ;;  %v6638_v9 = vpack.c.bf16 %v5679_v2, %v5677_v1  ;;  %v5700_v1 = vld [vmem:[%s9981_s10 + $0x618] sm:$0xff]  ;;  %v6632_v2 = vpack.c.bf16 %v5669_v61, %v5667_v59 }
 0x572   : > { %v6616_v18 = vpack.c.bf16 %v5653_v6, %v5651_v5  ;;  %v5697_v5 = vld [vmem:[%s9981_s10 + $0x600] sm:$0xff]  ;;  %v5699_v6 = vld [vmem:[%s9981_s10 + $0x610] sm:$0xff] }
 0x573   : > { %v6660_v10 = vpack.c.bf16 %v5699_v6, %v5697_v5  ;;  %v4168_v61 = vld [vmem:[%s9983_s12 + $0x30] sm:$0xff]  ;;  %v5732_v5 = vld [vmem:[%s9983_s12 + $0x120] sm:$0xff] }
 0x574   : > { %6573 = vmatpush1.bf16.msra.mxu1 %v6572_v16  ;;  %6597 = vmatpush1.bf16.msra.mxu0 %v6596_v17  ;;  %v5681_v16 = vld [vmem:[%s9981_s10 + $0x588] sm:$0xff]  ;;  %v5683_v17 = vld [vmem:[%s9981_s10 + $0x598] sm:$0xff] }
 0x575   : > { %6575 = vmatprep.subr.bf16.mxu1 %v6574_v22  ;;  %6599 = vmatprep.subr.bf16.mxu0 %v6598_v24  ;;  %v5655_v22 = vld [vmem:[%s9981_s10 + $0x4c0] sm:$0xff]  ;;  %v5657_v24 = vld [vmem:[%s9981_s10 + $0x4d0] sm:$0xff]  ;;  %v6642_v26 = vpack.c.bf16 %v5683_v17, %v5681_v16  ;;  %v5706_v16 = vld [vmem:[%s9981_s10 + $0x648] sm:$0xff] }
 0x576   : > { %v6620_v41 = vpack.c.bf16 %v5657_v24, %v5655_v22  ;;  %v5708_v17 = vld [vmem:[%s9981_s10 + $0x658] sm:$0xff]  ;;  %v5705_v24 = vld [vmem:[%s9981_s10 + $0x640] sm:$0xff] }
 0x577   : > { %v6666_v22 = vpack.c.bf16 %v5708_v17, %v5706_v16  ;;  %v5735_v16 = vld [vmem:[%s9983_s12 + $0x138] sm:$0xff] }
 0x578   : > { %6577 = vmatpush1.bf16.msra.mxu1 %v6576_v38  ;;  %6601 = vmatpush1.bf16.msra.mxu0 %v6600_v40  ;;  %v5685_v38 = vld [vmem:[%s9981_s10 + $0x5a8] sm:$0xff]  ;;  %v5687_v40 = vld [vmem:[%s9981_s10 + $0x5b8] sm:$0xff] }
 0x579   : > { %6579 = vmatprep.subr.bf16.mxu1 %v6578_v44  ;;  %6603 = vmatprep.subr.bf16.mxu0 %v6602_v45  ;;  %v5659_v44 = vld [vmem:[%s9981_s10 + $0x4e0] sm:$0xff]  ;;  %v5661_v45 = vld [vmem:[%s9981_s10 + $0x4f0] sm:$0xff]  ;;  %v6646_v43 = vpack.c.bf16 %v5687_v40, %v5685_v38  ;;  %v5714_v40 = vld [vmem:[%s9981_s10 + $0x688] sm:$0xff] }
 0x57a   : > { %v5711_v38 = vld [vmem:[%s9981_s10 + $0x670] sm:$0xff] }
 0x57c   : > { %6581 = vmatpush1.bf16.msra.mxu1 %v6580_v50  ;;  %6605 = vmatpush1.bf16.msra.mxu0 %v6604_v51  ;;  %v5691_v50 = vld [vmem:[%s9981_s10 + $0x5d8] sm:$0xff]  ;;  %v6624_v51 = vpack.c.bf16 %v5661_v45, %v5659_v44  ;;  %v5713_v45 = vld [vmem:[%s9981_s10 + $0x680] sm:$0xff] }
 0x57d   : > { %6583 = vmatprep.subr.bf16.mxu1 %v6582_v15  ;;  %6607 = vmatprep.subr.bf16.mxu0 %v6606_v30  ;;  %v5665_v15 = vld [vmem:[%s9981_s10 + $0x510] sm:$0xff]  ;;  %v6626_v30 = vpack.c.bf16 %v5666_v48, %v5664_v47  ;;  %v6650_v31 = vpack.c.bf16 %v5691_v50, %v5689_v0  ;;  %v5717_v48 = vld [vmem:[%s9981_s10 + $0x6a0] sm:$0xff] }
 0x57e   : > { %v5719_v0 = vld [vmem:[%s9981_s10 + $0x6b0] sm:$0xff] }
 0x57f   : > { %v6680_v50 = vpack.c.bf16 %v5719_v0, %v5717_v48  ;;  %v5742_v48 = vld [vmem:[%s9983_s12 + $0x170] sm:$0xff] }
 0x580   : > { %6585 = vmatpush1.bf16.msra.mxu1 %v6584_v56  ;;  %6609 = vmatpush1.bf16.msra.mxu0 %v6608_v57  ;;  %v5695_v56 = vld [vmem:[%s9981_s10 + $0x5f8] sm:$0xff]  ;;  %v6628_v57 = vpack.c.bf16 %v5665_v15, %v5663_v54  ;;  %v5724_v54 = vld [vmem:[%s9983_s12 + $0xe0] sm:$0xff] }
 0x581   : > { %6611 = vmatprep.subr.bf16.mxu1 %v6610_v39  ;;  %6635 = vmatprep.subr.bf16.mxu0 %v6634_v60  ;;  %v6630_v39 = vpack.c.bf16 %v5670_v55, %v5668_v14  ;;  %v6654_v60 = vpack.c.bf16 %v5695_v56, %v5693_v29  ;;  %v5727_v55 = vld [vmem:[%s9983_s12 + $0xf8] sm:$0xff]  ;;  %v4166_v56 = vld [vmem:[%s9983_s12 + $0x20] sm:$0xff] }
 0x582   : > { %v6728_v29 = vpack.c.bf16 %v5727_v55, %v5726_v37  ;;  %v4185_v37 = vld [vmem:[%s9983_s12 + $0xb8] sm:$0xff] }
 0x583   : > { %5621 = vmatmul.mubr.msk.f32.vlgmr.msra.gmra.mrb[44].mxu1 %vm3124_vm13, %v8484_v49  ;;  %5646 = vmatmul.mubr.msk.f32.vlgmr.msra.gmra.mrb[34].mxu0 %vm3124_vm13, %v8484_v49 }
 0x584   : > { %6613 = vmatpush1.bf16.msra.mxu1 %v6612_v3  ;;  %6637 = vmatpush1.bf16.msra.mxu0 %v6636_v4  ;;  %v6656_v3 = vpack.c.bf16 %v5694_v63, %v5692_v62  ;;  %v6658_v4 = vpack.c.bf16 %v5700_v1, %v5698_v32  ;;  %v4169_v62 = vld [vmem:[%s9983_s12 + $0x38] sm:$0xff]  ;;  %v5730_v63 = vld [vmem:[%s9983_s12 + $0x110] sm:$0xff] }
 0x585   : > { %6615 = vmatprep.subr.bf16.mxu1 %v6614_v7  ;;  %6639 = vmatprep.subr.bf16.mxu0 %v6638_v9  ;;  %v5702_v7 = vld [vmem:[%s9981_s10 + $0x628] sm:$0xff]  ;;  %v5704_v9 = vld [vmem:[%s9981_s10 + $0x638] sm:$0xff]  ;;  %v6692_v32 = vpack.c.bf16 %v4169_v62, %v4168_v61  ;;  %v4188_v62 = vld [vmem:[%s9983_s12 + $0xd0] sm:$0xff] }
 0x586   : > { %3890 = vmatprep.mubr.f32.mxu1 %v8126_v35  ;;  %4006 = vmatprep.mubr.f32.mxu0 %v8126_v35  ;;  %v5684_v35 = vld [vmem:[%s9981_s10 + $0x5a0] sm:$0xff]  ;;  %v6662_v11 = vpack.c.bf16 %v5704_v9, %v5702_v7  ;;  %v5731_v1 = vld [vmem:[%s9983_s12 + $0x118] sm:$0xff]  ;;  %v5733_v7 = vld [vmem:[%s9983_s12 + $0x128] sm:$0xff] }
 0x587   : > { %v6648_v52 = vpack.c.bf16 %v5686_v53, %v5684_v35  ;;  %v5720_v35 = vld [vmem:[%s9981_s10 + $0x6b8] sm:$0xff]  ;;  %v6737_v9 = vpack.c.bf16 %v5733_v7, %v5732_v5  ;;  %v3129_v5 = vld [vmem:[#allocation3 + $0x8] sm:$0x3f] }
 0x588   : > { %6617 = vmatpush1.bf16.msra.mxu1 %v6616_v18  ;;  %6641 = vmatpush1.bf16.msra.mxu0 %v6640_v20  ;;  %v6664_v18 = vpack.c.bf16 %v5703_v13, %v5701_v12  ;;  %v8929_v20 = vld [vmem:[#allocation3] sm:$0xff]  ;;  %v5734_v12 = vld [vmem:[%s9983_s12 + $0x130] sm:$0xff] }
 0x589   : > { %6619 = vmatprep.subr.bf16.mxu1 %v6618_v25  ;;  %6643 = vmatprep.subr.bf16.mxu0 %v6642_v26  ;;  %v5707_v25 = vld [vmem:[%s9981_s10 + $0x650] sm:$0xff]  ;;  %v5710_v26 = vld [vmem:[%s9981_s10 + $0x668] sm:$0xff]  ;;  %v6740_v17 = vpack.c.bf16 %v5735_v16, %v5734_v12  ;;  %4156 = vst.msk [vmem:[#allocation4] sm:$0xff] %vm4155_vm10, %v8929_v20  ;;  %4157 = vst.msk [vmem:[#allocation4 + $0x8] sm:$0xff] %vm4155_vm10, %v8929_v20 }
 0x58a   : > { %v6668_v28 = vpack.c.bf16 %v5707_v25, %v5705_v24  ;;  %v6670_v34 = vpack.c.bf16 %v5712_v27, %v5710_v26  ;;  %v5736_v24 = vld [vmem:[%s9983_s12 + $0x140] sm:$0xff]  ;;  %v5737_v26 = vld [vmem:[%s9983_s12 + $0x148] sm:$0xff] }
 0x58b   : > { %v6743_v27 = vpack.c.bf16 %v5737_v26, %v5736_v24  ;;  %v3452_v26 = vld [vmem:[#allocation3 + $0x10] sm:$0x1] }
 0x58c   : > { %6621 = vmatpush1.bf16.msra.mxu1 %v6620_v41  ;;  %6645 = vmatpush1.bf16.msra.mxu0 %v6644_v42  ;;  %v5716_v41 = vld [vmem:[%s9981_s10 + $0x698] sm:$0xff]  ;;  %v6672_v42 = vpack.c.bf16 %v5711_v38, %v5709_v36  ;;  %v5738_v36 = vld [vmem:[%s9983_s12 + $0x150] sm:$0xff] }
 0x58d   : > { %6623 = vmatprep.subr.bf16.mxu1 %v6622_v46  ;;  %6647 = vmatprep.subr.bf16.mxu0 %v6646_v43  ;;  %v6674_v44 = vpack.c.bf16 %v5716_v41, %v5714_v40  ;;  %v5715_v46 = vld [vmem:[%s9981_s10 + $0x690] sm:$0xff]  ;;  %v5718_v43 = vld [vmem:[%s9981_s10 + $0x6a8] sm:$0xff]  ;;  %v5739_v40 = vld [vmem:[%s9983_s12 + $0x158] sm:$0xff] }
 0x58e   : > { %v6676_v53 = vpack.c.bf16 %v5715_v46, %v5713_v45  ;;  %v6678_v47 = vpack.c.bf16 %v5720_v35, %v5718_v43  ;;  %v6746_v41 = vpack.c.bf16 %v5739_v40, %v5738_v36  ;;  %v5740_v45 = vld [vmem:[%s9983_s12 + $0x160] sm:$0xff]  ;;  %v5741_v43 = vld [vmem:[%s9983_s12 + $0x168] sm:$0xff] }
 0x58f   : > { %v6749_v35 = vpack.c.bf16 %v5741_v43, %v5740_v45 }
 0x590   : > { %6625 = vmatpush1.bf16.msra.mxu1 %v6624_v51  ;;  %6649 = vmatpush1.bf16.msra.mxu0 %v6648_v52  ;;  %v4162_v51 = vld [vmem:[%s9983_s12] sm:$0xff]  ;;  %v4163_v52 = vld [vmem:[%s9983_s12 + $0x8] sm:$0xff] }
 0x591   : > { %6627 = vmatprep.subr.bf16.mxu1 %v6626_v30  ;;  %6651 = vmatprep.subr.bf16.mxu0 %v6650_v31  ;;  %v6683_v15 = vpack.c.bf16 %v4163_v52, %v4162_v51  ;;  %v5725_v30 = vld [vmem:[%s9983_s12 + $0xe8] sm:$0xff]  ;;  %v4182_v52 = vld [vmem:[%s9983_s12 + $0xa0] sm:$0xff] }
 0x592   : > { %v6725_v31 = vpack.c.bf16 %v5725_v30, %v5724_v54  ;;  %v4183_v54 = vld [vmem:[%s9983_s12 + $0xa8] sm:$0xff] }
 0x593   : > { %v6713_v30 = vpack.c.bf16 %v4183_v54, %v4182_v52 }
 0x594   : > { %6629 = vmatpush1.bf16.msra.mxu1 %v6628_v57  ;;  %6653 = vmatpush1.bf16.msra.mxu0 %v6652_v58  ;;  %v4167_v57 = vld [vmem:[%s9983_s12 + $0x28] sm:$0xff]  ;;  %v5728_v58 = vld [vmem:[%s9983_s12 + $0x100] sm:$0xff] }
 0x595   : > { %6631 = vmatprep.subr.bf16.mxu1 %v6630_v39  ;;  %6655 = vmatprep.subr.bf16.mxu0 %v6654_v60  ;;  %v6689_v59 = vpack.c.bf16 %v4167_v57, %v4166_v56  ;;  %v5729_v39 = vld [vmem:[%s9983_s12 + $0x108] sm:$0xff]  ;;  %v4186_v57 = vld [vmem:[%s9983_s12 + $0xc0] sm:$0xff] }
 0x596   : > { %v6731_v60 = vpack.c.bf16 %v5729_v39, %v5728_v58  ;;  %v4187_v58 = vld [vmem:[%s9983_s12 + $0xc8] sm:$0xff] }
 0x597   : > { %v6719_v39 = vpack.c.bf16 %v4187_v58, %v4186_v57 }
 0x598   : > { %6633 = vmatpush1.bf16.msra.mxu1 %v6632_v2  ;;  %6657 = vmatpush1.bf16.msra.mxu0 %v6656_v3  ;;  %v6734_v2 = vpack.c.bf16 %v5731_v1, %v5730_v63  ;;  %v4170_v3 = vld [vmem:[%s9983_s12 + $0x40] sm:$0xff]  ;;  %v4189_v63 = vld [vmem:[%s9983_s12 + $0xd8] sm:$0xff] }
 0x599   : > { %6659 = vmatprep.subr.bf16.mxu1 %v6658_v4  ;;  %6682 = vmatprep.subr.bf16.mxu0 %v7161_v8  ;;  %v4171_v4 = vld [vmem:[%s9983_s12 + $0x48] sm:$0xff]  ;;  %v6722_v1 = vpack.c.bf16 %v4189_v63, %v4188_v62 }
 0x59a   : > { %v6695_v6 = vpack.c.bf16 %v4171_v4, %v4170_v3  ;;  %v3128_v4 = vld [vmem:[#allocation3] sm:$0x3f] }
 0x59b   : > { %5671 = vmatmul.mubr.msk.f32.vlgmr.msra.gmra.mrb[46].mxu1 %vm3124_vm13, %v8484_v49  ;;  %5696 = vmatmul.mubr.msk.f32.vlgmr.msra.gmra.mrb[36].mxu0 %vm3124_vm13, %v8484_v49 }
 0x59c   : > { %6661 = vmatpush1.bf16.msra.mxu1 %v6660_v10  ;;  %4120 = vmatprep.mubr.f32.mxu1 %v8929_v20  ;;  %v4172_v10 = vld [vmem:[%s9983_s12 + $0x50] sm:$0xff] }
 0x59d   : > { %6663 = vmatprep.subr.bf16.mxu1 %v6662_v11  ;;  %6684 = vmatpush1.bf16.msra.mxu0 %v6683_v15  ;;  %v4173_v11 = vld [vmem:[%s9983_s12 + $0x58] sm:$0xff]  ;;  %v5744_v15 = vld [vmem:[%s9983_s12 + $0x180] sm:$0xff] }
 0x59e   : > { %6685 = vmatprep.subr.bf16.mxu0 %v7161_v8  ;;  %v6698_v13 = vpack.c.bf16 %v4173_v11, %v4172_v10 }
 0x5a0   : > { %6665 = vmatpush1.bf16.msra.mxu1 %v6664_v18  ;;  %v4174_v18 = vld [vmem:[%s9983_s12 + $0x60] sm:$0xff] }
 0x5a1   : > { %6667 = vmatprep.subr.bf16.mxu1 %v6666_v22  ;;  %v4175_v22 = vld [vmem:[%s9983_s12 + $0x68] sm:$0xff] }
 0x5a2   : > { %v6701_v25 = vpack.c.bf16 %v4175_v22, %v4174_v18 }
 0x5a4   : > { %6669 = vmatpush1.bf16.msra.mxu1 %v6668_v28  ;;  %v4176_v28 = vld [vmem:[%s9983_s12 + $0x70] sm:$0xff] }
 0x5a5   : > { %6671 = vmatprep.subr.bf16.mxu1 %v6670_v34  ;;  %v4177_v34 = vld [vmem:[%s9983_s12 + $0x78] sm:$0xff] }
 0x5a6   : > { %v6704_v38 = vpack.c.bf16 %v4177_v34, %v4176_v28 }
 0x5a8   : > { %6673 = vmatpush1.bf16.msra.mxu1 %v6672_v42  ;;  %v4178_v42 = vld [vmem:[%s9983_s12 + $0x80] sm:$0xff] }
 0x5a9   : > { %6675 = vmatprep.subr.bf16.mxu1 %v6674_v44  ;;  %v4179_v44 = vld [vmem:[%s9983_s12 + $0x88] sm:$0xff] }
 0x5aa   : > { %v6707_v46 = vpack.c.bf16 %v4179_v44, %v4178_v42 }
 0x5ac   : > { %6677 = vmatpush1.bf16.msra.mxu1 %v6676_v53  ;;  %v4180_v53 = vld [vmem:[%s9983_s12 + $0x90] sm:$0xff] }
 0x5ad   : > { %6679 = vmatprep.subr.bf16.mxu1 %v6678_v47  ;;  %v4181_v47 = vld [vmem:[%s9983_s12 + $0x98] sm:$0xff] }
 0x5ae   : > { %v6710_v0 = vpack.c.bf16 %v4181_v47, %v4180_v53 }
 0x5b0   : > { %6681 = vmatpush1.bf16.msra.mxu1 %v6680_v50  ;;  %v5743_v50 = vld [vmem:[%s9983_s12 + $0x178] sm:$0xff] }
 0x5b1   : > { %6724 = vmatprep.subr.bf16.mxu1 %v7161_v8  ;;  %v6752_v51 = vpack.c.bf16 %v5743_v50, %v5742_v48 }
 0x5b3   : > { %5721 = vmatmul.mubr.msk.f32.vlgmr.msra.gmra.mrb[48].mxu1 %vm3124_vm13, %v8484_v49  ;;  %v4164_v49 = vld [vmem:[%s9983_s12 + $0x10] sm:$0xff] }
 0x5b4   : > { %6726 = vmatpush1.bf16.msra.mxu1 %v6725_v31  ;;  %v6686_v14 = vpack.c.bf16 %v4165_v33, %v4164_v49  ;;  %v5745_v31 = vld [vmem:[%s9983_s12 + $0x188] sm:$0xff]  ;;  %v4184_v33 = vld [vmem:[%s9983_s12 + $0xb0] sm:$0xff] }
 0x5b5   : > { %6727 = vmatprep.subr.bf16.mxu1 %v7161_v8  ;;  %v6755_v49 = vpack.c.bf16 %v5745_v31, %v5744_v15  ;;  %v6716_v55 = vpack.c.bf16 %v4185_v37, %v4184_v33 }
 0x5b6   : > { %6687 = vmatpush1.bf16.msra.mxu0 %v6686_v14  ;;  %v5746_v14 = vld [vmem:[%s9983_s12 + $0x190] sm:$0xff] }
 0x5b7   : > { %6688 = vmatprep.subr.bf16.mxu0 %v7161_v8 }
 0x5b8   : > { %6729 = vmatpush1.bf16.msra.mxu1 %v6728_v29  ;;  %v5747_v29 = vld [vmem:[%s9983_s12 + $0x198] sm:$0xff] }
 0x5b9   : > { %6730 = vmatprep.subr.bf16.mxu1 %v7161_v8  ;;  %v6758_v56 = vpack.c.bf16 %v5747_v29, %v5746_v14 }
 0x5ba   : > { %6690 = vmatpush1.bf16.msra.mxu0 %v6689_v59  ;;  %v5748_v59 = vld [vmem:[%s9983_s12 + $0x1a0] sm:$0xff] }
 0x5bb   : > { %6691 = vmatprep.subr.bf16.mxu0 %v7161_v8 }
 0x5bc   : > { %6732 = vmatpush1.bf16.msra.mxu1 %v6731_v60  ;;  %v5749_v60 = vld [vmem:[%s9983_s12 + $0x1a8] sm:$0xff] }
 0x5bd   : > { %6733 = vmatprep.subr.bf16.mxu1 %v7161_v8  ;;  %v6761_v61 = vpack.c.bf16 %v5749_v60, %v5748_v59 }
 0x5be   : > { %6693 = vmatpush1.bf16.msra.mxu0 %v6692_v32  ;;  %v5750_v32 = vld [vmem:[%s9983_s12 + $0x1b0] sm:$0xff] }
 0x5bf   : > { %6694 = vmatprep.subr.bf16.mxu0 %v7161_v8 }
 0x5c0   : > { %6735 = vmatpush1.bf16.msra.mxu1 %v6734_v2  ;;  %v5751_v2 = vld [vmem:[%s9983_s12 + $0x1b8] sm:$0xff] }
 0x5c1   : > { %6736 = vmatprep.subr.bf16.mxu1 %v7161_v8  ;;  %v6764_v3 = vpack.c.bf16 %v5751_v2, %v5750_v32 }
 0x5c2   : > { %6696 = vmatpush1.bf16.msra.mxu0 %v6695_v6 }
 0x5c3   : > { %6697 = vmatprep.subr.bf16.mxu0 %v7161_v8 }
 0x5c4   : > { %6738 = vmatpush1.bf16.msra.mxu1 %v6737_v9 }
 0x5c5   : > { %6739 = vmatprep.subr.bf16.mxu1 %v7161_v8 }
 0x5c6   : > { %6699 = vmatpush1.bf16.msra.mxu0 %v6698_v13 }
 0x5c7   : > { %6700 = vmatprep.subr.bf16.mxu0 %v7161_v8 }
 0x5c8   : > { %6741 = vmatpush1.bf16.msra.mxu1 %v6740_v17 }
 0x5c9   : > { %6742 = vmatprep.subr.bf16.mxu1 %v7161_v8 }
 0x5ca   : > { %6702 = vmatpush1.bf16.msra.mxu0 %v6701_v25 }
 0x5cb   : > { %6703 = vmatprep.subr.bf16.mxu0 %v7161_v8 }
 0x5cc   : > { %6744 = vmatpush1.bf16.msra.mxu1 %v6743_v27 }
 0x5cd   : > { %6745 = vmatprep.subr.bf16.mxu1 %v7161_v8 }
 0x5ce   : > { %6705 = vmatpush1.bf16.msra.mxu0 %v6704_v38  ;;  %v3453_v38 = vld [vmem:[#allocation3 + $0x18] sm:$0x1] }
 0x5cf   : > { %6706 = vmatprep.subr.bf16.mxu0 %v7161_v8 }
 0x5d0   : > { %6747 = vmatpush1.bf16.msra.mxu1 %v6746_v41 }
 0x5d1   : > { %6748 = vmatprep.subr.bf16.mxu1 %v7161_v8 }
 0x5d2   : > { %6708 = vmatpush1.bf16.msra.mxu0 %v6707_v46 }
 0x5d3   : > { %6709 = vmatprep.subr.bf16.mxu0 %v7161_v8 }
 0x5d4   : > { %6750 = vmatpush1.bf16.msra.mxu1 %v6749_v35 }
 0x5d5   : > { %6751 = vmatprep.subr.bf16.mxu1 %v7161_v8 }
 0x5d6   : > { %6711 = vmatpush1.bf16.msra.mxu0 %v6710_v0 }
 0x5d7   : > { %6712 = vmatprep.subr.bf16.mxu0 %v7161_v8 }
 0x5d8   : > { %6753 = vmatpush1.bf16.msra.mxu1 %v6752_v51 }
 0x5d9   : > { %6754 = vmatprep.subr.bf16.mxu1 %v7161_v8 }
 0x5da   : > { %6714 = vmatpush1.bf16.msra.mxu0 %v6713_v30 }
 0x5db   : > { %6715 = vmatprep.subr.bf16.mxu0 %v7161_v8 }
 0x5dc   : > { %6756 = vmatpush1.bf16.msra.mxu1 %v6755_v49 }
 0x5dd   : > { %6757 = vmatprep.subr.bf16.mxu1 %v7161_v8 }
 0x5de   : > { %6717 = vmatpush1.bf16.msra.mxu0 %v6716_v55 }
 0x5df   : > { %6718 = vmatprep.subr.bf16.mxu0 %v7161_v8 }
 0x5e0   : > { %6759 = vmatpush1.bf16.msra.mxu1 %v6758_v56 }
 0x5e1   : > { %6760 = vmatprep.subr.bf16.mxu1 %v7161_v8 }
 0x5e2   : > { %6720 = vmatpush1.bf16.msra.mxu0 %v6719_v39 }
 0x5e3   : > { %6721 = vmatprep.subr.bf16.mxu0 %v7161_v8 }
 0x5e4   : > { %6762 = vmatpush1.bf16.msra.mxu1 %v6761_v61 }
 0x5e5   : > { %6763 = vmatprep.subr.bf16.mxu1 %v7161_v8 }
 0x5e6   : > { %6723 = vmatpush1.bf16.msra.mxu0 %v6722_v1 }
 0x5e7   : > { %6766 = vmatprep.subr.bf16.mxu0 %v7161_v8 }
 0x5e8   : > { %6765 = vmatpush1.bf16.msra.mxu1 %v6764_v3 }
 0x5e9   : > { %6808 = vmatprep.subr.bf16.mxu1 %v7161_v8 }
 0x626   : > { %v3223_v6 = vpop.f32.mrb[40].mxu1  ;;  %v3325_v7 = vpop.f32.mrb[30].mxu0 }
 0x627   : > { %v3228_v9 = vadd.f32 %v3223_v6, %v3128_v4  ;;  %v3225_v10 = vpop.f32.mrb[41].mxu1  ;;  %v3327_v11 = vpop.f32.mrb[31].mxu0  ;;  %v3332_v13 = vrot.slane %v3325_v7, 7 }
 0x628   : > { %v3229_v12 = vadd.f32 %v3225_v10, %v3129_v5  ;;  %v3333_v17 = vrot.slane %v3327_v11, 7 }
 0x629   : > { %3230 = vst [vmem:[#allocation3] sm:$0x3f] %v3228_v9 }
 0x62a   : > { %3231 = vst.msk [vmem:[#allocation3 + $0x8] sm:$0x3f] %vm2717_vm11, %v3229_v12 }
 0x630   : > { %v3232_v16 = vld [vmem:[#allocation3] sm:$0x7e] }
 0x631   : > { %v3336_v18 = vadd.f32 %v3332_v13, %v3232_v16  ;;  %v3233_v22 = vld [vmem:[#allocation3 + $0x8] sm:$0x7e] }
 0x632   : > { %v3337_v24 = vadd.f32 %v3333_v17, %v3233_v22 }
 0x633   : > { %3338 = vst [vmem:[#allocation3] sm:$0x7e] %v3336_v18 }
 0x634   : > { %3340 = vst.msk [vmem:[#allocation3 + $0x8] sm:$0x7e] %vm3339_vm15, %v3337_v24 }
 0x63a   : > { %v3341_v41 = vld [vmem:[#allocation3] sm:$0xfc] }
 0x63b   : > { %v3342_v43 = vld [vmem:[#allocation3 + $0x8] sm:$0xfc] }
 0x63e   : > { %v3434_v25 = vpop.f32.mrb[42].mxu1  ;;  %v3545_v27 = vpop.f32.mrb[32].mxu0 }
 0x63f   : > { %v3441_v28 = vrot.slane %v3434_v25, 6  ;;  %v3552_v34 = vrot.slane %v3545_v27, 5  ;;  %v3436_v36 = vpop.f32.mrb[43].mxu1  ;;  %v3547_v40 = vpop.f32.mrb[33].mxu0 }
 0x640   : > { %v3442_v42 = vrot.slane %v3436_v36, 6  ;;  %v3553_v44 = vrot.slane %v3547_v40, 5 }
 0x641   : > { %v3445_v45 = vadd.f32 %v3441_v28, %v3341_v41  ;;  %v3558_v46 = vadd.f32 %v3552_v34, %v3452_v26 }
 0x642   : > { %v3446_v35 = vadd.f32 %v3442_v42, %v3342_v43  ;;  %v3559_v53 = vadd.f32 %v3553_v44, %v3453_v38  ;;  %v4135_v42 = vld [vmem:[%s9982_s11] sm:$0x3] }
 0x643   : > { %3447 = vst [vmem:[#allocation3] sm:$0xfc] %v3445_v45  ;;  %3563 = vst [vmem:[#allocation3 + $0x10] sm:$0x1] %v3558_v46  ;;  %v4144_v45 = vrot.slane %v4135_v42, %v2146_v23  ;;  %v5754_v43 = vld [vmem:[%s9983_s12 + $0x1c0] sm:$0xff] }
 0x644   : > { %3449 = vst.msk [vmem:[#allocation3 + $0x8] sm:$0xfc] %vm3448_vm0, %v3446_v35  ;;  %v5755_v35 = vld [vmem:[%s9983_s12 + $0x1c8] sm:$0xff] }
 0x645   : > { %3565 = vst.msk [vmem:[#allocation3 + $0x18] sm:$0x1] %vm3564_vm1, %v3559_v53 }
 0x64a   : > { %v3450_v47 = vld [vmem:[#allocation3] sm:$0xf8]  ;;  %v3568_v49 = vld [vmem:[#allocation3 + $0x10] sm:$0x3] }
 0x64b   : > { %v3556_v48 = vadd.f32 %v3552_v34, %v3450_v47  ;;  %v3451_v0 = vld [vmem:[#allocation3 + $0x8] sm:$0xf8] }
 0x64c   : > { %v3557_v50 = vadd.f32 %v3553_v44, %v3451_v0  ;;  %v3569_v29 = vld [vmem:[#allocation3 + $0x18] sm:$0x3]  ;;  %v4140_v44 = vrot.slane %v4135_v42, %v2142_v21 }
 0x64d   : > { %3560 = vst [vmem:[#allocation3] sm:$0xf8] %v3556_v48  ;;  %v5784_v48 = vld [vmem:[%s9983_s12 + $0x2a0] sm:$0xff] }
 0x64e   : > { %3562 = vst.msk [vmem:[#allocation3 + $0x8] sm:$0xf8] %vm3561_vm2, %v3557_v50 }
 0x654   : > { %v3566_v31 = vld [vmem:[#allocation3] sm:$0xf0] }
 0x655   : > { %v3567_v55 = vld [vmem:[#allocation3 + $0x8] sm:$0xf0] }
 0x656   : > { %v3661_v51 = vpop.f32.mrb[44].mxu1  ;;  %v3776_v52 = vpop.f32.mrb[34].mxu0 }
 0x657   : > { %v3668_v54 = vrot.slane %v3661_v51, 4  ;;  %v3663_v15 = vpop.f32.mrb[45].mxu1  ;;  %v3778_v30 = vpop.f32.mrb[35].mxu0  ;;  %v3783_v58 = vrot.slane %v3776_v52, 3 }
 0x658   : > { %v3669_v33 = vrot.slane %v3663_v15, 4  ;;  %v3784_v60 = vrot.slane %v3778_v30, 3  ;;  %v6767_v30 = vpack.c.bf16 %v5755_v35, %v5754_v43  ;;  %v5799_v43 = vld [vmem:[%s9983_s12 + $0x318] sm:$0xff] }
 0x659   : > { %v3672_v37 = vadd.f32 %v3668_v54, %v3566_v31  ;;  %v3674_v14 = vadd.f32 %v3668_v54, %v3568_v49  ;;  %v6809_v31 = vpack.c.bf16 %v5785_v19, %v5784_v48  ;;  %v5756_v49 = vld [vmem:[%s9983_s12 + $0x1d0] sm:$0xff]  ;;  %v5771_v48 = vld [vmem:[%s9983_s12 + $0x248] sm:$0xff]  ;;  %v5800_v19 = vld [vmem:[%s9983_s12 + $0x320] sm:$0xff] }
 0x65a   : > { %v3673_v56 = vadd.f32 %v3669_v33, %v3567_v55  ;;  %v3675_v57 = vadd.f32 %v3669_v33, %v3569_v29  ;;  %v5787_v55 = vld [vmem:[%s9983_s12 + $0x2b8] sm:$0xff] }
 0x65b   : > { %3676 = vst [vmem:[#allocation3] sm:$0xf0] %v3672_v37  ;;  %3679 = vst [vmem:[#allocation3 + $0x10] sm:$0x3] %v3674_v14  ;;  %v5757_v37 = vld [vmem:[%s9983_s12 + $0x1d8] sm:$0xff]  ;;  %v5786_v14 = vld [vmem:[%s9983_s12 + $0x2b0] sm:$0xff] }
 0x65c   : > { %3678 = vst.msk [vmem:[#allocation3 + $0x8] sm:$0xf0] %vm3677_vm3, %v3673_v56  ;;  %v6770_v29 = vpack.c.bf16 %v5757_v37, %v5756_v49  ;;  %v6812_v56 = vpack.c.bf16 %v5787_v55, %v5786_v14  ;;  %v5774_v49 = vld [vmem:[%s9983_s12 + $0x260] sm:$0xff]  ;;  %v5775_v37 = vld [vmem:[%s9983_s12 + $0x268] sm:$0xff] }
 0x65d   : > { %3680 = vst.msk [vmem:[#allocation3 + $0x18] sm:$0x3] %vm2799_vm14, %v3675_v57  ;;  %v5758_v57 = vld [vmem:[%s9983_s12 + $0x1e0] sm:$0xff]  ;;  %v5805_v55 = vld [vmem:[%s9983_s12 + $0x348] sm:$0xff] }
 0x65e   : > { %v5804_v14 = vld [vmem:[%s9983_s12 + $0x340] sm:$0xff] }
 0x662   : > { %v3681_v59 = vld [vmem:[#allocation3] sm:$0xe0]  ;;  %v3683_v39 = vld [vmem:[#allocation3 + $0x10] sm:$0x7] }
 0x663   : > { %v3787_v61 = vadd.f32 %v3783_v58, %v3681_v59  ;;  %v3789_v62 = vadd.f32 %v3783_v58, %v3683_v39  ;;  %v3682_v63 = vld [vmem:[#allocation3 + $0x8] sm:$0xe0]  ;;  %v5759_v58 = vld [vmem:[%s9983_s12 + $0x1e8] sm:$0xff]  ;;  %v5788_v59 = vld [vmem:[%s9983_s12 + $0x2c0] sm:$0xff] }
 0x664   : > { %v3684_v32 = vld [vmem:[#allocation3 + $0x18] sm:$0x7]  ;;  %v3788_v1 = vadd.f32 %v3784_v60, %v3682_v63  ;;  %v5789_v39 = vld [vmem:[%s9983_s12 + $0x2c8] sm:$0xff]  ;;  %v5760_v63 = vld [vmem:[%s9983_s12 + $0x1f0] sm:$0xff] }
 0x665   : > { %v3790_v2 = vadd.f32 %v3784_v60, %v3684_v32  ;;  %3791 = vst [vmem:[#allocation3] sm:$0xe0] %v3787_v61  ;;  %3794 = vst [vmem:[#allocation3 + $0x10] sm:$0x7] %v3789_v62  ;;  %v6773_v60 = vpack.c.bf16 %v5759_v58, %v5758_v57  ;;  %v6815_v61 = vpack.c.bf16 %v5789_v39, %v5788_v59  ;;  %v5761_v32 = vld [vmem:[%s9983_s12 + $0x1f8] sm:$0xff]  ;;  %v5776_v57 = vld [vmem:[%s9983_s12 + $0x270] sm:$0xff] }
 0x666   : > { %3793 = vst.msk [vmem:[#allocation3 + $0x8] sm:$0xe0] %vm3792_vm4, %v3788_v1  ;;  %v5777_v58 = vld [vmem:[%s9983_s12 + $0x278] sm:$0xff]  ;;  %v5806_v59 = vld [vmem:[%s9983_s12 + $0x350] sm:$0xff] }
 0x667   : > { %3796 = vst.msk [vmem:[#allocation3 + $0x18] sm:$0x7] %vm3795_vm5, %v3790_v2  ;;  %v5807_v39 = vld [vmem:[%s9983_s12 + $0x358] sm:$0xff] }
 0x66c   : > { %v3797_v9 = vld [vmem:[#allocation3] sm:$0xc0]  ;;  %v3799_v10 = vld [vmem:[#allocation3 + $0x10] sm:$0xf] }
 0x66d   : > { %v3798_v16 = vld [vmem:[#allocation3 + $0x8] sm:$0xc0] }
 0x66e   : > { %v3892_v3 = vpop.f32.mrb[46].mxu1  ;;  %v4008_v4 = vpop.f32.mrb[36].mxu0  ;;  %v3800_v17 = vld [vmem:[#allocation3 + $0x18] sm:$0xf] }
 0x66f   : > { %v3899_v5 = vrot.slane %v3892_v3, 2  ;;  %v3894_v6 = vpop.f32.mrb[47].mxu1  ;;  %v4010_v7 = vpop.f32.mrb[37].mxu0  ;;  %v4015_v24 = vrot.slane %v4008_v4, 1  ;;  %v5790_v3 = vld [vmem:[%s9983_s12 + $0x2d0] sm:$0xff]  ;;  %v5791_v4 = vld [vmem:[%s9983_s12 + $0x2d8] sm:$0xff] }
 0x670   : > { %v3900_v11 = vrot.slane %v3894_v6, 2  ;;  %v4016_v27 = vrot.slane %v4010_v7, 1  ;;  %v6776_v7 = vpack.c.bf16 %v5761_v32, %v5760_v63  ;;  %v5779_v63 = vld [vmem:[%s9983_s12 + $0x288] sm:$0xff]  ;;  %v5808_v32 = vld [vmem:[%s9983_s12 + $0x360] sm:$0xff] }
 0x671   : > { %v3903_v12 = vadd.f32 %v3899_v5, %v3797_v9  ;;  %v3905_v13 = vadd.f32 %v3899_v5, %v3799_v10  ;;  %v6818_v9 = vpack.c.bf16 %v5791_v4, %v5790_v3  ;;  %v5762_v10 = vld [vmem:[%s9983_s12 + $0x200] sm:$0xff]  ;;  %v5780_v4 = vld [vmem:[%s9983_s12 + $0x290] sm:$0xff] }
 0x672   : > { %v3904_v18 = vadd.f32 %v3900_v11, %v3798_v16  ;;  %v3906_v22 = vadd.f32 %v3900_v11, %v3800_v17  ;;  %v5793_v16 = vld [vmem:[%s9983_s12 + $0x2e8] sm:$0xff] }
 0x673   : > { %3907 = vst [vmem:[#allocation3] sm:$0xc0] %v3903_v12  ;;  %3910 = vst [vmem:[#allocation3 + $0x10] sm:$0xf] %v3905_v13  ;;  %v5763_v12 = vld [vmem:[%s9983_s12 + $0x208] sm:$0xff]  ;;  %v5792_v13 = vld [vmem:[%s9983_s12 + $0x2e0] sm:$0xff] }
 0x674   : > { %3909 = vst.msk [vmem:[#allocation3 + $0x8] sm:$0xc0] %vm3908_vm6, %v3904_v18  ;;  %v6779_v17 = vpack.c.bf16 %v5763_v12, %v5762_v10  ;;  %v6821_v18 = vpack.c.bf16 %v5793_v16, %v5792_v13  ;;  %v5814_v13 = vld [vmem:[%s9983_s12 + $0x380] sm:$0xff]  ;;  %v5815_v16 = vld [vmem:[%s9983_s12 + $0x388] sm:$0xff] }
 0x675   : > { %3912 = vst.msk [vmem:[#allocation3 + $0x18] sm:$0xf] %vm3911_vm7, %v3906_v22  ;;  %v5764_v22 = vld [vmem:[%s9983_s12 + $0x210] sm:$0xff] }
 0x67a   : > { %v3913_v25 = vld [vmem:[#allocation3] sm:$0x80]  ;;  %v3915_v26 = vld [vmem:[#allocation3 + $0x10] sm:$0x1f] }
 0x67b   : > { %v4019_v28 = vadd.f32 %v4015_v24, %v3913_v25  ;;  %v4021_v34 = vadd.f32 %v4015_v24, %v3915_v26  ;;  %v3914_v36 = vld [vmem:[#allocation3 + $0x8] sm:$0x80]  ;;  %v5765_v24 = vld [vmem:[%s9983_s12 + $0x218] sm:$0xff] }
 0x67c   : > { %v3916_v38 = vld [vmem:[#allocation3 + $0x18] sm:$0x1f]  ;;  %v4020_v40 = vadd.f32 %v4016_v27, %v3914_v36  ;;  %v5794_v25 = vld [vmem:[%s9983_s12 + $0x2f0] sm:$0xff]  ;;  %v5795_v26 = vld [vmem:[%s9983_s12 + $0x2f8] sm:$0xff] }
 0x67d   : > { %v4022_v41 = vadd.f32 %v4016_v27, %v3916_v38  ;;  %4023 = vst [vmem:[#allocation3] sm:$0x80] %v4019_v28  ;;  %4026 = vst [vmem:[#allocation3 + $0x10] sm:$0x1f] %v4021_v34  ;;  %v6782_v27 = vpack.c.bf16 %v5765_v24, %v5764_v22  ;;  %v6824_v28 = vpack.c.bf16 %v5795_v26, %v5794_v25  ;;  %v5766_v34 = vld [vmem:[%s9983_s12 + $0x220] sm:$0xff]  ;;  %v5767_v36 = vld [vmem:[%s9983_s12 + $0x228] sm:$0xff] }
 0x67e   : > { %4025 = vst.msk [vmem:[#allocation3 + $0x8] sm:$0x80] %vm4024_vm8, %v4020_v40  ;;  %v5796_v38 = vld [vmem:[%s9983_s12 + $0x300] sm:$0xff]  ;;  %v5797_v40 = vld [vmem:[%s9983_s12 + $0x308] sm:$0xff]  ;;  %v6851_v22 = vpack.c.bf16 %v5815_v16, %v5814_v13  ;;  %v5816_v25 = vld [vmem:[%s9983_s12 + $0x390] sm:$0xff] }
 0x67f   : > { %4028 = vst.msk [vmem:[#allocation3 + $0x18] sm:$0x1f] %vm4027_vm9, %v4022_v41  ;;  %v6785_v41 = vpack.c.bf16 %v5767_v36, %v5766_v34  ;;  %v6827_v42 = vpack.c.bf16 %v5797_v40, %v5796_v38  ;;  %v5817_v26 = vld [vmem:[%s9983_s12 + $0x398] sm:$0xff]  ;;  %v5818_v38 = vld [vmem:[%s9983_s12 + $0x3a0] sm:$0xff]  ;;  %v5819_v40 = vld [vmem:[%s9983_s12 + $0x3a8] sm:$0xff] }
 0x680   : > { %v6854_v34 = vpack.c.bf16 %v5817_v26, %v5816_v25 }
 0x684   : > { %v4131_v46 = vld [vmem:[#allocation3] sm:$0xff]  ;;  %v4029_v21 = vld [vmem:[#allocation3 + $0x10] sm:$0x3f] }
 0x685   : > { %v4132_v53 = vld [vmem:[#allocation3 + $0x8] sm:$0xff]  ;;  %v4147_v47 = vadd.f32 %v4140_v44, %v4131_v46 }
 0x686   : > { %v4122_v23 = vpop.f32.mrb[48].mxu1  ;;  %v4148_v0 = vadd.f32 %v4144_v45, %v4132_v53  ;;  %v4030_v51 = vld [vmem:[#allocation3 + $0x18] sm:$0x3f]  ;;  %v5798_v46 = vld [vmem:[%s9983_s12 + $0x310] sm:$0xff] }
 0x687   : > { %v4127_v50 = vadd.f32 %v4122_v23, %v4029_v21  ;;  %v4124_v52 = vpop.f32.mrb[49].mxu1  ;;  %v9199_v33 = vmax.f32 %v4147_v47, 0.0  ;;  %v6830_v53 = vpack.c.bf16 %v5799_v43, %v5798_v46  ;;  %v5770_v47 = vld [vmem:[%s9983_s12 + $0x240] sm:$0xff]  ;;  %v5801_v21 = vld [vmem:[%s9983_s12 + $0x328] sm:$0xff]  ;;  %v5820_v46 = vld [vmem:[%s9983_s12 + $0x3b0] sm:$0xff] }
 0x688   : > { %v4128_v54 = vadd.f32 %v4124_v52, %v4030_v51  ;;  %v9194_v15 = vmax.f32 %v4148_v0, 0.0  ;;  %v6791_v23 = vpack.c.bf16 %v5771_v48, %v5770_v47  ;;  %v6833_v0 = vpack.c.bf16 %v5801_v21, %v5800_v19  ;;  %v5773_v51 = vld [vmem:[%s9983_s12 + $0x258] sm:$0xff]  ;;  %v5802_v52 = vld [vmem:[%s9983_s12 + $0x330] sm:$0xff]  ;;  %v5822_v19 = vld [vmem:[%s9983_s12 + $0x3c0] sm:$0xff] }
 0x689   : > { %4129 = vst [vmem:[#allocation3 + $0x10] sm:$0x3f] %v4127_v50  ;;  %v5772_v50 = vld [vmem:[%s9983_s12 + $0x250] sm:$0xff]  ;;  %v5821_v43 = vld [vmem:[%s9983_s12 + $0x3b8] sm:$0xff]  ;;  %v5823_v21 = vld [vmem:[%s9983_s12 + $0x3c8] sm:$0xff] }
 0x68a   : > { %4130 = vst.msk [vmem:[#allocation3 + $0x18] sm:$0x3f] %vm2717_vm11, %v4128_v54  ;;  %5722 = vmatprep.mubr.msk.f32.mxu0 %vm3124_vm13, %v9194_v15  ;;  %5752 = vmatprep.mubr.msk.f32.mxu1 %vm3124_vm13, %v9194_v15  ;;  %v5803_v54 = vld [vmem:[%s9983_s12 + $0x338] sm:$0xff]  ;;  %v6860_v47 = vpack.c.bf16 %v5821_v43, %v5820_v46  ;;  %vm4158_vm11 = vcmask 177152   ;;  %v5840_v43 = vld [vmem:[%s9983_s12 + $0x450] sm:$0xff] }
 0x68b   : > { %4261 = vmatmul.mubr.f32.vlgmr.msra.gmra.mrb[38].mxu0 %v9199_v33  ;;  %4371 = vmatmul.mubr.f32.vlgmr.msra.gmra.mrb[50].mxu1 %v9199_v33  ;;  %4159 = vst.msk [vmem:[#allocation4 + $0x10] sm:$0x3f] %vm4158_vm11, %v8929_v20  ;;  %v5868_v20 = vld [vmem:[%s9983_s12 + $0x520] sm:$0xff] }
 0x68c   : > { %6768 = vmatpush1.bf16.msra.mxu0 %v6767_v30  ;;  %6810 = vmatpush1.bf16.msra.mxu1 %v6809_v31  ;;  %v6794_v30 = vpack.c.bf16 %v5773_v51, %v5772_v50  ;;  %v6836_v31 = vpack.c.bf16 %v5803_v54, %v5802_v52  ;;  %v6863_v50 = vpack.c.bf16 %v5823_v21, %v5822_v19  ;;  %v5824_v52 = vld [vmem:[%s9983_s12 + $0x3d0] sm:$0xff]  ;;  %v5825_v54 = vld [vmem:[%s9983_s12 + $0x3d8] sm:$0xff]  ;;  %v5874_v21 = vld [vmem:[%s9983_s12 + $0x540] sm:$0xff] }
 0x68d   : > { %6769 = vmatprep.subr.bf16.mxu0 %v7161_v8  ;;  %6811 = vmatprep.subr.bf16.mxu1 %v7161_v8 }
 0x690   : > { %6771 = vmatpush1.bf16.msra.mxu0 %v6770_v29  ;;  %6813 = vmatpush1.bf16.msra.mxu1 %v6812_v56  ;;  %v4133_v62 = vld [vmem:[#allocation3 + $0x10] sm:$0x3f]  ;;  %v6797_v29 = vpack.c.bf16 %v5775_v37, %v5774_v49  ;;  %v6839_v56 = vpack.c.bf16 %v5805_v55, %v5804_v14  ;;  %v6866_v49 = vpack.c.bf16 %v5825_v54, %v5824_v52  ;;  %v5826_v14 = vld [vmem:[%s9983_s12 + $0x3e0] sm:$0xff]  ;;  %v5827_v55 = vld [vmem:[%s9983_s12 + $0x3e8] sm:$0xff] }
 0x691   : > { %6772 = vmatprep.subr.bf16.mxu0 %v7161_v8  ;;  %6814 = vmatprep.subr.bf16.mxu1 %v7161_v8  ;;  %v4134_v1 = vld [vmem:[#allocation3 + $0x18] sm:$0x3f]  ;;  %v4149_v2 = vadd.f32 %v4140_v44, %v4133_v62  ;;  %v5768_v44 = vld [vmem:[%s9983_s12 + $0x230] sm:$0xff] }
 0x692   : > { %v4150_v5 = vadd.f32 %v4144_v45, %v4134_v1  ;;  %v5769_v45 = vld [vmem:[%s9983_s12 + $0x238] sm:$0xff]  ;;  %v5778_v62 = vld [vmem:[%s9983_s12 + $0x280] sm:$0xff]  ;;  %v5809_v1 = vld [vmem:[%s9983_s12 + $0x368] sm:$0xff] }
 0x693   : > { %v9252_v11 = vmax.f32 %v4149_v2, 0.0  ;;  %v6788_v35 = vpack.c.bf16 %v5769_v45, %v5768_v44  ;;  %v6803_v2 = vpack.c.bf16 %v5779_v63, %v5778_v62  ;;  %v6845_v3 = vpack.c.bf16 %v5809_v1, %v5808_v32  ;;  %v5830_v32 = vld [vmem:[%s9983_s12 + $0x400] sm:$0xff]  ;;  %v5831_v1 = vld [vmem:[%s9983_s12 + $0x408] sm:$0xff]  ;;  %v5876_v54 = vld [vmem:[%s9983_s12 + $0x550] sm:$0xff] }
 0x694   : > { %6774 = vmatpush1.bf16.msra.mxu0 %v6773_v60  ;;  %6816 = vmatpush1.bf16.msra.mxu1 %v6815_v61  ;;  %v9245_v6 = vmax.f32 %v4150_v5, 0.0  ;;  %v6800_v60 = vpack.c.bf16 %v5777_v58, %v5776_v57  ;;  %v6842_v61 = vpack.c.bf16 %v5807_v39, %v5806_v59  ;;  %v5781_v5 = vld [vmem:[%s9983_s12 + $0x298] sm:$0xff]  ;;  %v6857_v44 = vpack.c.bf16 %v5819_v40, %v5818_v38  ;;  %v5828_v59 = vld [vmem:[%s9983_s12 + $0x3f0] sm:$0xff] }
 0x695   : > { %6775 = vmatprep.subr.bf16.mxu0 %v7161_v8  ;;  %6817 = vmatprep.subr.bf16.mxu1 %v7161_v8  ;;  %v6806_v10 = vpack.c.bf16 %v5781_v5, %v5780_v4  ;;  %v6869_v57 = vpack.c.bf16 %v5827_v55, %v5826_v14  ;;  %v5829_v39 = vld [vmem:[%s9983_s12 + $0x3f8] sm:$0xff]  ;;  %v6875_v4 = vpack.c.bf16 %v5831_v1, %v5830_v32  ;;  %v5878_v55 = vld [vmem:[%s9983_s12 + $0x560] sm:$0xff] }
 0x696   : > { %5723 = vmatprep.mubr.msk.f32.mxu0 %vm3124_vm13, %v9245_v6  ;;  %5753 = vmatprep.mubr.msk.f32.mxu1 %vm3124_vm13, %v9245_v6  ;;  %v6872_v62 = vpack.c.bf16 %v5829_v39, %v5828_v59  ;;  %v5880_v39 = vld [vmem:[%s9983_s12 + $0x570] sm:$0xff]  ;;  %v5882_v1 = vld [vmem:[%s9983_s12 + $0x580] sm:$0xff] }
 0x697   : > { %4266 = vmatmul.mubr.f32.gmra.mrb[40].mxu0 %v9252_v11  ;;  %4376 = vmatmul.mubr.f32.gmra.mrb[52].mxu1 %v9252_v11 }
 0x698   : > { %6777 = vmatpush1.bf16.msra.mxu0 %v6776_v7  ;;  %6819 = vmatpush1.bf16.msra.mxu1 %v6818_v9  ;;  %v5810_v7 = vld [vmem:[%s9983_s12 + $0x370] sm:$0xff]  ;;  %v5811_v9 = vld [vmem:[%s9983_s12 + $0x378] sm:$0xff] }
 0x699   : > { %5782 = vmatprep.mubr.msk.f32.mxu0 %vm3124_vm13, %v9194_v15  ;;  %5812 = vmatprep.mubr.msk.f32.mxu1 %vm3124_vm13, %v9194_v15  ;;  %v6848_v12 = vpack.c.bf16 %v5811_v9, %v5810_v7  ;;  %v5832_v7 = vld [vmem:[%s9983_s12 + $0x410] sm:$0xff]  ;;  %v5833_v9 = vld [vmem:[%s9983_s12 + $0x418] sm:$0xff] }
 0x69a   : > { %6778 = vmatprep.subr.bf16.mxu0 %v7161_v8  ;;  %6820 = vmatprep.subr.bf16.mxu1 %v7161_v8  ;;  %v6878_v13 = vpack.c.bf16 %v5833_v9, %v5832_v7  ;;  %v5884_v9 = vld [vmem:[%s9983_s12 + $0x590] sm:$0xff] }
 0x69c   : > { %6780 = vmatpush1.bf16.msra.mxu0 %v6779_v17  ;;  %6822 = vmatpush1.bf16.msra.mxu1 %v6821_v18  ;;  %v5844_v17 = vld [vmem:[%s9983_s12 + $0x460] sm:$0xff]  ;;  %v5845_v18 = vld [vmem:[%s9983_s12 + $0x468] sm:$0xff] }
 0x69d   : > { %6781 = vmatprep.subr.bf16.mxu0 %v7161_v8  ;;  %6823 = vmatprep.subr.bf16.mxu1 %v7161_v8  ;;  %v6893_v24 = vpack.c.bf16 %v5845_v18, %v5844_v17  ;;  %v5834_v17 = vld [vmem:[%s9983_s12 + $0x420] sm:$0xff]  ;;  %v5835_v18 = vld [vmem:[%s9983_s12 + $0x428] sm:$0xff] }
 0x69e   : > { %v6881_v25 = vpack.c.bf16 %v5835_v18, %v5834_v17  ;;  %v5886_v18 = vld [vmem:[%s9983_s12 + $0x5a0] sm:$0xff] }
 0x6a0   : > { %6783 = vmatpush1.bf16.msra.mxu0 %v6782_v27  ;;  %6825 = vmatpush1.bf16.msra.mxu1 %v6824_v28  ;;  %v5846_v27 = vld [vmem:[%s9983_s12 + $0x470] sm:$0xff]  ;;  %v5847_v28 = vld [vmem:[%s9983_s12 + $0x478] sm:$0xff] }
 0x6a1   : > { %6784 = vmatprep.subr.bf16.mxu0 %v7161_v8  ;;  %6826 = vmatprep.subr.bf16.mxu1 %v7161_v8  ;;  %v6896_v36 = vpack.c.bf16 %v5847_v28, %v5846_v27  ;;  %v5836_v27 = vld [vmem:[%s9983_s12 + $0x430] sm:$0xff]  ;;  %v5837_v28 = vld [vmem:[%s9983_s12 + $0x438] sm:$0xff] }
 0x6a2   : > { %v6884_v38 = vpack.c.bf16 %v5837_v28, %v5836_v27  ;;  %v5888_v28 = vld [vmem:[%s9983_s12 + $0x5b0] sm:$0xff] }
 0x6a4   : > { %6786 = vmatpush1.bf16.msra.mxu0 %v6785_v41  ;;  %6828 = vmatpush1.bf16.msra.mxu1 %v6827_v42  ;;  %v5848_v41 = vld [vmem:[%s9983_s12 + $0x480] sm:$0xff]  ;;  %v5849_v42 = vld [vmem:[%s9983_s12 + $0x488] sm:$0xff] }
 0x6a5   : > { %6787 = vmatprep.subr.bf16.mxu0 %v7161_v8  ;;  %6829 = vmatprep.subr.bf16.mxu1 %v7161_v8  ;;  %v6899_v45 = vpack.c.bf16 %v5849_v42, %v5848_v41  ;;  %v5838_v41 = vld [vmem:[%s9983_s12 + $0x440] sm:$0xff]  ;;  %v5839_v42 = vld [vmem:[%s9983_s12 + $0x448] sm:$0xff] }
 0x6a8   : > { %6789 = vmatpush1.bf16.msra.mxu0 %v6788_v35  ;;  %6831 = vmatpush1.bf16.msra.mxu1 %v6830_v53  ;;  %v5850_v35 = vld [vmem:[%s9983_s12 + $0x490] sm:$0xff]  ;;  %v5851_v53 = vld [vmem:[%s9983_s12 + $0x498] sm:$0xff] }
 0x6a9   : > { %6790 = vmatprep.subr.bf16.mxu0 %v7161_v8  ;;  %6832 = vmatprep.subr.bf16.mxu1 %v7161_v8  ;;  %v6902_v48 = vpack.c.bf16 %v5851_v53, %v5850_v35  ;;  %v5841_v35 = vld [vmem:[%s9983_s12 + $0x458] sm:$0xff]  ;;  %v5870_v53 = vld [vmem:[%s9983_s12 + $0x530] sm:$0xff] }
 0x6ac   : > { %6792 = vmatpush1.bf16.msra.mxu0 %v6791_v23  ;;  %6834 = vmatpush1.bf16.msra.mxu1 %v6833_v0  ;;  %v5852_v23 = vld [vmem:[%s9983_s12 + $0x4a0] sm:$0xff]  ;;  %v5853_v0 = vld [vmem:[%s9983_s12 + $0x4a8] sm:$0xff] }
 0x6ad   : > { %6793 = vmatprep.subr.bf16.mxu0 %v7161_v8  ;;  %6835 = vmatprep.subr.bf16.mxu1 %v7161_v8  ;;  %v6905_v51 = vpack.c.bf16 %v5853_v0, %v5852_v23  ;;  %v5875_v23 = vld [vmem:[%s9983_s12 + $0x548] sm:$0xff]  ;;  %v5904_v0 = vld [vmem:[%s9983_s12 + $0x620] sm:$0xff] }
 0x6b0   : > { %6795 = vmatpush1.bf16.msra.mxu0 %v6794_v30  ;;  %6837 = vmatpush1.bf16.msra.mxu1 %v6836_v31  ;;  %v5854_v30 = vld [vmem:[%s9983_s12 + $0x4b0] sm:$0xff]  ;;  %v5855_v31 = vld [vmem:[%s9983_s12 + $0x4b8] sm:$0xff] }
 0x6b1   : > { %6796 = vmatprep.subr.bf16.mxu0 %v7161_v8  ;;  %6838 = vmatprep.subr.bf16.mxu1 %v7161_v8  ;;  %v6908_v37 = vpack.c.bf16 %v5855_v31, %v5854_v30  ;;  %v5877_v30 = vld [vmem:[%s9983_s12 + $0x558] sm:$0xff]  ;;  %v5906_v31 = vld [vmem:[%s9983_s12 + $0x630] sm:$0xff] }
 0x6b4   : > { %6798 = vmatpush1.bf16.msra.mxu0 %v6797_v29  ;;  %6840 = vmatpush1.bf16.msra.mxu1 %v6839_v56  ;;  %v5856_v29 = vld [vmem:[%s9983_s12 + $0x4c0] sm:$0xff]  ;;  %v5857_v56 = vld [vmem:[%s9983_s12 + $0x4c8] sm:$0xff] }
 0x6b5   : > { %6799 = vmatprep.subr.bf16.mxu0 %v7161_v8  ;;  %6841 = vmatprep.subr.bf16.mxu1 %v7161_v8  ;;  %v6911_v58 = vpack.c.bf16 %v5857_v56, %v5856_v29  ;;  %v5879_v29 = vld [vmem:[%s9983_s12 + $0x568] sm:$0xff]  ;;  %v5908_v56 = vld [vmem:[%s9983_s12 + $0x640] sm:$0xff] }
 0x6b8   : > { %6801 = vmatpush1.bf16.msra.mxu0 %v6800_v60  ;;  %6843 = vmatpush1.bf16.msra.mxu1 %v6842_v61  ;;  %v5858_v60 = vld [vmem:[%s9983_s12 + $0x4d0] sm:$0xff]  ;;  %v5859_v61 = vld [vmem:[%s9983_s12 + $0x4d8] sm:$0xff] }
 0x6b9   : > { %6802 = vmatprep.subr.bf16.mxu0 %v7161_v8  ;;  %6844 = vmatprep.subr.bf16.mxu1 %v7161_v8  ;;  %v6914_v63 = vpack.c.bf16 %v5859_v61, %v5858_v60  ;;  %v5881_v60 = vld [vmem:[%s9983_s12 + $0x578] sm:$0xff]  ;;  %v5910_v61 = vld [vmem:[%s9983_s12 + $0x650] sm:$0xff] }
 0x6bc   : > { %6804 = vmatpush1.bf16.msra.mxu0 %v6803_v2  ;;  %6846 = vmatpush1.bf16.msra.mxu1 %v6845_v3  ;;  %v5860_v2 = vld [vmem:[%s9983_s12 + $0x4e0] sm:$0xff]  ;;  %v5861_v3 = vld [vmem:[%s9983_s12 + $0x4e8] sm:$0xff] }
 0x6bd   : > { %6805 = vmatprep.subr.bf16.mxu0 %v7161_v8  ;;  %6847 = vmatprep.subr.bf16.mxu1 %v7161_v8  ;;  %v6917_v5 = vpack.c.bf16 %v5861_v3, %v5860_v2  ;;  %v5883_v2 = vld [vmem:[%s9983_s12 + $0x588] sm:$0xff]  ;;  %v5912_v3 = vld [vmem:[%s9983_s12 + $0x660] sm:$0xff] }
 0x6c0   : > { %6807 = vmatpush1.bf16.msra.mxu0 %v6806_v10  ;;  %6849 = vmatpush1.bf16.msra.mxu1 %v6848_v12  ;;  %v5862_v10 = vld [vmem:[%s9983_s12 + $0x4f0] sm:$0xff]  ;;  %v5863_v12 = vld [vmem:[%s9983_s12 + $0x4f8] sm:$0xff] }
 0x6c1   : > { %6850 = vmatprep.subr.bf16.mxu0 %v7161_v8  ;;  %6892 = vmatprep.subr.bf16.mxu1 %v7161_v8  ;;  %v6920_v16 = vpack.c.bf16 %v5863_v12, %v5862_v10  ;;  %v5885_v10 = vld [vmem:[%s9983_s12 + $0x598] sm:$0xff]  ;;  %v5914_v12 = vld [vmem:[%s9983_s12 + $0x670] sm:$0xff] }
 0x6c3   : > { %4481 = vmatmul.mubr.f32.vlgmr.msra.gmra.mrb[42].mxu0 %v9199_v33  ;;  %4591 = vmatmul.mubr.f32.vlgmr.msra.gmra.mrb[54].mxu1 %v9199_v33 }
 0x6c4   : > { %5783 = vmatprep.mubr.msk.f32.mxu0 %vm3124_vm13, %v9245_v6  ;;  %5813 = vmatprep.mubr.msk.f32.mxu1 %vm3124_vm13, %v9245_v6 }
 0x6c5   : > { %6852 = vmatpush1.bf16.msra.mxu0 %v6851_v22  ;;  %6894 = vmatpush1.bf16.msra.mxu1 %v6893_v24  ;;  %v5864_v22 = vld [vmem:[%s9983_s12 + $0x500] sm:$0xff]  ;;  %v5865_v24 = vld [vmem:[%s9983_s12 + $0x508] sm:$0xff] }
 0x6c6   : > { %6853 = vmatprep.subr.bf16.mxu0 %v7161_v8  ;;  %6895 = vmatprep.subr.bf16.mxu1 %v7161_v8  ;;  %v6923_v26 = vpack.c.bf16 %v5865_v24, %v5864_v22  ;;  %v5887_v22 = vld [vmem:[%s9983_s12 + $0x5a8] sm:$0xff]  ;;  %v5916_v24 = vld [vmem:[%s9983_s12 + $0x680] sm:$0xff] }
 0x6c7   : > { %4486 = vmatmul.mubr.f32.gmra.mrb[44].mxu0 %v9252_v11  ;;  %4596 = vmatmul.mubr.f32.gmra.mrb[56].mxu1 %v9252_v11 }
 0x6c8   : > { %5842 = vmatprep.mubr.msk.f32.mxu0 %vm3124_vm13, %v9194_v15  ;;  %5872 = vmatprep.mubr.msk.f32.mxu1 %vm3124_vm13, %v9194_v15 }
 0x6c9   : > { %6855 = vmatpush1.bf16.msra.mxu0 %v6854_v34  ;;  %6897 = vmatpush1.bf16.msra.mxu1 %v6896_v36  ;;  %v5866_v34 = vld [vmem:[%s9983_s12 + $0x510] sm:$0xff]  ;;  %v5867_v36 = vld [vmem:[%s9983_s12 + $0x518] sm:$0xff] }
 0x6ca   : > { %6856 = vmatprep.subr.bf16.mxu0 %v7161_v8  ;;  %6898 = vmatprep.subr.bf16.mxu1 %v7161_v8  ;;  %v6926_v40 = vpack.c.bf16 %v5867_v36, %v5866_v34  ;;  %v5889_v34 = vld [vmem:[%s9983_s12 + $0x5b8] sm:$0xff]  ;;  %v5918_v36 = vld [vmem:[%s9983_s12 + $0x690] sm:$0xff] }
 0x6cd   : > { %6858 = vmatpush1.bf16.msra.mxu0 %v6857_v44  ;;  %6900 = vmatpush1.bf16.msra.mxu1 %v6899_v45  ;;  %v5869_v44 = vld [vmem:[%s9983_s12 + $0x528] sm:$0xff]  ;;  %v6887_v45 = vpack.c.bf16 %v5839_v42, %v5838_v41  ;;  %v5890_v42 = vld [vmem:[%s9983_s12 + $0x5c0] sm:$0xff] }
 0x6ce   : > { %6859 = vmatprep.subr.bf16.mxu0 %v7161_v8  ;;  %6901 = vmatprep.subr.bf16.mxu1 %v7161_v8  ;;  %v6929_v46 = vpack.c.bf16 %v5869_v44, %v5868_v20  ;;  %v5891_v20 = vld [vmem:[%s9983_s12 + $0x5c8] sm:$0xff]  ;;  %v5920_v44 = vld [vmem:[%s9983_s12 + $0x6a0] sm:$0xff] }
 0x6d1   : > { %6861 = vmatpush1.bf16.msra.mxu0 %v6860_v47  ;;  %6903 = vmatpush1.bf16.msra.mxu1 %v6902_v48  ;;  %v5871_v47 = vld [vmem:[%s9983_s12 + $0x538] sm:$0xff]  ;;  %v6890_v48 = vpack.c.bf16 %v5841_v35, %v5840_v43  ;;  %v5892_v35 = vld [vmem:[%s9983_s12 + $0x5d0] sm:$0xff] }
 0x6d2   : > { %6862 = vmatprep.subr.bf16.mxu0 %v7161_v8  ;;  %6904 = vmatprep.subr.bf16.mxu1 %v7161_v8  ;;  %v6932_v19 = vpack.c.bf16 %v5871_v47, %v5870_v53  ;;  %v5893_v53 = vld [vmem:[%s9983_s12 + $0x5d8] sm:$0xff]  ;;  %v5922_v47 = vld [vmem:[%s9983_s12 + $0x6b0] sm:$0xff] }
 0x6d5   : > { %6864 = vmatpush1.bf16.msra.mxu0 %v6863_v50  ;;  %6906 = vmatpush1.bf16.msra.mxu1 %v6905_v51  ;;  %v5905_v50 = vld [vmem:[%s9983_s12 + $0x628] sm:$0xff]  ;;  %v6935_v51 = vpack.c.bf16 %v5875_v23, %v5874_v21  ;;  %v5894_v23 = vld [vmem:[%s9983_s12 + $0x5e0] sm:$0xff] }
 0x6d6   : > { %6865 = vmatprep.subr.bf16.mxu0 %v7161_v8  ;;  %6907 = vmatprep.subr.bf16.mxu1 %v7161_v8  ;;  %v6977_v52 = vpack.c.bf16 %v5905_v50, %v5904_v0  ;;  %v5895_v0 = vld [vmem:[%s9983_s12 + $0x5e8] sm:$0xff]  ;;  %v5924_v50 = vld [vmem:[%s9983_s12 + $0x6c0] sm:$0xff] }
 0x6d9   : > { %6867 = vmatpush1.bf16.msra.mxu0 %v6866_v49  ;;  %6909 = vmatpush1.bf16.msra.mxu1 %v6908_v37  ;;  %v5907_v49 = vld [vmem:[%s9983_s12 + $0x638] sm:$0xff]  ;;  %v6938_v37 = vpack.c.bf16 %v5877_v30, %v5876_v54  ;;  %v5896_v30 = vld [vmem:[%s9983_s12 + $0x5f0] sm:$0xff] }
 0x6da   : > { %6868 = vmatprep.subr.bf16.mxu0 %v7161_v8  ;;  %6910 = vmatprep.subr.bf16.mxu1 %v7161_v8  ;;  %v6980_v14 = vpack.c.bf16 %v5907_v49, %v5906_v31  ;;  %v5897_v31 = vld [vmem:[%s9983_s12 + $0x5f8] sm:$0xff]  ;;  %v5926_v49 = vld [vmem:[%s9983_s12 + $0x6d0] sm:$0xff] }
 0x6dd   : > { %6870 = vmatpush1.bf16.msra.mxu0 %v6869_v57  ;;  %6912 = vmatpush1.bf16.msra.mxu1 %v6911_v58  ;;  %v5909_v57 = vld [vmem:[%s9983_s12 + $0x648] sm:$0xff]  ;;  %v6941_v58 = vpack.c.bf16 %v5879_v29, %v5878_v55  ;;  %v5898_v29 = vld [vmem:[%s9983_s12 + $0x600] sm:$0xff] }
 0x6de   : > { %6871 = vmatprep.subr.bf16.mxu0 %v7161_v8  ;;  %6913 = vmatprep.subr.bf16.mxu1 %v7161_v8  ;;  %v6983_v59 = vpack.c.bf16 %v5909_v57, %v5908_v56  ;;  %v5899_v56 = vld [vmem:[%s9983_s12 + $0x608] sm:$0xff]  ;;  %v5928_v57 = vld [vmem:[%s9983_s12 + $0x6e0] sm:$0xff] }
 0x6e1   : > { %6873 = vmatpush1.bf16.msra.mxu0 %v6872_v62  ;;  %6915 = vmatpush1.bf16.msra.mxu1 %v6914_v63  ;;  %v5911_v62 = vld [vmem:[%s9983_s12 + $0x658] sm:$0xff]  ;;  %v6944_v63 = vpack.c.bf16 %v5881_v60, %v5880_v39  ;;  %v5900_v60 = vld [vmem:[%s9983_s12 + $0x610] sm:$0xff] }
 0x6e2   : > { %6874 = vmatprep.subr.bf16.mxu0 %v7161_v8  ;;  %6916 = vmatprep.subr.bf16.mxu1 %v7161_v8  ;;  %v6986_v32 = vpack.c.bf16 %v5911_v62, %v5910_v61  ;;  %v5901_v61 = vld [vmem:[%s9983_s12 + $0x618] sm:$0xff]  ;;  %v5930_v62 = vld [vmem:[%s9983_s12 + $0x6f0] sm:$0xff] }
 0x6e5   : > { %6876 = vmatpush1.bf16.msra.mxu0 %v6875_v4  ;;  %6918 = vmatpush1.bf16.msra.mxu1 %v6917_v5  ;;  %v5913_v4 = vld [vmem:[%s9983_s12 + $0x668] sm:$0xff]  ;;  %v6947_v5 = vpack.c.bf16 %v5883_v2, %v5882_v1  ;;  %v5934_v2 = vld [vmem:[%s9983_s12 + $0x700] sm:$0xff] }
 0x6e6   : > { %6877 = vmatprep.subr.bf16.mxu0 %v7161_v8  ;;  %6919 = vmatprep.subr.bf16.mxu1 %v7161_v8  ;;  %v6989_v7 = vpack.c.bf16 %v5913_v4, %v5912_v3  ;;  %v5935_v3 = vld [vmem:[%s9983_s12 + $0x708] sm:$0xff] }
 0x6e7   : > { %v7019_v4 = vpack.c.bf16 %v5935_v3, %v5934_v2 }
 0x6e9   : > { %6879 = vmatpush1.bf16.msra.mxu0 %v6878_v13  ;;  %6921 = vmatpush1.bf16.msra.mxu1 %v6920_v16  ;;  %v5915_v13 = vld [vmem:[%s9983_s12 + $0x678] sm:$0xff]  ;;  %v6950_v16 = vpack.c.bf16 %v5885_v10, %v5884_v9  ;;  %v5938_v10 = vld [vmem:[%s9983_s12 + $0x720] sm:$0xff] }
 0x6ea   : > { %6880 = vmatprep.subr.bf16.mxu0 %v7161_v8  ;;  %6922 = vmatprep.subr.bf16.mxu1 %v7161_v8  ;;  %v6992_v17 = vpack.c.bf16 %v5915_v13, %v5914_v12  ;;  %v5939_v12 = vld [vmem:[%s9983_s12 + $0x728] sm:$0xff] }
 0x6eb   : > { %v7025_v13 = vpack.c.bf16 %v5939_v12, %v5938_v10 }
 0x6ed   : > { %6882 = vmatpush1.bf16.msra.mxu0 %v6881_v25  ;;  %6924 = vmatpush1.bf16.msra.mxu1 %v6923_v26  ;;  %v5917_v25 = vld [vmem:[%s9983_s12 + $0x688] sm:$0xff]  ;;  %v6953_v26 = vpack.c.bf16 %v5887_v22, %v5886_v18 }
 0x6ee   : > { %6883 = vmatprep.subr.bf16.mxu0 %v7161_v8  ;;  %6925 = vmatprep.subr.bf16.mxu1 %v7161_v8  ;;  %v6995_v27 = vpack.c.bf16 %v5917_v25, %v5916_v24  ;;  %v5943_v22 = vld [vmem:[%s9983_s12 + $0x748] sm:$0xff]  ;;  %v5944_v25 = vld [vmem:[%s9983_s12 + $0x750] sm:$0xff] }
 0x6f1   : > { %6885 = vmatpush1.bf16.msra.mxu0 %v6884_v38  ;;  %6927 = vmatpush1.bf16.msra.mxu1 %v6926_v40  ;;  %v5919_v38 = vld [vmem:[%s9983_s12 + $0x698] sm:$0xff]  ;;  %v6956_v40 = vpack.c.bf16 %v5889_v34, %v5888_v28  ;;  %v5946_v28 = vld [vmem:[%s9983_s12 + $0x760] sm:$0xff]  ;;  %v5947_v34 = vld [vmem:[%s9983_s12 + $0x768] sm:$0xff] }
 0x6f2   : > { %6886 = vmatprep.subr.bf16.mxu0 %v7161_v8  ;;  %6928 = vmatprep.subr.bf16.mxu1 %v7161_v8  ;;  %v6998_v41 = vpack.c.bf16 %v5919_v38, %v5918_v36  ;;  %v7037_v36 = vpack.c.bf16 %v5947_v34, %v5946_v28  ;;  %v5948_v38 = vld [vmem:[%s9983_s12 + $0x770] sm:$0xff] }
 0x6f5   : > { %6888 = vmatpush1.bf16.msra.mxu0 %v6887_v45  ;;  %6930 = vmatpush1.bf16.msra.mxu1 %v6929_v46  ;;  %v5921_v45 = vld [vmem:[%s9983_s12 + $0x6a8] sm:$0xff]  ;;  %v6959_v46 = vpack.c.bf16 %v5891_v20, %v5890_v42  ;;  %v5950_v42 = vld [vmem:[%s9983_s12 + $0x780] sm:$0xff] }
 0x6f6   : > { %6889 = vmatprep.subr.bf16.mxu0 %v7161_v8  ;;  %6931 = vmatprep.subr.bf16.mxu1 %v7161_v8  ;;  %v7001_v43 = vpack.c.bf16 %v5921_v45, %v5920_v44  ;;  %v5951_v20 = vld [vmem:[%s9983_s12 + $0x788] sm:$0xff]  ;;  %v5952_v45 = vld [vmem:[%s9983_s12 + $0x790] sm:$0xff] }
 0x6f7   : > { %v7043_v44 = vpack.c.bf16 %v5951_v20, %v5950_v42 }
 0x6f9   : > { %6891 = vmatpush1.bf16.msra.mxu0 %v6890_v48  ;;  %6933 = vmatpush1.bf16.msra.mxu1 %v6932_v19  ;;  %v5923_v48 = vld [vmem:[%s9983_s12 + $0x6b8] sm:$0xff]  ;;  %v6962_v19 = vpack.c.bf16 %v5893_v53, %v5892_v35  ;;  %v5954_v35 = vld [vmem:[%s9983_s12 + $0x7a0] sm:$0xff]  ;;  %v5955_v53 = vld [vmem:[%s9983_s12 + $0x7a8] sm:$0xff] }
 0x6fa   : > { %6934 = vmatprep.subr.bf16.mxu0 %v7161_v8  ;;  %6976 = vmatprep.subr.bf16.mxu1 %v7161_v8  ;;  %v7004_v21 = vpack.c.bf16 %v5923_v48, %v5922_v47  ;;  %v7049_v47 = vpack.c.bf16 %v5955_v53, %v5954_v35  ;;  %v4160_v48 = vld [vmem:[#allocation4] sm:$0xff] }
 0x6fc   : > { %4701 = vmatmul.mubr.f32.vlgmr.msra.gmra.mrb[46].mxu0 %v9199_v33  ;;  %4811 = vmatmul.mubr.f32.vlgmr.msra.gmra.mrb[58].mxu1 %v9199_v33 }
 0x6fd   : > { %5843 = vmatprep.mubr.msk.f32.mxu0 %vm3124_vm13, %v9245_v6  ;;  %5873 = vmatprep.mubr.msk.f32.mxu1 %vm3124_vm13, %v9245_v6 }
 0x6fe   : > { %6936 = vmatpush1.bf16.msra.mxu0 %v6935_v51  ;;  %6978 = vmatpush1.bf16.msra.mxu1 %v6977_v52  ;;  %v5925_v51 = vld [vmem:[%s9983_s12 + $0x6c8] sm:$0xff]  ;;  %v6965_v52 = vpack.c.bf16 %v5895_v0, %v5894_v23 }
 0x6ff   : > { %6937 = vmatprep.subr.bf16.mxu0 %v7161_v8  ;;  %6979 = vmatprep.subr.bf16.mxu1 %v7161_v8  ;;  %v7007_v54 = vpack.c.bf16 %v5925_v51, %v5924_v50 }
 0x700   : > { %4706 = vmatmul.mubr.f32.gmra.mrb[48].mxu0 %v9252_v11  ;;  %4816 = vmatmul.mubr.f32.gmra.mrb[60].mxu1 %v9252_v11 }
 0x701   : > { %5902 = vmatprep.mubr.msk.f32.mxu0 %vm3124_vm13, %v9194_v15  ;;  %5932 = vmatprep.mubr.msk.f32.mxu1 %vm3124_vm13, %v9194_v15 }
 0x702   : > { %6939 = vmatpush1.bf16.msra.mxu0 %v6938_v37  ;;  %6981 = vmatpush1.bf16.msra.mxu1 %v6980_v14  ;;  %v5927_v37 = vld [vmem:[%s9983_s12 + $0x6d8] sm:$0xff]  ;;  %v6968_v14 = vpack.c.bf16 %v5897_v31, %v5896_v30  ;;  %v5958_v30 = vld [vmem:[%s9983_s12 + $0x7c0] sm:$0xff]  ;;  %v5959_v31 = vld [vmem:[%s9983_s12 + $0x7c8] sm:$0xff] }
 0x703   : > { %6940 = vmatprep.subr.bf16.mxu0 %v7161_v8  ;;  %6982 = vmatprep.subr.bf16.mxu1 %v7161_v8  ;;  %v7010_v55 = vpack.c.bf16 %v5927_v37, %v5926_v49  ;;  %v7055_v49 = vpack.c.bf16 %v5959_v31, %v5958_v30  ;;  %v5960_v37 = vld [vmem:[%s9983_s12 + $0x7d0] sm:$0xff]  ;;  %v5964_v30 = vld [vmem:[%s9984_s13] ss:$0 sm:$0xff] }
 0x706   : > { %6942 = vmatpush1.bf16.msra.mxu0 %v6941_v58  ;;  %6984 = vmatpush1.bf16.msra.mxu1 %v6983_v59  ;;  %v5929_v58 = vld [vmem:[%s9983_s12 + $0x6e8] sm:$0xff]  ;;  %v6971_v59 = vpack.c.bf16 %v5899_v56, %v5898_v29  ;;  %v4161_v29 = vld [vmem:[#allocation4 + $0x8] sm:$0x3f] }
 0x707   : > { %6943 = vmatprep.subr.bf16.mxu0 %v7161_v8  ;;  %6985 = vmatprep.subr.bf16.mxu1 %v7161_v8  ;;  %v7013_v39 = vpack.c.bf16 %v5929_v58, %v5928_v57 }
 0x70a   : > { %6945 = vmatpush1.bf16.msra.mxu0 %v6944_v63  ;;  %6987 = vmatpush1.bf16.msra.mxu1 %v6986_v32  ;;  %v5931_v63 = vld [vmem:[%s9983_s12 + $0x6f8] sm:$0xff]  ;;  %v6974_v32 = vpack.c.bf16 %v5901_v61, %v5900_v60 }
 0x70b   : > { %6946 = vmatprep.subr.bf16.mxu0 %v7161_v8  ;;  %6988 = vmatprep.subr.bf16.mxu1 %v7161_v8  ;;  %v7016_v1 = vpack.c.bf16 %v5931_v63, %v5930_v62 }
 0x70e   : > { %6948 = vmatpush1.bf16.msra.mxu0 %v6947_v5  ;;  %6990 = vmatpush1.bf16.msra.mxu1 %v6989_v7  ;;  %v5936_v5 = vld [vmem:[%s9983_s12 + $0x710] sm:$0xff]  ;;  %v5937_v7 = vld [vmem:[%s9983_s12 + $0x718] sm:$0xff] }
 0x70f   : > { %6949 = vmatprep.subr.bf16.mxu0 %v7161_v8  ;;  %6991 = vmatprep.subr.bf16.mxu1 %v7161_v8  ;;  %v7022_v9 = vpack.c.bf16 %v5937_v7, %v5936_v5 }
 0x712   : > { %6951 = vmatpush1.bf16.msra.mxu0 %v6950_v16  ;;  %6993 = vmatpush1.bf16.msra.mxu1 %v6992_v17  ;;  %v5940_v16 = vld [vmem:[%s9983_s12 + $0x730] sm:$0xff]  ;;  %v5941_v17 = vld [vmem:[%s9983_s12 + $0x738] sm:$0xff] }
 0x713   : > { %6952 = vmatprep.subr.bf16.mxu0 %v7161_v8  ;;  %6994 = vmatprep.subr.bf16.mxu1 %v7161_v8  ;;  %v7028_v18 = vpack.c.bf16 %v5941_v17, %v5940_v16 }
 0x716   : > { %6954 = vmatpush1.bf16.msra.mxu0 %v6953_v26  ;;  %6996 = vmatpush1.bf16.msra.mxu1 %v6995_v27  ;;  %v5945_v26 = vld [vmem:[%s9983_s12 + $0x758] sm:$0xff] }
 0x717   : > { %6955 = vmatprep.subr.bf16.mxu0 %v7161_v8  ;;  %6997 = vmatprep.subr.bf16.mxu1 %v7161_v8  ;;  %v7034_v27 = vpack.c.bf16 %v5945_v26, %v5944_v25 }
 0x71a   : > { %6957 = vmatpush1.bf16.msra.mxu0 %v6956_v40  ;;  %6999 = vmatpush1.bf16.msra.mxu1 %v6998_v41  ;;  %v5949_v40 = vld [vmem:[%s9983_s12 + $0x778] sm:$0xff] }
 0x71b   : > { %6958 = vmatprep.subr.bf16.mxu0 %v7161_v8  ;;  %7000 = vmatprep.subr.bf16.mxu1 %v7161_v8  ;;  %v7040_v41 = vpack.c.bf16 %v5949_v40, %v5948_v38 }
 0x71e   : > { %6960 = vmatpush1.bf16.msra.mxu0 %v6959_v46  ;;  %7002 = vmatpush1.bf16.msra.mxu1 %v7001_v43  ;;  %v5953_v46 = vld [vmem:[%s9983_s12 + $0x798] sm:$0xff] }
 0x71f   : > { %6961 = vmatprep.subr.bf16.mxu0 %v7161_v8  ;;  %7003 = vmatprep.subr.bf16.mxu1 %v7161_v8  ;;  %v7046_v43 = vpack.c.bf16 %v5953_v46, %v5952_v45 }
 0x722   : > { %6963 = vmatpush1.bf16.msra.mxu0 %v6962_v19  ;;  %7005 = vmatpush1.bf16.msra.mxu1 %v7004_v21  ;;  %v5956_v19 = vld [vmem:[%s9983_s12 + $0x7b0] sm:$0xff]  ;;  %v5957_v21 = vld [vmem:[%s9983_s12 + $0x7b8] sm:$0xff] }
 0x723   : > { %6964 = vmatprep.subr.bf16.mxu0 %v7161_v8  ;;  %7006 = vmatprep.subr.bf16.mxu1 %v7161_v8 }
 0x726   : > { %6966 = vmatpush1.bf16.msra.mxu0 %v6965_v52  ;;  %7008 = vmatpush1.bf16.msra.mxu1 %v7007_v54  ;;  %v7052_v54 = vpack.c.bf16 %v5957_v21, %v5956_v19 }
 0x727   : > { %6967 = vmatprep.subr.bf16.mxu0 %v7161_v8  ;;  %7009 = vmatprep.subr.bf16.mxu1 %v7161_v8 }
 0x72a   : > { %6969 = vmatpush1.bf16.msra.mxu0 %v6968_v14  ;;  %7011 = vmatpush1.bf16.msra.mxu1 %v7010_v55  ;;  %v5961_v14 = vld [vmem:[%s9983_s12 + $0x7d8] sm:$0xff] }
 0x72b   : > { %6970 = vmatprep.subr.bf16.mxu0 %v7161_v8  ;;  %7012 = vmatprep.subr.bf16.mxu1 %v7161_v8  ;;  %v7058_v55 = vpack.c.bf16 %v5961_v14, %v5960_v37 }
 0x72e   : > { %6972 = vmatpush1.bf16.msra.mxu0 %v6971_v59  ;;  %7014 = vmatpush1.bf16.msra.mxu1 %v7013_v39 }
 0x72f   : > { %6973 = vmatprep.subr.bf16.mxu0 %v7161_v8  ;;  %7015 = vmatprep.subr.bf16.mxu1 %v7161_v8 }
 0x732   : > { %6975 = vmatpush1.bf16.msra.mxu0 %v6974_v32  ;;  %7017 = vmatpush1.bf16.msra.mxu1 %v7016_v1 }
 0x733   : > { %7018 = vmatprep.subr.bf16.mxu0 %v7161_v8 }
 0x735   : > { %4921 = vmatmul.mubr.f32.vlgmr.msra.gmra.mrb[50].mxu0 %v9199_v33  ;;  %5031 = vmatmul.mubr.f32.vlgmr.msra.gmra.mrb[62].mxu1 %v9199_v33 }
 0x736   : > { %5903 = vmatprep.mubr.msk.f32.mxu0 %vm3124_vm13, %v9245_v6  ;;  %5933 = vmatprep.mubr.msk.f32.mxu1 %vm3124_vm13, %v9245_v6 }
 0x737   : > { %7020 = vmatpush1.bf16.msra.mxu0 %v7019_v4 }
 0x738   : > { %7021 = vmatprep.subr.bf16.mxu0 %v7161_v8 }
 0x739   : > { %4926 = vmatmul.mubr.f32.gmra.mrb[52].mxu0 %v9252_v11  ;;  %5036 = vmatmul.mubr.f32.gmra.mrb[64].mxu1 %v9252_v11 }
 0x73a   : > { %5962 = vmatprep.mubr.msk.f32.mxu0 %vm3124_vm13, %v9194_v15  ;;  %v5942_v15 = vld [vmem:[%s9983_s12 + $0x740] sm:$0xff] }
 0x73b   : > { %7023 = vmatpush1.bf16.msra.mxu0 %v7022_v9  ;;  %v7031_v24 = vpack.c.bf16 %v5943_v22, %v5942_v15 }
 0x73c   : > { %7024 = vmatprep.subr.bf16.mxu0 %v7161_v8 }
 0x73f   : > { %7026 = vmatpush1.bf16.msra.mxu0 %v7025_v13 }
 0x740   : > { %7027 = vmatprep.subr.bf16.mxu0 %v7161_v8 }
 0x743   : > { %7029 = vmatpush1.bf16.msra.mxu0 %v7028_v18 }
 0x744   : > { %7030 = vmatprep.subr.bf16.mxu0 %v7161_v8 }
 0x747   : > { %7032 = vmatpush1.bf16.msra.mxu0 %v7031_v24 }
 0x748   : > { %7033 = vmatprep.subr.bf16.mxu0 %v7161_v8 }
 0x74b   : > { %7035 = vmatpush1.bf16.msra.mxu0 %v7034_v27 }
 0x74c   : > { %7036 = vmatprep.subr.bf16.mxu0 %v7161_v8 }
 0x74f   : > { %7038 = vmatpush1.bf16.msra.mxu0 %v7037_v36 }
 0x750   : > { %7039 = vmatprep.subr.bf16.mxu0 %v7161_v8 }
 0x753   : > { %7041 = vmatpush1.bf16.msra.mxu0 %v7040_v41 }
 0x754   : > { %7042 = vmatprep.subr.bf16.mxu0 %v7161_v8 }
 0x757   : > { %7044 = vmatpush1.bf16.msra.mxu0 %v7043_v44 }
 0x758   : > { %7045 = vmatprep.subr.bf16.mxu0 %v7161_v8 }
 0x75b   : > { %7047 = vmatpush1.bf16.msra.mxu0 %v7046_v43 }
 0x75c   : > { %7048 = vmatprep.subr.bf16.mxu0 %v7161_v8 }
 0x75e   : > { %v4262_v23 = vpop.f32.mrb[38].mxu0  ;;  %v4372_v0 = vpop.f32.mrb[50].mxu1 }
 0x75f   : > { %7050 = vmatpush1.bf16.msra.mxu0 %v7049_v47  ;;  %v4271_v50 = vadd.f32 %v4262_v23, %v4160_v48  ;;  %v4264_v51 = vpop.f32.mrb[39].mxu0  ;;  %v4374_v52 = vpop.f32.mrb[51].mxu1 }
 0x760   : > { %7051 = vmatprep.subr.bf16.mxu0 %v7161_v8 }
 0x761   : > { %4273 = vst.msk [vmem:[#allocation4] sm:$0xff] %vm4155_vm10, %v4271_v50 }
 0x763   : > { %7053 = vmatpush1.bf16.msra.mxu0 %v7052_v54 }
 0x764   : > { %7054 = vmatprep.subr.bf16.mxu0 %v7161_v8 }
 0x767   : > { %7056 = vmatpush1.bf16.msra.mxu0 %v7055_v49 }
 0x768   : > { %7057 = vmatprep.subr.bf16.mxu0 %v7161_v8 }
 0x76a   : > { %v4267_v56 = vpop.f32.mrb[40].mxu0  ;;  %v4377_v57 = vpop.f32.mrb[52].mxu1 }
 0x76b   : > { %7059 = vmatpush1.bf16.msra.mxu0 %v7058_v55  ;;  %v4272_v58 = vadd.f32 %v4267_v56, %v4161_v29  ;;  %v4269_v59 = vpop.f32.mrb[41].mxu0  ;;  %v4379_v39 = vpop.f32.mrb[53].mxu1 }
 0x76d   : > { %4274 = vst.msk [vmem:[#allocation4 + $0x8] sm:$0x3f] %vm4158_vm11, %v4272_v58 }
 0x76e   : > { %5141 = vmatmul.mubr.f32.vlgmr.msra.gmra.mrb[54].mxu0 %v9199_v33 }
 0x76f   : > { %5963 = vmatprep.mubr.msk.f32.mxu0 %vm3124_vm13, %v9245_v6 }
 0x772   : > { %5146 = vmatmul.mubr.f32.gmra.mrb[56].mxu0 %v9252_v11 }
 0x774   : > { %v4275_v60 = vld [vmem:[#allocation4 + $0x1] sm:$0xff]  ;;  %v4276_v61 = vld [vmem:[#allocation4 + $0x9] sm:$0x3f] }
 0x775   : > { %v4381_v62 = vadd.f32 %v4372_v0, %v4275_v60  ;;  %v4382_v8 = vadd.f32 %v4377_v57, %v4276_v61 }
 0x777   : > { %4383 = vst.msk [vmem:[#allocation4 + $0x1] sm:$0xff] %vm4155_vm10, %v4381_v62 }
 0x778   : > { %4384 = vst.msk [vmem:[#allocation4 + $0x9] sm:$0x3f] %vm4158_vm11, %v4382_v8 }
 0x77f   : > { %v4385_v63 = vld [vmem:[#allocation4 + $0x2] sm:$0xff]  ;;  %v4386_v33 = vld [vmem:[#allocation4 + $0xa] sm:$0x3f] }
 0x796   : > { %v4482_v32 = vpop.f32.mrb[42].mxu0  ;;  %v4592_v1 = vpop.f32.mrb[54].mxu1 }
 0x797   : > { %v4491_v2 = vadd.f32 %v4482_v32, %v4385_v63  ;;  %v4484_v3 = vpop.f32.mrb[43].mxu0  ;;  %v4594_v4 = vpop.f32.mrb[55].mxu1 }
 0x799   : > { %4493 = vst.msk [vmem:[#allocation4 + $0x2] sm:$0xff] %vm4155_vm10, %v4491_v2 }
 0x79a   : > { %v4487_v6 = vpop.f32.mrb[44].mxu0  ;;  %v4597_v5 = vpop.f32.mrb[56].mxu1 }
 0x79b   : > { %v4492_v11 = vadd.f32 %v4487_v6, %v4386_v33  ;;  %v4489_v7 = vpop.f32.mrb[45].mxu0  ;;  %v4599_v9 = vpop.f32.mrb[57].mxu1 }
 0x79d   : > { %4494 = vst.msk [vmem:[#allocation4 + $0xa] sm:$0x3f] %vm4158_vm11, %v4492_v11 }
 0x7a4   : > { %v4496_v10 = vld [vmem:[#allocation4 + $0xb] sm:$0x3f]  ;;  %v4495_v12 = vld [vmem:[#allocation4 + $0x3] sm:$0xff] }
 0x7a5   : > { %v4602_v13 = vadd.f32 %v4597_v5, %v4496_v10  ;;  %v4601_v16 = vadd.f32 %v4592_v1, %v4495_v12 }
 0x7a7   : > { %4604 = vst.msk [vmem:[#allocation4 + $0xb] sm:$0x3f] %vm4158_vm11, %v4602_v13 }
 0x7a8   : > { %4603 = vst.msk [vmem:[#allocation4 + $0x3] sm:$0xff] %vm4155_vm10, %v4601_v16 }
 0x7ae   : > { %v4606_v26 = vld [vmem:[#allocation4 + $0xc] sm:$0x3f] }
 0x7af   : > { %v4605_v17 = vld [vmem:[#allocation4 + $0x4] sm:$0xff] }
 0x7cf   : > { %v4702_v18 = vpop.f32.mrb[46].mxu0  ;;  %v4812_v15 = vpop.f32.mrb[58].mxu1 }
 0x7d0   : > { %v4711_v22 = vadd.f32 %v4702_v18, %v4605_v17  ;;  %v4704_v24 = vpop.f32.mrb[47].mxu0  ;;  %v4814_v25 = vpop.f32.mrb[59].mxu1 }
 0x7d2   : > { %4713 = vst.msk [vmem:[#allocation4 + $0x4] sm:$0xff] %vm4155_vm10, %v4711_v22 }
 0x7d3   : > { %v4707_v27 = vpop.f32.mrb[48].mxu0  ;;  %v4817_v28 = vpop.f32.mrb[60].mxu1 }
 0x7d4   : > { %v4712_v34 = vadd.f32 %v4707_v27, %v4606_v26  ;;  %v4709_v36 = vpop.f32.mrb[49].mxu0  ;;  %v4819_v38 = vpop.f32.mrb[61].mxu1 }
 0x7d6   : > { %4714 = vst.msk [vmem:[#allocation4 + $0xc] sm:$0x3f] %vm4158_vm11, %v4712_v34 }
 0x7dd   : > { %v4716_v40 = vld [vmem:[#allocation4 + $0xd] sm:$0x3f]  ;;  %v4715_v41 = vld [vmem:[#allocation4 + $0x5] sm:$0xff] }
 0x7de   : > { %v4822_v42 = vadd.f32 %v4817_v28, %v4716_v40  ;;  %v4821_v20 = vadd.f32 %v4812_v15, %v4715_v41 }
 0x7e0   : > { %4824 = vst.msk [vmem:[#allocation4 + $0xd] sm:$0x3f] %vm4158_vm11, %v4822_v42 }
 0x7e1   : > { %4823 = vst.msk [vmem:[#allocation4 + $0x5] sm:$0xff] %vm4155_vm10, %v4821_v20 }
 0x7e7   : > { %v4826_v47 = vld [vmem:[#allocation4 + $0xe] sm:$0x3f] }
 0x7e8   : > { %v4825_v44 = vld [vmem:[#allocation4 + $0x6] sm:$0xff] }
 0x808   : > { %v4922_v45 = vpop.f32.mrb[50].mxu0  ;;  %v5032_v46 = vpop.f32.mrb[62].mxu1 }
 0x809   : > { %v4931_v43 = vadd.f32 %v4922_v45, %v4825_v44  ;;  %v4924_v35 = vpop.f32.mrb[51].mxu0  ;;  %v5034_v53 = vpop.f32.mrb[63].mxu1 }
 0x80b   : > { %4933 = vst.msk [vmem:[#allocation4 + $0x6] sm:$0xff] %vm4155_vm10, %v4931_v43 }
 0x80c   : > { %v4927_v48 = vpop.f32.mrb[52].mxu0  ;;  %v5037_v19 = vpop.f32.mrb[64].mxu1 }
 0x80d   : > { %v4932_v21 = vadd.f32 %v4927_v48, %v4826_v47  ;;  %v4929_v23 = vpop.f32.mrb[53].mxu0  ;;  %v5039_v0 = vpop.f32.mrb[65].mxu1 }
 0x80f   : > { %4934 = vst.msk [vmem:[#allocation4 + $0xe] sm:$0x3f] %vm4158_vm11, %v4932_v21 }
 0x816   : > { %v4935_v50 = vld [vmem:[#allocation4 + $0x7] sm:$0xff]  ;;  %v4936_v51 = vld [vmem:[#allocation4 + $0xf] sm:$0x3f] }
 0x817   : > { %v5041_v52 = vadd.f32 %v5032_v46, %v4935_v50  ;;  %v5042_v54 = vadd.f32 %v5037_v19, %v4936_v51 }
 0x819   : > { %5043 = vst.msk [vmem:[#allocation4 + $0x7] sm:$0xff] %vm4155_vm10, %v5041_v52 }
 0x81a   : > { %5044 = vst.msk [vmem:[#allocation4 + $0xf] sm:$0x3f] %vm4158_vm11, %v5042_v54 }
 0x820   : > { %v5155_v31 = vld [vmem:[#allocation4] sm:$0xff] }
 0x821   : > { %v5165_v49 = vadd.f32 %v5964_v30, %v5155_v31  ;;  %v5045_v57 = vld [vmem:[#allocation4 + $0x8] sm:$0xff]  ;;  %v5046_v60 = vld [vmem:[#allocation4 + $0x10] sm:$0x3f] }
 0x823   : > { %v5168_v37 = vsub.f32 0.0, %v5165_v49 }
 0x825   : > { %v5171_v14 = vmul.f32 1.442695, %v5168_v37 }
 0x827   : > { %7137 = vpow2.f32 %v5171_v14 }
 0x831   : > { %v7138_v55 = vpop.eup %7137 }
 0x832   : > { %v5177_v29 = vadd.f32 1.0, %v7138_v55 }
 0x834   : > { %7139 = vrcp.f32 %v5177_v29 }
 0x83e   : > { %v7140_v56 = vpop.eup %7139 }
 0x83f   : > { %5186 = vst.msk [vmem:[%s9958_s16] sm:$0xff] %vm4155_vm10, %v7140_v56 }
 0x841   : > { %v5142_v58 = vpop.f32.mrb[54].mxu0 }
 0x842   : > { %v5151_v59 = vadd.f32 %v5142_v58, %v5045_v57  ;;  %v5144_v39 = vpop.f32.mrb[55].mxu0 }
 0x844   : > { %5153 = vst.msk [vmem:[#allocation4 + $0x8] sm:$0xff] %vm4155_vm10, %v5151_v59 }
 0x845   : > { %v5147_v61 = vpop.f32.mrb[56].mxu0 }
 0x846   : > { %v5152_v62 = vadd.f32 %v5147_v61, %v5046_v60  ;;  %v5149_v8 = vpop.f32.mrb[57].mxu0 }
 0x848   : > { %5154 = vst.msk [vmem:[#allocation4 + $0x10] sm:$0x3f] %vm4158_vm11, %v5152_v62 }
 0x84b   : > { %v5156_v63 = vld [vmem:[#allocation4 + $0x8] sm:$0xff] }
 0x84c   : > { %v5166_v32 = vadd.f32 %v5964_v30, %v5156_v63 }
 0x84e   : > { %v5169_v1 = vsub.f32 0.0, %v5166_v32 }
 0x84f   : > { %v5157_v2 = vld [vmem:[#allocation4 + $0x10] sm:$0x3f] }
 0x850   : > { %v5167_v3 = vadd.f32 %v5964_v30, %v5157_v2  ;;  %v5173_v4 = vmul.f32 1.442695, %v5169_v1 }
 0x852   : > { %v5170_v33 = vsub.f32 0.0, %v5167_v3  ;;  %7141 = vpow2.f32 %v5173_v4 }
 0x854   : > { %v5175_v6 = vmul.f32 1.442695, %v5170_v33 }
 0x856   : > { %7143 = vpow2.f32 %v5175_v6 }
 0x85c   : > { %v7142_v5 = vpop.eup %7141 }
 0x85d   : > { %v5178_v11 = vadd.f32 1.0, %v7142_v5 }
 0x85f   : > { %7145 = vrcp.f32 %v5178_v11 }
 0x860   : > { %v7144_v7 = vpop.eup %7143 }
 0x861   : > { %v5179_v9 = vadd.f32 1.0, %v7144_v7 }
 0x863   : > { %7147 = vrcp.f32 %v5179_v9 }
 0x869   : > { %v7146_v10 = vpop.eup %7145 }
 0x86a   : > { %5187 = vst.msk [vmem:[%s9958_s16 + $0x8] sm:$0xff] %vm4155_vm10, %v7146_v10 }
 0x86d   : > { %v7148_v12 = vpop.eup %7147 }
 0x86e   : > { %5188 = vst.msk [vmem:[%s9958_s16 + $0x10] sm:$0x3f] %vm4158_vm11, %v7148_v12 }
 0x86f PF: > { %s24_s29 = sadd.s32 1, %s7157_s29  }
 0x870   : > { %p21_p4 = scmp.ge.s32.totalorder %s24_s29, 4  }
 0x872   :  { %23 = sbr.rel (!%p21_p4) target bundleno = 1 (0x1), region = 144 }

</bundles_post_ra>
